<compile_context>
chip_gen: v7x
topology: tpu7x:2x2x1
jax: 0.10.0
libtpu: 0.0.40
codegen_flags: <defaults>
</compile_context>

<pallas_src>
import functools

import jax
import jax.numpy as jnp
from jax.experimental import pallas as pl
from jax.experimental.pallas import tpu as pltpu


_VMEM_LIMIT = 64 * 1024 * 1024          # explicit scoped-VMEM budget (<= v7x physical)
_GELU_C = 0.7978845608028654            # sqrt(2/pi)


# ----------------------------------------------------------------------------
# In-kernel math helpers
# ----------------------------------------------------------------------------

def _layernorm(x, g, b, eps):
    mean = jnp.mean(x, axis=-1, keepdims=True)
    xm = x - mean
    var = jnp.mean(xm * xm, axis=-1, keepdims=True)
    return xm * jax.lax.rsqrt(var + eps) * g + b


def _gelu_tanh(x):
    # tanh-form GELU: tanh goes to the EUP slot instead of ~12 VALU ops/elem.
    # ~1e-3 max deviation from torch's exact-erf nn.GELU() (inference-OK).
    return 0.5 * x * (1.0 + jnp.tanh(_GELU_C * (x + 0.044715 * x * x * x)))


# ----------------------------------------------------------------------------
# Pallas kernels
# ----------------------------------------------------------------------------

def _patch_embed_kernel(x_ref, w_ref, b_ref, o_ref):
    """Row-tiled linear: y = x @ w + b (bf16 MXU feed, f32 accumulate)."""
    y = jnp.dot(x_ref[...].astype(w_ref.dtype), w_ref[...],
                preferred_element_type=jnp.float32)
    o_ref[...] = (y + b_ref[...]).astype(o_ref.dtype)


def _block_kernel(x_ref, g1_ref, b1_ref, qkvw_ref, outw_ref, outb_ref,
                  g2_ref, b2_ref, w1_ref, mb1_ref, w2_ref, mb2_ref, o_ref,
                  *, heads, head_dim, scale, n_real, eps):
    """Fused transformer block for one batch element.

    x -> x + out_proj(MHSA(LN1(x))) -> x + MLP(LN2(x))
    """
    dim = heads * head_dim
    x = x_ref[0].astype(jnp.float32)                              # (n_pad, dim)
    n = x.shape[0]

    # ---------------- attention path ----------------
    h = _layernorm(x, g1_ref[...], b1_ref[...], eps)
    qkv = jnp.dot(h.astype(qkvw_ref.dtype), qkvw_ref[...],
                  preferred_element_type=jnp.float32)             # (n, 3*dim)

    # Pad key columns (tokens >= n_real) masked out of every head's softmax.
    key_mask = jax.lax.broadcasted_iota(jnp.int32, (n, n), 1) < n_real

    head_outs = []
    for hh in range(heads):
        lo = hh * head_dim
        q_h = qkv[:, lo:lo + head_dim].astype(jnp.bfloat16)
        k_h = qkv[:, dim + lo:dim + lo + head_dim].astype(jnp.bfloat16)
        v_h = qkv[:, 2 * dim + lo:2 * dim + lo + head_dim].astype(jnp.bfloat16)

        # scores = q k^T: contract last dims of both (no explicit transpose).
        s = jax.lax.dot_general(q_h, k_h,
                                dimension_numbers=(((1,), (1,)), ((), ())),
                                preferred_element_type=jnp.float32) * scale
        s = jnp.where(key_mask, s, -1e30)
        s = s - jnp.max(s, axis=-1, keepdims=True)
        e = jnp.exp(s)
        p = e * pl.reciprocal(jnp.sum(e, axis=-1, keepdims=True), approx=True)
        head_outs.append(jnp.dot(p.astype(jnp.bfloat16), v_h,
                                 preferred_element_type=jnp.float32))

    # Cheap lane placement (concat) then ONE full-depth out-projection matmul.
    o_cat = jnp.concatenate(head_outs, axis=-1)                   # (n, dim)
    attn = jnp.dot(o_cat.astype(outw_ref.dtype), outw_ref[...],
                   preferred_element_type=jnp.float32) + outb_ref[...]
    x = x + attn

    # ---------------- MLP path ----------------
    h2 = _layernorm(x, g2_ref[...], b2_ref[...], eps)
    h1 = jnp.dot(h2.astype(w1_ref.dtype), w1_ref[...],
                 preferred_element_type=jnp.float32) + mb1_ref[...]
    h1 = _gelu_tanh(h1)
    y = jnp.dot(h1.astype(w2_ref.dtype), w2_ref[...],
                preferred_element_type=jnp.float32) + mb2_ref[...]
    x = x + y

    # Keep pad rows at exactly zero so the residual stream stays clean.
    row_mask = jax.lax.broadcasted_iota(jnp.int32, (n, 1), 0) < n_real
    o_ref[0] = jnp.where(row_mask, x, 0.0).astype(o_ref.dtype)


def _head_kernel(x_ref, g_ref, b_ref, w_ref, hb_ref, o_ref, *, eps):
    """Fused classification head: LayerNorm(cls) @ W + b (lane-padded output)."""
    x = x_ref[...].astype(jnp.float32)
    h = _layernorm(x, g_ref[...], b_ref[...], eps)
    y = jnp.dot(h.astype(w_ref.dtype), w_ref[...],
                preferred_element_type=jnp.float32) + hb_ref[...]
    o_ref[...] = y.astype(o_ref.dtype)


# ----------------------------------------------------------------------------
# Optional single-buffering of constant-index weight blocks (pl.Buffered(1)).
# Probed once at import; falls back to default (double-buffered) specs if the
# running JAX/Pallas version rejects it or produces wrong data.
# ----------------------------------------------------------------------------

def _probe_buffered_support():
    try:
        def _k(w_ref, x_ref, o_ref):
            o_ref[...] = x_ref[...] + w_ref[...]

        f = pl.pallas_call(
            _k,
            grid=(2,),
            in_specs=[pl.BlockSpec((8, 128), lambda i: (0, 0),
                                   pipeline_mode=pl.Buffered(1)),
                      pl.BlockSpec((8, 128), lambda i: (i, 0))],
            out_specs=pl.BlockSpec((8, 128), lambda i: (i, 0)),
            out_shape=jax.ShapeDtypeStruct((16, 128), jnp.float32),
        )
        w = jnp.ones((8, 128), jnp.float32)
        x = jnp.arange(16 * 128, dtype=jnp.float32).reshape(16, 128)
        out = jax.block_until_ready(f(w, x))
        return bool(jnp.allclose(out, x + 1.0))
    except Exception:
        return False


_BUFFERED_OK = _probe_buffered_support()


def _weight_spec(shape, index_map):
    """BlockSpec for a weight whose block index never changes across the grid."""
    if _BUFFERED_OK:
        return pl.BlockSpec(shape, index_map, pipeline_mode=pl.Buffered(1))
    return pl.BlockSpec(shape, index_map)


# ----------------------------------------------------------------------------
# Pallas wrappers
# ----------------------------------------------------------------------------

def patch_embed(x, w, b, *, out_dtype):
    """x: (M, K) -> (M, N) in out_dtype; row-tiled grid, weight resident."""
    M, K = x.shape
    N = w.shape[1]
    tm = 256 if M >= 256 else ((M + 7) // 8) * 8
    M_pad = ((M + tm - 1) // tm) * tm
    if M_pad != M:
        x = jnp.pad(x, ((0, M_pad - M), (0, 0)))
    out = pl.pallas_call(
        _patch_embed_kernel,
        grid=(M_pad // tm,),
        in_specs=[
            pl.BlockSpec((tm, K), lambda i: (i, 0)),
            _weight_spec((K, N), lambda i: (0, 0)),
            pl.BlockSpec((1, N), lambda i: (0, 0)),
        ],
        out_specs=pl.BlockSpec((tm, N), lambda i: (i, 0)),
        out_shape=jax.ShapeDtypeStruct((M_pad, N), out_dtype),
        compiler_params=pltpu.CompilerParams(
            dimension_semantics=("parallel",),
            vmem_limit_bytes=_VMEM_LIMIT),
    )(x, w, b.reshape(1, N))
    return out[:M]


def transformer_block(x, blk, *, heads, n_real, eps=1e-5):
    """x: (b, n_pad, dim) bf16 -> same; one fused kernel per block, grid over batch."""
    b, n_pad, dim = x.shape
    head_dim = dim // heads
    mlp_dim = blk["mlp_w1"].shape[1]
    kern = functools.partial(_block_kernel, heads=heads, head_dim=head_dim,
                             scale=head_dim ** (-0.5), n_real=n_real, eps=eps)
    x_spec = pl.BlockSpec((1, n_pad, dim), lambda i: (i, 0, 0))

    def vec(width):
        return pl.BlockSpec((1, width), lambda i: (0, 0))

    return pl.pallas_call(
        kern,
        grid=(b,),
        in_specs=[
            x_spec,
            vec(dim), vec(dim),                                   # ln1 gamma/beta
            _weight_spec((dim, 3 * dim), lambda i: (0, 0)),       # qkv_w
            _weight_spec((dim, dim), lambda i: (0, 0)),           # out_w
            vec(dim),                                             # out_b
            vec(dim), vec(dim),                                   # ln2 gamma/beta
            _weight_spec((dim, mlp_dim), lambda i: (0, 0)),       # mlp_w1
            vec(mlp_dim),                                         # mlp_b1
            _weight_spec((mlp_dim, dim), lambda i: (0, 0)),       # mlp_w2
            vec(dim),                                             # mlp_b2
        ],
        out_specs=x_spec,
        out_shape=jax.ShapeDtypeStruct(x.shape, x.dtype),
        input_output_aliases={0: 0},                              # x updated in place
        compiler_params=pltpu.CompilerParams(
            dimension_semantics=("parallel",),
            vmem_limit_bytes=_VMEM_LIMIT),
    )(x, blk["ln1_g"].reshape(1, dim), blk["ln1_b"].reshape(1, dim),
      blk["qkv_w"], blk["out_w"], blk["out_b"].reshape(1, dim),
      blk["ln2_g"].reshape(1, dim), blk["ln2_b"].reshape(1, dim),
      blk["mlp_w1"], blk["mlp_b1"].reshape(1, mlp_dim),
      blk["mlp_w2"], blk["mlp_b2"].reshape(1, dim))


def mlp_head(x_cls, g, beta, w, bias, *, eps=1e-5):
    """Fused LayerNorm + Linear on the CLS tokens; lane-padded dense store."""
    b, dim = x_cls.shape
    ncls = w.shape[1]
    n_lane = ((ncls + 127) // 128) * 128
    w_p = jnp.pad(w, ((0, 0), (0, n_lane - ncls)))
    b_p = jnp.pad(bias, (0, n_lane - ncls))
    out = pl.pallas_call(
        functools.partial(_head_kernel, eps=eps),
        out_shape=jax.ShapeDtypeStruct((b, n_lane), jnp.float32),
        compiler_params=pltpu.CompilerParams(vmem_limit_bytes=_VMEM_LIMIT),
    )(x_cls, g.reshape(1, dim), beta.reshape(1, dim), w_p, b_p.reshape(1, n_lane))
    return out[:, :ncls]


# ----------------------------------------------------------------------------
# Model: parameter construction (deterministic) and forward pass
# ----------------------------------------------------------------------------

def init_vit_params(key, *, image_size, patch_size, channels, dim, depth,
                    heads, mlp_dim, num_classes):
    del heads, image_size
    patch_dim = channels * patch_size * patch_size
    counter = [0]

    def nrm(shape, scale=0.02, dtype=jnp.float32):
        counter[0] += 1
        k = jax.random.fold_in(key, counter[0])
        return (scale * jax.random.normal(k, shape, jnp.float32)).astype(dtype)

    params = {
        # Matmul weights stored pre-transposed (in_features, out_features),
        # bf16 to halve weight DMA; biases / LN params / cls token stay f32.
        "patch_w": nrm((patch_dim, dim), dtype=jnp.bfloat16),
        "patch_b": nrm((dim,)),
        "cls_token": nrm((1, 1, dim), scale=1.0),
        "blocks": [],
        "head_ln_g": jnp.ones((dim,), jnp.float32),
        "head_ln_b": jnp.zeros((dim,), jnp.float32),
        "head_w": nrm((dim, num_classes)),
        "head_b": nrm((num_classes,)),
    }
    for _ in range(depth):
        params["blocks"].append({
            "ln1_g": jnp.ones((dim,), jnp.float32),
            "ln1_b": jnp.zeros((dim,), jnp.float32),
            "qkv_w": nrm((dim, 3 * dim), dtype=jnp.bfloat16),     # to_qkv: no bias
            "out_w": nrm((dim, dim), dtype=jnp.bfloat16),
            "out_b": nrm((dim,)),
            "ln2_g": jnp.ones((dim,), jnp.float32),
            "ln2_b": jnp.zeros((dim,), jnp.float32),
            "mlp_w1": nrm((dim, mlp_dim), dtype=jnp.bfloat16),
            "mlp_b1": nrm((mlp_dim,)),
            "mlp_w2": nrm((mlp_dim, dim), dtype=jnp.bfloat16),
            "mlp_b2": nrm((dim,)),
        })
    return params


def extract_patches(img, patch_size):
    """NCHW -> (b, num_patches, c*p*p), matching torch unfold/permute order."""
    b, c, h, w = img.shape
    p = patch_size
    hp, wp = h // p, w // p
    x = img.reshape(b, c, hp, p, wp, p)
    x = x.transpose(0, 2, 4, 1, 3, 5)            # (b, hp, wp, c, p, p)
    return x.reshape(b, hp * wp, c * p * p)


def vit_forward(params, img, *, patch_size, dim, heads):
    b = img.shape[0]

    # Patch embedding (row-tiled linear kernel); residual stream is bf16.
    patches = extract_patches(img, patch_size)                    # (b, N, patch_dim)
    npatch = patches.shape[1]
    x = patch_embed(patches.reshape(b * npatch, -1),
                    params["patch_w"], params["patch_b"],
                    out_dtype=jnp.bfloat16)                       # (b*N, dim)
    x = x.reshape(b, npatch, dim)

    # Prepend CLS token, pad token axis once to a multiple of 16 sublanes
    # (bf16 packing); pad tokens are masked inside the block kernels.
    cls = jnp.broadcast_to(params["cls_token"].astype(x.dtype), (b, 1, dim))
    x = jnp.concatenate([cls, x], axis=1)                         # (b, n_real, dim)
    n_real = npatch + 1
    n_pad = ((n_real + 15) // 16) * 16
    if n_pad != n_real:
        x = jnp.pad(x, ((0, 0), (0, n_pad - n_real), (0, 0)))

    # Transformer blocks: one fused kernel per block (dropout = identity, eval).
    # TODO(synk): RoPE / positional encoders are None in the reference default
    # config and are therefore not applied.
    for blk in params["blocks"]:
        x = transformer_block(x, blk, heads=heads, n_real=n_real)

    # Classification head on the CLS token (fused LN + linear kernel).
    cls_out = x[:, 0]                                             # (b, dim) bf16
    return mlp_head(cls_out, params["head_ln_g"], params["head_ln_b"],
                    params["head_w"], params["head_b"])


# ----------------------------------------------------------------------------
# Main
# ----------------------------------------------------------------------------

if __name__ == "__main__":
    # Small-but-consistent ViT config (real ViT-B dims would exercise the MXU
    # properly; these shapes only validate structure/correctness).
    IMAGE_SIZE = 16
    PATCH_SIZE = 4
    CHANNELS = 4
    DIM = 32
    DEPTH = 2
    HEADS = 4
    MLP_DIM = 64
    NUM_CLASSES = 10
    BATCH = 2

    key = jax.random.PRNGKey(0)
    k_img, k_par = jax.random.split(key)
    img = jax.random.normal(k_img, (BATCH, CHANNELS, IMAGE_SIZE, IMAGE_SIZE),
                            jnp.float32)

    params = init_vit_params(
        k_par, image_size=IMAGE_SIZE, patch_size=PATCH_SIZE, channels=CHANNELS,
        dim=DIM, depth=DEPTH, heads=HEADS, mlp_dim=MLP_DIM,
        num_classes=NUM_CLASSES)

    fwd = jax.jit(functools.partial(vit_forward, patch_size=PATCH_SIZE,
                                    dim=DIM, heads=HEADS))
    logits = fwd(params, img)
    jax.block_until_ready(logits)

    assert logits.shape == (BATCH, NUM_CLASSES)
    assert bool(jnp.all(jnp.isfinite(logits)))
    print("KERNEL_OK")
</pallas_src>

<mosaic_0001>
module attributes {stable_mosaic.version = 11 : i64} {
  func.func @_k(%arg0: i32, %arg1: memref<8x128xf32, #tpu.memory_space<vmem>>, %arg2: memref<8x128xf32, #tpu.memory_space<vmem>>, %arg3: memref<8x128xf32, #tpu.memory_space<vmem>>) attributes {dimension_semantics = [#tpu.dimension_semantics<arbitrary>], iteration_bounds = array<i64: 2>, scalar_prefetch = 0 : i64, scratch_operands = 0 : i64, tpu.core_type = #tpu.core_type<tc>, window_params = [{pipeline_mode = #tpu.pipeline_mode<synchronous>, transform_indices = @transform_0, window_bounds = array<i64: 8, 128>}, {transform_indices = @transform_1, window_bounds = array<i64: 8, 128>}, {transform_indices = @transform_2, window_bounds = array<i64: 8, 128>}]} {
    %c0 = arith.constant 0 : index
    %c0_0 = arith.constant 0 : index
    %0 = vector.load %arg2[%c0, %c0_0] : memref<8x128xf32, #tpu.memory_space<vmem>>, vector<8x128xf32>
    %c0_1 = arith.constant 0 : index
    %c0_2 = arith.constant 0 : index
    %1 = vector.load %arg1[%c0_1, %c0_2] : memref<8x128xf32, #tpu.memory_space<vmem>>, vector<8x128xf32>
    %2 = arith.addf %0, %1 : vector<8x128xf32>
    %c0_3 = arith.constant 0 : index
    %c0_4 = arith.constant 0 : index
    %3 = vector.load %arg3[%c0_3, %c0_4] : memref<8x128xf32, #tpu.memory_space<vmem>>, vector<8x128xf32>
    tpu.vector_store %arg3[%c0_3, %c0_4], %2 {strides = array<i32>} : memref<8x128xf32, #tpu.memory_space<vmem>>, vector<8x128xf32>,
    return
  }
  func.func @transform_0(%arg0: i32) -> (i32, i32) {
    %c0_i32 = arith.constant 0 : i32
    %c0_i32_0 = arith.constant 0 : i32
    %c0_i32_1 = arith.constant 0 : i32
    return %c0_i32, %c0_i32_0 : i32, i32
  }
  func.func @transform_1(%arg0: i32) -> (i32, i32) {
    %c0_i32 = arith.constant 0 : i32
    %c0_i32_0 = arith.constant 0 : i32
    return %arg0, %c0_i32 : i32, i32
  }
  func.func @transform_2(%arg0: i32) -> (i32, i32) {
    %c0_i32 = arith.constant 0 : i32
    %c0_i32_0 = arith.constant 0 : i32
    return %arg0, %c0_i32 : i32, i32
  }
}

module attributes {stable_mosaic.version = 11 : i64} {
  func.func @_patch_embed_kernel(%arg0: i32, %arg1: memref<32x64xf32, #tpu.memory_space<vmem>>, %arg2: memref<64x32xbf16, #tpu.memory_space<vmem>>, %arg3: memref<1x32xf32, #tpu.memory_space<vmem>>, %arg4: memref<32x32xbf16, #tpu.memory_space<vmem>>) attributes {dimension_semantics = [#tpu.dimension_semantics<parallel>], iteration_bounds = array<i64: 1>, scalar_prefetch = 0 : i64, scratch_operands = 0 : i64, tpu.core_type = #tpu.core_type<tc>, window_params = [{transform_indices = @transform_0, window_bounds = array<i64: 32, 64>}, {pipeline_mode = #tpu.pipeline_mode<synchronous>, transform_indices = @transform_1, window_bounds = array<i64: 64, 32>}, {pipeline_mode = #tpu.pipeline_mode<synchronous>, transform_indices = @transform_2, window_bounds = array<i64: 1, 32>}, {transform_indices = @transform_3, window_bounds = array<i64: 32, 32>}]} {
    %c0 = arith.constant 0 : index
    %c0_0 = arith.constant 0 : index
    %0 = vector.load %arg1[%c0, %c0_0] : memref<32x64xf32, #tpu.memory_space<vmem>>, vector<32x64xf32>
    %1 = arith.truncf %0 : vector<32x64xf32> to vector<32x64xbf16>
    %c0_1 = arith.constant 0 : index
    %c0_2 = arith.constant 0 : index
    %2 = vector.load %arg2[%c0_1, %c0_2] : memref<64x32xbf16, #tpu.memory_space<vmem>>, vector<64x32xbf16>
    %cst = arith.constant dense<0.000000e+00> : vector<32x32xf32>
    %3 = tpu.matmul %1, %2, %cst {dimension_numbers = #tpu.dot_dimension_numbers<[1], [0], [0], [1], [0, 0, 1, 1], [], []>} : vector<32x64xbf16>, vector<64x32xbf16>, vector<32x32xf32> -> vector<32x32xf32>
    %c0_3 = arith.constant 0 : index
    %c0_4 = arith.constant 0 : index
    %4 = vector.load %arg3[%c0_3, %c0_4] : memref<1x32xf32, #tpu.memory_space<vmem>>, vector<1x32xf32>
    %5 = vector.broadcast %4 : vector<1x32xf32> to vector<32x32xf32>
    %6 = arith.addf %3, %5 : vector<32x32xf32>
    %7 = arith.truncf %6 : vector<32x32xf32> to vector<32x32xbf16>
    %c0_5 = arith.constant 0 : index
    %c0_6 = arith.constant 0 : index
    %8 = vector.load %arg4[%c0_5, %c0_6] : memref<32x32xbf16, #tpu.memory_space<vmem>>, vector<32x32xbf16>
    tpu.vector_store %arg4[%c0_5, %c0_6], %7 {strides = array<i32>} : memref<32x32xbf16, #tpu.memory_space<vmem>>, vector<32x32xbf16>,
    return
  }
  func.func @transform_0(%arg0: i32) -> (i32, i32) {
    %c0_i32 = arith.constant 0 : i32
    %c0_i32_0 = arith.constant 0 : i32
    return %arg0, %c0_i32 : i32, i32
  }
  func.func @transform_1(%arg0: i32) -> (i32, i32) {
    %c0_i32 = arith.constant 0 : i32
    %c0_i32_0 = arith.constant 0 : i32
    %c0_i32_1 = arith.constant 0 : i32
    return %c0_i32, %c0_i32_0 : i32, i32
  }
  func.func @transform_2(%arg0: i32) -> (i32, i32) {
    %c0_i32 = arith.constant 0 : i32
    %c0_i32_0 = arith.constant 0 : i32
    %c0_i32_1 = arith.constant 0 : i32
    return %c0_i32, %c0_i32_0 : i32, i32
  }
  func.func @transform_3(%arg0: i32) -> (i32, i32) {
    %c0_i32 = arith.constant 0 : i32
    %c0_i32_0 = arith.constant 0 : i32
    return %arg0, %c0_i32 : i32, i32
  }
}

module attributes {stable_mosaic.version = 11 : i64} {
  func.func @_block_kernel(%arg0: i32, %arg1: memref<1x32x32xbf16, #tpu.memory_space<vmem>>, %arg2: memref<1x32xf32, #tpu.memory_space<vmem>>, %arg3: memref<1x32xf32, #tpu.memory_space<vmem>>, %arg4: memref<32x96xbf16, #tpu.memory_space<vmem>>, %arg5: memref<32x32xbf16, #tpu.memory_space<vmem>>, %arg6: memref<1x32xf32, #tpu.memory_space<vmem>>, %arg7: memref<1x32xf32, #tpu.memory_space<vmem>>, %arg8: memref<1x32xf32, #tpu.memory_space<vmem>>, %arg9: memref<32x64xbf16, #tpu.memory_space<vmem>>, %arg10: memref<1x64xf32, #tpu.memory_space<vmem>>, %arg11: memref<64x32xbf16, #tpu.memory_space<vmem>>, %arg12: memref<1x32xf32, #tpu.memory_space<vmem>>, %arg13: memref<1x32x32xbf16, #tpu.memory_space<vmem>>) attributes {dimension_semantics = [#tpu.dimension_semantics<parallel>], iteration_bounds = array<i64: 2>, scalar_prefetch = 0 : i64, scratch_operands = 0 : i64, tpu.core_type = #tpu.core_type<tc>, window_params = [{transform_indices = @transform_0, window_bounds = array<i64: 1, 32, 32>}, {pipeline_mode = #tpu.pipeline_mode<synchronous>, transform_indices = @transform_1, window_bounds = array<i64: 1, 32>}, {pipeline_mode = #tpu.pipeline_mode<synchronous>, transform_indices = @transform_2, window_bounds = array<i64: 1, 32>}, {pipeline_mode = #tpu.pipeline_mode<synchronous>, transform_indices = @transform_3, window_bounds = array<i64: 32, 96>}, {pipeline_mode = #tpu.pipeline_mode<synchronous>, transform_indices = @transform_4, window_bounds = array<i64: 32, 32>}, {pipeline_mode = #tpu.pipeline_mode<synchronous>, transform_indices = @transform_5, window_bounds = array<i64: 1, 32>}, {pipeline_mode = #tpu.pipeline_mode<synchronous>, transform_indices = @transform_6, window_bounds = array<i64: 1, 32>}, {pipeline_mode = #tpu.pipeline_mode<synchronous>, transform_indices = @transform_7, window_bounds = array<i64: 1, 32>}, {pipeline_mode = #tpu.pipeline_mode<synchronous>, transform_indices = @transform_8, window_bounds = array<i64: 32, 64>}, {pipeline_mode = #tpu.pipeline_mode<synchronous>, transform_indices = @transform_9, window_bounds = array<i64: 1, 64>}, {pipeline_mode = #tpu.pipeline_mode<synchronous>, transform_indices = @transform_10, window_bounds = array<i64: 64, 32>}, {pipeline_mode = #tpu.pipeline_mode<synchronous>, transform_indices = @transform_11, window_bounds = array<i64: 1, 32>}, {transform_indices = @transform_12, window_bounds = array<i64: 1, 32, 32>}]} {
    %c0 = arith.constant 0 : index
    %c0_0 = arith.constant 0 : index
    %c0_1 = arith.constant 0 : index
    %0 = vector.load %arg1[%c0, %c0_0, %c0_1] : memref<1x32x32xbf16, #tpu.memory_space<vmem>>, vector<1x32x32xbf16>
    %1 = vector.shape_cast %0 : vector<1x32x32xbf16> to vector<32x32xbf16>
    %2 = arith.extf %1 : vector<32x32xbf16> to vector<32x32xf32>
    %c0_2 = arith.constant 0 : index
    %c0_3 = arith.constant 0 : index
    %3 = vector.load %arg2[%c0_2, %c0_3] : memref<1x32xf32, #tpu.memory_space<vmem>>, vector<1x32xf32>
    %c0_4 = arith.constant 0 : index
    %c0_5 = arith.constant 0 : index
    %4 = vector.load %arg3[%c0_4, %c0_5] : memref<1x32xf32, #tpu.memory_space<vmem>>, vector<1x32xf32>
    %cst = arith.constant dense<0.000000e+00> : vector<32xf32>
    %5 = vector.multi_reduction <add>, %2, %cst [1] : vector<32x32xf32> to vector<32xf32>
    %6 = vector.shape_cast %5 : vector<32xf32> to vector<32x1xf32>
    %cst_6 = arith.constant 3.200000e+01 : f32
    %7 = vector.broadcast %cst_6 : f32 to vector<32x1xf32>
    %8 = arith.divf %6, %7 : vector<32x1xf32>
    %9 = vector.broadcast %8 : vector<32x1xf32> to vector<32x32xf32>
    %10 = arith.subf %2, %9 : vector<32x32xf32>
    %11 = arith.mulf %10, %10 : vector<32x32xf32>
    %cst_7 = arith.constant dense<0.000000e+00> : vector<32xf32>
    %12 = vector.multi_reduction <add>, %11, %cst_7 [1] : vector<32x32xf32> to vector<32xf32>
    %13 = vector.shape_cast %12 : vector<32xf32> to vector<32x1xf32>
    %cst_8 = arith.constant 3.200000e+01 : f32
    %14 = vector.broadcast %cst_8 : f32 to vector<32x1xf32>
    %15 = arith.divf %13, %14 : vector<32x1xf32>
    %cst_9 = arith.constant 9.99999974E-6 : f32
    %16 = vector.broadcast %cst_9 : f32 to vector<32x1xf32>
    %17 = arith.addf %15, %16 : vector<32x1xf32>
    %18 = math.rsqrt %17 : vector<32x1xf32>
    %19 = vector.broadcast %18 : vector<32x1xf32> to vector<32x32xf32>
    %20 = arith.mulf %10, %19 : vector<32x32xf32>
    %21 = vector.broadcast %3 : vector<1x32xf32> to vector<32x32xf32>
    %22 = arith.mulf %20, %21 : vector<32x32xf32>
    %23 = vector.broadcast %4 : vector<1x32xf32> to vector<32x32xf32>
    %24 = arith.addf %22, %23 : vector<32x32xf32>
    %25 = arith.truncf %24 : vector<32x32xf32> to vector<32x32xbf16>
    %c0_10 = arith.constant 0 : index
    %c0_11 = arith.constant 0 : index
    %26 = vector.load %arg4[%c0_10, %c0_11] : memref<32x96xbf16, #tpu.memory_space<vmem>>, vector<32x96xbf16>
    %cst_12 = arith.constant dense<0.000000e+00> : vector<32x96xf32>
    %27 = tpu.matmul %25, %26, %cst_12 {dimension_numbers = #tpu.dot_dimension_numbers<[1], [0], [0], [1], [0, 0, 1, 1], [], []>} : vector<32x32xbf16>, vector<32x96xbf16>, vector<32x96xf32> -> vector<32x96xf32>
    %28 = tpu.iota {dimensions = array<i32: 1>} : vector<32x32xi32>
    %c17_i32 = arith.constant 17 : i32
    %29 = vector.broadcast %c17_i32 : i32 to vector<32x32xi32>
    %30 = arith.cmpi slt, %28, %29 : vector<32x32xi32>
    %31 = vector.extract_strided_slice %27 {offsets = [0, 0], sizes = [32, 8], strides = [1, 1]} : vector<32x96xf32> to vector<32x8xf32>
    %32 = arith.truncf %31 : vector<32x8xf32> to vector<32x8xbf16>
    %33 = vector.extract_strided_slice %27 {offsets = [0, 32], sizes = [32, 8], strides = [1, 1]} : vector<32x96xf32> to vector<32x8xf32>
    %34 = arith.truncf %33 : vector<32x8xf32> to vector<32x8xbf16>
    %35 = vector.extract_strided_slice %27 {offsets = [0, 64], sizes = [32, 8], strides = [1, 1]} : vector<32x96xf32> to vector<32x8xf32>
    %36 = arith.truncf %35 : vector<32x8xf32> to vector<32x8xbf16>
    %cst_13 = arith.constant dense<0.000000e+00> : vector<32x32xf32>
    %37 = tpu.matmul %32, %34, %cst_13 {dimension_numbers = #tpu.dot_dimension_numbers<[1], [1], [0], [0], [0, 0, 1, 0], [], []>} : vector<32x8xbf16>, vector<32x8xbf16>, vector<32x32xf32> -> vector<32x32xf32>
    %cst_14 = arith.constant 0.353553385 : f32
    %38 = vector.broadcast %cst_14 : f32 to vector<32x32xf32>
    %39 = arith.mulf %37, %38 : vector<32x32xf32>
    %cst_15 = arith.constant -1.000000e+30 : f32
    %40 = vector.broadcast %cst_15 : f32 to vector<32x32xf32>
    %41 = arith.select %30, %39, %40 : vector<32x32xi1>, vector<32x32xf32>
    %cst_16 = arith.constant dense<0xFF800000> : vector<32xf32>
    %42 = vector.multi_reduction <maximumf>, %41, %cst_16 [1] : vector<32x32xf32> to vector<32xf32>
    %43 = vector.shape_cast %42 : vector<32xf32> to vector<32x1xf32>
    %44 = vector.broadcast %43 : vector<32x1xf32> to vector<32x32xf32>
    %45 = arith.subf %41, %44 : vector<32x32xf32>
    %46 = math.exp %45 : vector<32x32xf32>
    %cst_17 = arith.constant dense<0.000000e+00> : vector<32xf32>
    %47 = vector.multi_reduction <add>, %46, %cst_17 [1] : vector<32x32xf32> to vector<32xf32>
    %48 = vector.shape_cast %47 : vector<32xf32> to vector<32x1xf32>
    %49 = tpu.reciprocal %48 {approx = true} : vector<32x1xf32> -> vector<32x1xf32>
    %50 = vector.broadcast %49 : vector<32x1xf32> to vector<32x32xf32>
    %51 = arith.mulf %46, %50 : vector<32x32xf32>
    %52 = arith.truncf %51 : vector<32x32xf32> to vector<32x32xbf16>
    %cst_18 = arith.constant dense<0.000000e+00> : vector<32x8xf32>
    %53 = tpu.matmul %52, %36, %cst_18 {dimension_numbers = #tpu.dot_dimension_numbers<[1], [0], [0], [1], [0, 0, 1, 1], [], []>} : vector<32x32xbf16>, vector<32x8xbf16>, vector<32x8xf32> -> vector<32x8xf32>
    %54 = vector.extract_strided_slice %27 {offsets = [0, 8], sizes = [32, 8], strides = [1, 1]} : vector<32x96xf32> to vector<32x8xf32>
    %55 = arith.truncf %54 : vector<32x8xf32> to vector<32x8xbf16>
    %56 = vector.extract_strided_slice %27 {offsets = [0, 40], sizes = [32, 8], strides = [1, 1]} : vector<32x96xf32> to vector<32x8xf32>
    %57 = arith.truncf %56 : vector<32x8xf32> to vector<32x8xbf16>
    %58 = vector.extract_strided_slice %27 {offsets = [0, 72], sizes = [32, 8], strides = [1, 1]} : vector<32x96xf32> to vector<32x8xf32>
    %59 = arith.truncf %58 : vector<32x8xf32> to vector<32x8xbf16>
    %cst_19 = arith.constant dense<0.000000e+00> : vector<32x32xf32>
    %60 = tpu.matmul %55, %57, %cst_19 {dimension_numbers = #tpu.dot_dimension_numbers<[1], [1], [0], [0], [0, 0, 1, 0], [], []>} : vector<32x8xbf16>, vector<32x8xbf16>, vector<32x32xf32> -> vector<32x32xf32>
    %cst_20 = arith.constant 0.353553385 : f32
    %61 = vector.broadcast %cst_20 : f32 to vector<32x32xf32>
    %62 = arith.mulf %60, %61 : vector<32x32xf32>
    %cst_21 = arith.constant -1.000000e+30 : f32
    %63 = vector.broadcast %cst_21 : f32 to vector<32x32xf32>
    %64 = arith.select %30, %62, %63 : vector<32x32xi1>, vector<32x32xf32>
    %cst_22 = arith.constant dense<0xFF800000> : vector<32xf32>
    %65 = vector.multi_reduction <maximumf>, %64, %cst_22 [1] : vector<32x32xf32> to vector<32xf32>
    %66 = vector.shape_cast %65 : vector<32xf32> to vector<32x1xf32>
    %67 = vector.broadcast %66 : vector<32x1xf32> to vector<32x32xf32>
    %68 = arith.subf %64, %67 : vector<32x32xf32>
    %69 = math.exp %68 : vector<32x32xf32>
    %cst_23 = arith.constant dense<0.000000e+00> : vector<32xf32>
    %70 = vector.multi_reduction <add>, %69, %cst_23 [1] : vector<32x32xf32> to vector<32xf32>
    %71 = vector.shape_cast %70 : vector<32xf32> to vector<32x1xf32>
    %72 = tpu.reciprocal %71 {approx = true} : vector<32x1xf32> -> vector<32x1xf32>
    %73 = vector.broadcast %72 : vector<32x1xf32> to vector<32x32xf32>
    %74 = arith.mulf %69, %73 : vector<32x32xf32>
    %75 = arith.truncf %74 : vector<32x32xf32> to vector<32x32xbf16>
    %cst_24 = arith.constant dense<0.000000e+00> : vector<32x8xf32>
    %76 = tpu.matmul %75, %59, %cst_24 {dimension_numbers = #tpu.dot_dimension_numbers<[1], [0], [0], [1], [0, 0, 1, 1], [], []>} : vector<32x32xbf16>, vector<32x8xbf16>, vector<32x8xf32> -> vector<32x8xf32>
    %77 = vector.extract_strided_slice %27 {offsets = [0, 16], sizes = [32, 8], strides = [1, 1]} : vector<32x96xf32> to vector<32x8xf32>
    %78 = arith.truncf %77 : vector<32x8xf32> to vector<32x8xbf16>
    %79 = vector.extract_strided_slice %27 {offsets = [0, 48], sizes = [32, 8], strides = [1, 1]} : vector<32x96xf32> to vector<32x8xf32>
    %80 = arith.truncf %79 : vector<32x8xf32> to vector<32x8xbf16>
    %81 = vector.extract_strided_slice %27 {offsets = [0, 80], sizes = [32, 8], strides = [1, 1]} : vector<32x96xf32> to vector<32x8xf32>
    %82 = arith.truncf %81 : vector<32x8xf32> to vector<32x8xbf16>
    %cst_25 = arith.constant dense<0.000000e+00> : vector<32x32xf32>
    %83 = tpu.matmul %78, %80, %cst_25 {dimension_numbers = #tpu.dot_dimension_numbers<[1], [1], [0], [0], [0, 0, 1, 0], [], []>} : vector<32x8xbf16>, vector<32x8xbf16>, vector<32x32xf32> -> vector<32x32xf32>
    %cst_26 = arith.constant 0.353553385 : f32
    %84 = vector.broadcast %cst_26 : f32 to vector<32x32xf32>
    %85 = arith.mulf %83, %84 : vector<32x32xf32>
    %cst_27 = arith.constant -1.000000e+30 : f32
    %86 = vector.broadcast %cst_27 : f32 to vector<32x32xf32>
    %87 = arith.select %30, %85, %86 : vector<32x32xi1>, vector<32x32xf32>
    %cst_28 = arith.constant dense<0xFF800000> : vector<32xf32>
    %88 = vector.multi_reduction <maximumf>, %87, %cst_28 [1] : vector<32x32xf32> to vector<32xf32>
    %89 = vector.shape_cast %88 : vector<32xf32> to vector<32x1xf32>
    %90 = vector.broadcast %89 : vector<32x1xf32> to vector<32x32xf32>
    %91 = arith.subf %87, %90 : vector<32x32xf32>
    %92 = math.exp %91 : vector<32x32xf32>
    %cst_29 = arith.constant dense<0.000000e+00> : vector<32xf32>
    %93 = vector.multi_reduction <add>, %92, %cst_29 [1] : vector<32x32xf32> to vector<32xf32>
    %94 = vector.shape_cast %93 : vector<32xf32> to vector<32x1xf32>
    %95 = tpu.reciprocal %94 {approx = true} : vector<32x1xf32> -> vector<32x1xf32>
    %96 = vector.broadcast %95 : vector<32x1xf32> to vector<32x32xf32>
    %97 = arith.mulf %92, %96 : vector<32x32xf32>
    %98 = arith.truncf %97 : vector<32x32xf32> to vector<32x32xbf16>
    %cst_30 = arith.constant dense<0.000000e+00> : vector<32x8xf32>
    %99 = tpu.matmul %98, %82, %cst_30 {dimension_numbers = #tpu.dot_dimension_numbers<[1], [0], [0], [1], [0, 0, 1, 1], [], []>} : vector<32x32xbf16>, vector<32x8xbf16>, vector<32x8xf32> -> vector<32x8xf32>
    %100 = vector.extract_strided_slice %27 {offsets = [0, 24], sizes = [32, 8], strides = [1, 1]} : vector<32x96xf32> to vector<32x8xf32>
    %101 = arith.truncf %100 : vector<32x8xf32> to vector<32x8xbf16>
    %102 = vector.extract_strided_slice %27 {offsets = [0, 56], sizes = [32, 8], strides = [1, 1]} : vector<32x96xf32> to vector<32x8xf32>
    %103 = arith.truncf %102 : vector<32x8xf32> to vector<32x8xbf16>
    %104 = vector.extract_strided_slice %27 {offsets = [0, 88], sizes = [32, 8], strides = [1, 1]} : vector<32x96xf32> to vector<32x8xf32>
    %105 = arith.truncf %104 : vector<32x8xf32> to vector<32x8xbf16>
    %cst_31 = arith.constant dense<0.000000e+00> : vector<32x32xf32>
    %106 = tpu.matmul %101, %103, %cst_31 {dimension_numbers = #tpu.dot_dimension_numbers<[1], [1], [0], [0], [0, 0, 1, 0], [], []>} : vector<32x8xbf16>, vector<32x8xbf16>, vector<32x32xf32> -> vector<32x32xf32>
    %cst_32 = arith.constant 0.353553385 : f32
    %107 = vector.broadcast %cst_32 : f32 to vector<32x32xf32>
    %108 = arith.mulf %106, %107 : vector<32x32xf32>
    %cst_33 = arith.constant -1.000000e+30 : f32
    %109 = vector.broadcast %cst_33 : f32 to vector<32x32xf32>
    %110 = arith.select %30, %108, %109 : vector<32x32xi1>, vector<32x32xf32>
    %cst_34 = arith.constant dense<0xFF800000> : vector<32xf32>
    %111 = vector.multi_reduction <maximumf>, %110, %cst_34 [1] : vector<32x32xf32> to vector<32xf32>
    %112 = vector.shape_cast %111 : vector<32xf32> to vector<32x1xf32>
    %113 = vector.broadcast %112 : vector<32x1xf32> to vector<32x32xf32>
    %114 = arith.subf %110, %113 : vector<32x32xf32>
    %115 = math.exp %114 : vector<32x32xf32>
    %cst_35 = arith.constant dense<0.000000e+00> : vector<32xf32>
    %116 = vector.multi_reduction <add>, %115, %cst_35 [1] : vector<32x32xf32> to vector<32xf32>
    %117 = vector.shape_cast %116 : vector<32xf32> to vector<32x1xf32>
    %118 = tpu.reciprocal %117 {approx = true} : vector<32x1xf32> -> vector<32x1xf32>
    %119 = vector.broadcast %118 : vector<32x1xf32> to vector<32x32xf32>
    %120 = arith.mulf %115, %119 : vector<32x32xf32>
    %121 = arith.truncf %120 : vector<32x32xf32> to vector<32x32xbf16>
    %cst_36 = arith.constant dense<0.000000e+00> : vector<32x8xf32>
    %122 = tpu.matmul %121, %105, %cst_36 {dimension_numbers = #tpu.dot_dimension_numbers<[1], [0], [0], [1], [0, 0, 1, 1], [], []>} : vector<32x32xbf16>, vector<32x8xbf16>, vector<32x8xf32> -> vector<32x8xf32>
    %123 = tpu.concatenate %53, %76, %99, %122 in 1 : vector<32x8xf32>, vector<32x8xf32>, vector<32x8xf32>, vector<32x8xf32> -> vector<32x32xf32>
    %124 = arith.truncf %123 : vector<32x32xf32> to vector<32x32xbf16>
    %c0_37 = arith.constant 0 : index
    %c0_38 = arith.constant 0 : index
    %125 = vector.load %arg5[%c0_37, %c0_38] : memref<32x32xbf16, #tpu.memory_space<vmem>>, vector<32x32xbf16>
    %cst_39 = arith.constant dense<0.000000e+00> : vector<32x32xf32>
    %126 = tpu.matmul %124, %125, %cst_39 {dimension_numbers = #tpu.dot_dimension_numbers<[1], [0], [0], [1], [0, 0, 1, 1], [], []>} : vector<32x32xbf16>, vector<32x32xbf16>, vector<32x32xf32> -> vector<32x32xf32>
    %c0_40 = arith.constant 0 : index
    %c0_41 = arith.constant 0 : index
    %127 = vector.load %arg6[%c0_40, %c0_41] : memref<1x32xf32, #tpu.memory_space<vmem>>, vector<1x32xf32>
    %128 = vector.broadcast %127 : vector<1x32xf32> to vector<32x32xf32>
    %129 = arith.addf %126, %128 : vector<32x32xf32>
    %130 = arith.addf %2, %129 : vector<32x32xf32>
    %c0_42 = arith.constant 0 : index
    %c0_43 = arith.constant 0 : index
    %131 = vector.load %arg7[%c0_42, %c0_43] : memref<1x32xf32, #tpu.memory_space<vmem>>, vector<1x32xf32>
    %c0_44 = arith.constant 0 : index
    %c0_45 = arith.constant 0 : index
    %132 = vector.load %arg8[%c0_44, %c0_45] : memref<1x32xf32, #tpu.memory_space<vmem>>, vector<1x32xf32>
    %cst_46 = arith.constant dense<0.000000e+00> : vector<32xf32>
    %133 = vector.multi_reduction <add>, %130, %cst_46 [1] : vector<32x32xf32> to vector<32xf32>
    %134 = vector.shape_cast %133 : vector<32xf32> to vector<32x1xf32>
    %cst_47 = arith.constant 3.200000e+01 : f32
    %135 = vector.broadcast %cst_47 : f32 to vector<32x1xf32>
    %136 = arith.divf %134, %135 : vector<32x1xf32>
    %137 = vector.broadcast %136 : vector<32x1xf32> to vector<32x32xf32>
    %138 = arith.subf %130, %137 : vector<32x32xf32>
    %139 = arith.mulf %138, %138 : vector<32x32xf32>
    %cst_48 = arith.constant dense<0.000000e+00> : vector<32xf32>
    %140 = vector.multi_reduction <add>, %139, %cst_48 [1] : vector<32x32xf32> to vector<32xf32>
    %141 = vector.shape_cast %140 : vector<32xf32> to vector<32x1xf32>
    %cst_49 = arith.constant 3.200000e+01 : f32
    %142 = vector.broadcast %cst_49 : f32 to vector<32x1xf32>
    %143 = arith.divf %141, %142 : vector<32x1xf32>
    %cst_50 = arith.constant 9.99999974E-6 : f32
    %144 = vector.broadcast %cst_50 : f32 to vector<32x1xf32>
    %145 = arith.addf %143, %144 : vector<32x1xf32>
    %146 = math.rsqrt %145 : vector<32x1xf32>
    %147 = vector.broadcast %146 : vector<32x1xf32> to vector<32x32xf32>
    %148 = arith.mulf %138, %147 : vector<32x32xf32>
    %149 = vector.broadcast %131 : vector<1x32xf32> to vector<32x32xf32>
    %150 = arith.mulf %148, %149 : vector<32x32xf32>
    %151 = vector.broadcast %132 : vector<1x32xf32> to vector<32x32xf32>
    %152 = arith.addf %150, %151 : vector<32x32xf32>
    %153 = arith.truncf %152 : vector<32x32xf32> to vector<32x32xbf16>
    %c0_51 = arith.constant 0 : index
    %c0_52 = arith.constant 0 : index
    %154 = vector.load %arg9[%c0_51, %c0_52] : memref<32x64xbf16, #tpu.memory_space<vmem>>, vector<32x64xbf16>
    %cst_53 = arith.constant dense<0.000000e+00> : vector<32x64xf32>
    %155 = tpu.matmul %153, %154, %cst_53 {dimension_numbers = #tpu.dot_dimension_numbers<[1], [0], [0], [1], [0, 0, 1, 1], [], []>} : vector<32x32xbf16>, vector<32x64xbf16>, vector<32x64xf32> -> vector<32x64xf32>
    %c0_54 = arith.constant 0 : index
    %c0_55 = arith.constant 0 : index
    %156 = vector.load %arg10[%c0_54, %c0_55] : memref<1x64xf32, #tpu.memory_space<vmem>>, vector<1x64xf32>
    %157 = vector.broadcast %156 : vector<1x64xf32> to vector<32x64xf32>
    %158 = arith.addf %155, %157 : vector<32x64xf32>
    %cst_56 = arith.constant 5.000000e-01 : f32
    %159 = vector.broadcast %cst_56 : f32 to vector<32x64xf32>
    %160 = arith.mulf %159, %158 : vector<32x64xf32>
    %cst_57 = arith.constant 4.471500e-02 : f32
    %161 = vector.broadcast %cst_57 : f32 to vector<32x64xf32>
    %162 = arith.mulf %161, %158 : vector<32x64xf32>
    %163 = arith.mulf %162, %158 : vector<32x64xf32>
    %164 = arith.mulf %163, %158 : vector<32x64xf32>
    %165 = arith.addf %158, %164 : vector<32x64xf32>
    %cst_58 = arith.constant 0.797884583 : f32
    %166 = vector.broadcast %cst_58 : f32 to vector<32x64xf32>
    %167 = arith.mulf %166, %165 : vector<32x64xf32>
    %168 = math.tanh %167 : vector<32x64xf32>
    %cst_59 = arith.constant 1.000000e+00 : f32
    %169 = vector.broadcast %cst_59 : f32 to vector<32x64xf32>
    %170 = arith.addf %169, %168 : vector<32x64xf32>
    %171 = arith.mulf %160, %170 : vector<32x64xf32>
    %172 = arith.truncf %171 : vector<32x64xf32> to vector<32x64xbf16>
    %c0_60 = arith.constant 0 : index
    %c0_61 = arith.constant 0 : index
    %173 = vector.load %arg11[%c0_60, %c0_61] : memref<64x32xbf16, #tpu.memory_space<vmem>>, vector<64x32xbf16>
    %cst_62 = arith.constant dense<0.000000e+00> : vector<32x32xf32>
    %174 = tpu.matmul %172, %173, %cst_62 {dimension_numbers = #tpu.dot_dimension_numbers<[1], [0], [0], [1], [0, 0, 1, 1], [], []>} : vector<32x64xbf16>, vector<64x32xbf16>, vector<32x32xf32> -> vector<32x32xf32>
    %c0_63 = arith.constant 0 : index
    %c0_64 = arith.constant 0 : index
    %175 = vector.load %arg12[%c0_63, %c0_64] : memref<1x32xf32, #tpu.memory_space<vmem>>, vector<1x32xf32>
    %176 = vector.broadcast %175 : vector<1x32xf32> to vector<32x32xf32>
    %177 = arith.addf %174, %176 : vector<32x32xf32>
    %178 = arith.addf %130, %177 : vector<32x32xf32>
    %179 = tpu.iota {dimensions = array<i32: 0>} : vector<32x1xi32>
    %c17_i32_65 = arith.constant 17 : i32
    %180 = vector.broadcast %c17_i32_65 : i32 to vector<32x1xi32>
    %181 = arith.cmpi slt, %179, %180 : vector<32x1xi32>
    %cst_66 = arith.constant 0.000000e+00 : f32
    %182 = vector.shape_cast %181 : vector<32x1xi1> to vector<32x1xi1>
    %183 = vector.broadcast %182 : vector<32x1xi1> to vector<32x32xi1>
    %184 = vector.broadcast %cst_66 : f32 to vector<32x32xf32>
    %185 = arith.select %183, %178, %184 : vector<32x32xi1>, vector<32x32xf32>
    %186 = arith.truncf %185 : vector<32x32xf32> to vector<32x32xbf16>
    %c0_67 = arith.constant 0 : index
    %c0_68 = arith.constant 0 : index
    %c0_69 = arith.constant 0 : index
    %187 = vector.load %arg13[%c0_67, %c0_68, %c0_69] : memref<1x32x32xbf16, #tpu.memory_space<vmem>>, vector<1x32x32xbf16>
    %188 = vector.shape_cast %187 : vector<1x32x32xbf16> to vector<32x32xbf16>
    %189 = vector.shape_cast %186 : vector<32x32xbf16> to vector<1x32x32xbf16>
    tpu.vector_store %arg13[%c0_67, %c0_68, %c0_69], %189 {strides = array<i32>} : memref<1x32x32xbf16, #tpu.memory_space<vmem>>, vector<1x32x32xbf16>,
    return
  }
  func.func @transform_0(%arg0: i32) -> (i32, i32, i32) {
    %c0_i32 = arith.constant 0 : i32
    %c0_i32_0 = arith.constant 0 : i32
    %c0_i32_1 = arith.constant 0 : i32
    return %arg0, %c0_i32, %c0_i32_0 : i32, i32, i32
  }
  func.func @transform_1(%arg0: i32) -> (i32, i32) {
    %c0_i32 = arith.constant 0 : i32
    %c0_i32_0 = arith.constant 0 : i32
    %c0_i32_1 = arith.constant 0 : i32
    return %c0_i32, %c0_i32_0 : i32, i32
  }
  func.func @transform_2(%arg0: i32) -> (i32, i32) {
    %c0_i32 = arith.constant 0 : i32
    %c0_i32_0 = arith.constant 0 : i32
    %c0_i32_1 = arith.constant 0 : i32
    return %c0_i32, %c0_i32_0 : i32, i32
  }
  func.func @transform_3(%arg0: i32) -> (i32, i32) {
    %c0_i32 = arith.constant 0 : i32
    %c0_i32_0 = arith.constant 0 : i32
    %c0_i32_1 = arith.constant 0 : i32
    return %c0_i32, %c0_i32_0 : i32, i32
  }
  func.func @transform_4(%arg0: i32) -> (i32, i32) {
    %c0_i32 = arith.constant 0 : i32
    %c0_i32_0 = arith.constant 0 : i32
    %c0_i32_1 = arith.constant 0 : i32
    return %c0_i32, %c0_i32_0 : i32, i32
  }
  func.func @transform_5(%arg0: i32) -> (i32, i32) {
    %c0_i32 = arith.constant 0 : i32
    %c0_i32_0 = arith.constant 0 : i32
    %c0_i32_1 = arith.constant 0 : i32
    return %c0_i32, %c0_i32_0 : i32, i32
  }
  func.func @transform_6(%arg0: i32) -> (i32, i32) {
    %c0_i32 = arith.constant 0 : i32
    %c0_i32_0 = arith.constant 0 : i32
    %c0_i32_1 = arith.constant 0 : i32
    return %c0_i32, %c0_i32_0 : i32, i32
  }
  func.func @transform_7(%arg0: i32) -> (i32, i32) {
    %c0_i32 = arith.constant 0 : i32
    %c0_i32_0 = arith.constant 0 : i32
    %c0_i32_1 = arith.constant 0 : i32
    return %c0_i32, %c0_i32_0 : i32, i32
  }
  func.func @transform_8(%arg0: i32) -> (i32, i32) {
    %c0_i32 = arith.constant 0 : i32
    %c0_i32_0 = arith.constant 0 : i32
    %c0_i32_1 = arith.constant 0 : i32
    return %c0_i32, %c0_i32_0 : i32, i32
  }
  func.func @transform_9(%arg0: i32) -> (i32, i32) {
    %c0_i32 = arith.constant 0 : i32
    %c0_i32_0 = arith.constant 0 : i32
    %c0_i32_1 = arith.constant 0 : i32
    return %c0_i32, %c0_i32_0 : i32, i32
  }
  func.func @transform_10(%arg0: i32) -> (i32, i32) {
    %c0_i32 = arith.constant 0 : i32
    %c0_i32_0 = arith.constant 0 : i32
    %c0_i32_1 = arith.constant 0 : i32
    return %c0_i32, %c0_i32_0 : i32, i32
  }
  func.func @transform_11(%arg0: i32) -> (i32, i32) {
    %c0_i32 = arith.constant 0 : i32
    %c0_i32_0 = arith.constant 0 : i32
    %c0_i32_1 = arith.constant 0 : i32
    return %c0_i32, %c0_i32_0 : i32, i32
  }
  func.func @transform_12(%arg0: i32) -> (i32, i32, i32) {
    %c0_i32 = arith.constant 0 : i32
    %c0_i32_0 = arith.constant 0 : i32
    %c0_i32_1 = arith.constant 0 : i32
    return %arg0, %c0_i32, %c0_i32_0 : i32, i32, i32
  }
}

module attributes {stable_mosaic.version = 11 : i64} {
  func.func @_head_kernel(%arg0: memref<2x32xbf16, #tpu.memory_space<vmem>>, %arg1: memref<1x32xf32, #tpu.memory_space<vmem>>, %arg2: memref<1x32xf32, #tpu.memory_space<vmem>>, %arg3: memref<32x128xf32, #tpu.memory_space<vmem>>, %arg4: memref<1x128xf32, #tpu.memory_space<vmem>>, %arg5: memref<2x128xf32, #tpu.memory_space<vmem>>) attributes {dimension_semantics = [], scalar_prefetch = 0 : i64, scratch_operands = 0 : i64, tpu.core_type = #tpu.core_type<tc>} {
    %c0 = arith.constant 0 : index
    %c0_0 = arith.constant 0 : index
    %0 = vector.load %arg0[%c0, %c0_0] : memref<2x32xbf16, #tpu.memory_space<vmem>>, vector<2x32xbf16>
    %1 = arith.extf %0 : vector<2x32xbf16> to vector<2x32xf32>
    %c0_1 = arith.constant 0 : index
    %c0_2 = arith.constant 0 : index
    %2 = vector.load %arg1[%c0_1, %c0_2] : memref<1x32xf32, #tpu.memory_space<vmem>>, vector<1x32xf32>
    %c0_3 = arith.constant 0 : index
    %c0_4 = arith.constant 0 : index
    %3 = vector.load %arg2[%c0_3, %c0_4] : memref<1x32xf32, #tpu.memory_space<vmem>>, vector<1x32xf32>
    %cst = arith.constant dense<0.000000e+00> : vector<2xf32>
    %4 = vector.multi_reduction <add>, %1, %cst [1] : vector<2x32xf32> to vector<2xf32>
    %5 = vector.shape_cast %4 : vector<2xf32> to vector<2x1xf32>
    %cst_5 = arith.constant 3.200000e+01 : f32
    %6 = vector.broadcast %cst_5 : f32 to vector<2x1xf32>
    %7 = arith.divf %5, %6 : vector<2x1xf32>
    %8 = vector.broadcast %7 : vector<2x1xf32> to vector<2x32xf32>
    %9 = arith.subf %1, %8 : vector<2x32xf32>
    %10 = arith.mulf %9, %9 : vector<2x32xf32>
    %cst_6 = arith.constant dense<0.000000e+00> : vector<2xf32>
    %11 = vector.multi_reduction <add>, %10, %cst_6 [1] : vector<2x32xf32> to vector<2xf32>
    %12 = vector.shape_cast %11 : vector<2xf32> to vector<2x1xf32>
    %cst_7 = arith.constant 3.200000e+01 : f32
    %13 = vector.broadcast %cst_7 : f32 to vector<2x1xf32>
    %14 = arith.divf %12, %13 : vector<2x1xf32>
    %cst_8 = arith.constant 9.99999974E-6 : f32
    %15 = vector.broadcast %cst_8 : f32 to vector<2x1xf32>
    %16 = arith.addf %14, %15 : vector<2x1xf32>
    %17 = math.rsqrt %16 : vector<2x1xf32>
    %18 = vector.broadcast %17 : vector<2x1xf32> to vector<2x32xf32>
    %19 = arith.mulf %9, %18 : vector<2x32xf32>
    %20 = vector.broadcast %2 : vector<1x32xf32> to vector<2x32xf32>
    %21 = arith.mulf %19, %20 : vector<2x32xf32>
    %22 = vector.broadcast %3 : vector<1x32xf32> to vector<2x32xf32>
    %23 = arith.addf %21, %22 : vector<2x32xf32>
    %c0_9 = arith.constant 0 : index
    %c0_10 = arith.constant 0 : index
    %24 = vector.load %arg3[%c0_9, %c0_10] : memref<32x128xf32, #tpu.memory_space<vmem>>, vector<32x128xf32>
    %cst_11 = arith.constant dense<0.000000e+00> : vector<2x128xf32>
    %25 = tpu.matmul %23, %24, %cst_11 {dimension_numbers = #tpu.dot_dimension_numbers<[1], [0], [0], [1], [0, 0, 1, 1], [], []>} : vector<2x32xf32>, vector<32x128xf32>, vector<2x128xf32> -> vector<2x128xf32>
    %c0_12 = arith.constant 0 : index
    %c0_13 = arith.constant 0 : index
    %26 = vector.load %arg4[%c0_12, %c0_13] : memref<1x128xf32, #tpu.memory_space<vmem>>, vector<1x128xf32>
    %27 = vector.broadcast %26 : vector<1x128xf32> to vector<2x128xf32>
    %28 = arith.addf %25, %27 : vector<2x128xf32>
    %c0_14 = arith.constant 0 : index
    %c0_15 = arith.constant 0 : index
    %29 = vector.load %arg5[%c0_14, %c0_15] : memref<2x128xf32, #tpu.memory_space<vmem>>, vector<2x128xf32>
    tpu.vector_store %arg5[%c0_14, %c0_15], %28 {strides = array<i32>} : memref<2x128xf32, #tpu.memory_space<vmem>>, vector<2x128xf32>,
    return
  }
}

</mosaic_0001>

<bundles_post_ra>
// kernel: tpu_custom_call.1
= control target key start
LH: loop header
LB: loop body
LE: loop exit
PB: predicated region body
PF: predicated region fallthrough
CT: control target
= control target key end

     0   :  { %7 = vsyncpa [#allocation3], 0  ;;  %s692_s0 = inlined_call_operand.hbm [shape: f32[8,128], index: 0, kind: input, shape index: {}]   ;;  %s693_s1 = inlined_call_operand.hbm [shape: f32[16,128], index: 1, kind: input, shape index: {}]   ;;  %s694_s2 = inlined_call_operand.hbm [shape: f32[16,128], index: 2, kind: output, shape index: {}]  }
   0x1   :  { %8 = vsyncpa [#allocation6], 0 }
   0x2   :  { %10 = vsyncpa [#allocation6 + $0x1], 0 }
   0x3   :  { %11 = vsyncpa [#allocation4], 0 }
   0x4   :  { %13 = vsyncpa [#allocation4 + $0x1], 0  ;;  %s491_s9 = smov 0   ;;  %s493_s10 = smov 0  }
   0x5   :  { %s495_s11 = smov 0   ;;  %s497_s12 = smov 0  }
   0x6 LB: > { %s512_s13 = sadd.s32 4294967295, %s471_s12   ;;  %s272_s14 = sadd.s32 4294967294, %s471_s12   ;;  %s471_s12 = sphi %s497_s12, %s718_s12   ;;  %s467_s11 = sphi %s495_s11, %s717_s11   ;;  %s463_s10 = sphi %s493_s10, %s716_s10   ;;  %s459_s9 = sphi %s491_s9, %s715_s9  }
   0x7   : > { %p60_p0 = scmp.ne.s32.totalorder %s463_s10, %s459_s9  ;;  %p695_p1 = scmp.eq.s32.totalorder %s512_s13, 0 }
   0x8   : > { %p90_p3 = scmp.eq.s32.totalorder %s272_s14, 1  ;;  %p273_p5 = scmp.ge.s32.totalorder %s471_s12, 1 }
   0x9   : > { %p521_p4 = por %p695_p1, %p60_p0  ;;  %p97_p7 = scmp.lt.s32.totalorder %s471_s12, 3 }
   0xa   : > { %p526_p6 = por %p90_p3, %p60_p0  ;;  %s473_s18 = smov [#allocation2]  }
   0xb   : > { %s698_s15 = scalar_select %p521_p4, 1, 0 }
   0xc   : > { %s699_s16 = scalar_select %p526_p6, 1, 0 }
   0xd   : > { %p531_p8 = pnand %p273_p5, %p97_p7  ;;  %s110_s19 = sshll.u32 %s473_s18, 4  ;;  %s111_s19 = int_to_ptr.vmem [resolvable:$true] %s110_s19 }
   0xe   : > { %s539_s20 = sadd.s32 1, %s471_s12   ;;  %s47_s24 = sadd.s32 1, %s467_s11 }
   0xf   : > { %s700_s17 = scalar_select %p531_p8, 1, 0 }
  0x10   : > { %p294_p10 = pneg %p531_p8  ;;  %s44_s22 = ssub.s32 %s471_s12, %s539_s20 }
  0x11   : > { %p549_p12 = scmp.eq.s32.totalorder %s44_s22, 0  ;;  %s343_s27 = scalar_lea.hbm %s692_s0, 128 }
  0x12   : > { %p543_p11 = pnand %p294_p10, %p695_p1  ;;  %p344_p0 = scmp.ne.s32.totalorder %s692_s0, %s343_s27 }
  0x13   : > { %s702_s23 = scalar_select %p549_p12, 1, 0 }
  0x14   : > { %p345_p3 = pneg %p543_p11  ;;  %p350_p10 = scmp.lt.u32.totalorder %s343_s27, %s692_s0 }
  0x16   : > { %p346_p5 = pnand %p345_p3, %p344_p0 }
  0x18   : > { %p347_p7 = pneg %p346_p5 }
  0x1a   : > { %p352_p9 = pnand %p350_p10, %p347_p7 }
  0x1c   : > { %355 = shalt.err (!%p352_p9)
}
  0x1d   : > { %s356_s4 = scalar_lea.vmem %s111_s19, 128  ;;  %p364_p6 = scmp.lt.s32.totalorder %s111_s19, %s111_s19 }
  0x1e   : > { %p357_p1 = scmp.ne.s32.totalorder %s111_s19, %s356_s4  ;;  %p365_p4 = scmp.lt.s32.totalorder %s356_s4, %s356_s4 }
  0x20   : > { %p359_p2 = pnand %p357_p1, %p345_p3  ;;  %p366_p8 = por %p365_p4, %p364_p6 }
  0x22   : > { %p360_p13 = pneg %p359_p2 }
  0x24   : > { %p367_p12 = pnand %p366_p8, %p360_p13 }
  0x26   : > { %370 = shalt.err (!%p367_p12)
}
  0x27   : > { %297 = dma.hbm_to_vmem [thread:$0]  (!%p543_p11), %s692_s0, 128, %s111_s19, [#allocation3]  }
  0x28   : > { %p703_p1 = scmp.ne.s32.totalorder %s702_s23, 0  ;;  %p55_p2 = scmp.eq.s32.totalorder %s471_s12, 0 }
  0x29   : > { %p704_p4 = scmp.ne.s32.totalorder %s467_s11, %s463_s10  ;;  %p705_p6 = scmp.eq.s32.totalorder %s512_s13, 1 }
  0x2a   : > { %s575_s7 = scalar_select %p703_p1, %s467_s11, %s47_s24  }
  0x2b   : > { %p583_p8 = por %p705_p6, %p704_p4  ;;  %p307_p9 = scmp.lt.s32.totalorder %s471_s12, 2 }
  0x2c   : > { %s121_s14 = sand.u32 1, %s467_s11   ;;  %p707_p12 = pmov %p704_p4 }
  0x2d   : > { %s276_s18 = sshll.u32 %s121_s14, 3  ;;  %s277_s21 = sshll.u32 %s471_s12, 7 }
  0x2e   : > { %p56_p13 = por %p55_p2, %p707_p12  ;;  %s596_s19 = scalar_lea.hbm %s693_s1, %s277_s21 }
  0x2f   : > { %s125_s23 = scalar_lea.vmem [#allocation5], %s276_s18  ;;  %s122_s27 = scalar_lea.sflag [#allocation6], %s121_s14 }
  0x30   : > { %s132_s24 = sshll.u32 %s125_s23, 4  ;;  %p598_p11 = pnand %p307_p9, %p56_p13  ;;  %s602_s24 = int_to_ptr.vmem [resolvable:$true] %s132_s24 }
  0x31   : > { %s371_s28 = scalar_lea.hbm %s596_s19, 128  ;;  %s376_s3 = scalar_lea.hbm %s693_s1, 256 }
  0x32   : > { %p372_p0 = scmp.ne.s32.totalorder %s596_s19, %s371_s28  ;;  %p373_p3 = pneg %p598_p11 }
  0x33   : > { %p377_p10 = scmp.lt.u32.totalorder %s596_s19, %s693_s1  ;;  %p378_p1 = scmp.lt.u32.totalorder %s376_s3, %s371_s28 }
  0x34   : > { %p374_p5 = pnand %p373_p3, %p372_p0  ;;  %p380_p4 = scmp.lt.u32.totalorder %s371_s28, %s596_s19 }
  0x35   : > { %p379_p2 = por %p378_p1, %p377_p10 }
  0x36   : > { %p375_p7 = pneg %p374_p5 }
  0x37   : > { %p381_p6 = por %p380_p4, %p379_p2 }
  0x39   : > { %p382_p9 = pnand %p381_p6, %p375_p7 }
  0x3b   : > { %385 = shalt.err (!%p382_p9)
}
  0x3c   : > { %s386_s6 = scalar_lea.vmem %s602_s24, 128  ;;  %s474_s14 = smov [#allocation5]  }
  0x3d   : > { %p387_p12 = scmp.ne.s32.totalorder %s602_s24, %s386_s6  ;;  %s391_s18 = sshll.u32 %s474_s14, 4  ;;  %s392_s18 = int_to_ptr.vmem [resolvable:$false] %s391_s18 }
  0x3e   : > { %s393_s21 = scalar_lea.vmem %s392_s18, 256  ;;  %p394_p5 = scmp.lt.s32.totalorder %s602_s24, %s392_s18 }
  0x3f   : > { %p389_p13 = pnand %p387_p12, %p373_p3  ;;  %p395_p10 = scmp.lt.s32.totalorder %s393_s21, %s386_s6 }
  0x41   : > { %p390_p0 = pneg %p389_p13  ;;  %p396_p1 = por %p395_p10, %p394_p5 }
  0x43   : > { %p397_p2 = pnand %p396_p1, %p390_p0 }
  0x45   : > { %400 = shalt.err (!%p397_p2)
}
  0x46   : > { %301 = dma.hbm_to_vmem [thread:$0]  (!%p598_p11), %s596_s19, 128, %s602_s24, %s122_s27  }
  0x47   : > { %p709_p7 = scmp.ne.s32.totalorder %s700_s17, 0 }
  0x48   : > { %p710_p3 = scmp.eq.s32.totalorder (!%p709_p7), %s512_s13, 0 }
  0x49   : > { %141 = sbr.rel (%p709_p7) target bundleno = 110 (0x6e), region = 28 }
  0x50   : > { %446 = dma.done.wait (%p710_p3), [#allocation3], 128   ;;  %p711_p4 = pmov %p710_p3 }
  0x51   : > { %s636_s22 = sand.u32 1, %s463_s10   ;;  %p712_p6 = scmp.ne.s32.totalorder %s698_s15, 0 }
  0x52   : > { %448 = vsyncadd (%p711_p4), [#allocation3], 4294967168  ;;  %s280_s25 = sshll.u32 %s636_s22, 3  ;;  %s148_s23 = scalar_lea.sflag [#allocation6], %s636_s22 }
  0x53   : > { %s151_s26 = scalar_lea.vmem [#allocation5], %s280_s25 }
  0x54   : > { %450 = dma.done.wait (%p712_p6), %s148_s23, 128  }
  0x55   : > { %452 = vsyncadd (%p712_p6), %s148_s23, 4294967168  ;;  %s171_s17 = scalar_lea.vmem [#allocation7], %s280_s25  ;;  %s283_s24 = sshll.u32 %s512_s13, 7  ;;  %v172_v0 = vld [vmem:[%s151_s26] sm:$0xff]  ;;  %v173_v1 = vld [vmem:[#allocation2] sm:$0xff] }
  0x56   : > { %s190_s19 = sshll.u32 %s171_s17, 4  ;;  %v174_v2 = vadd.f32 %v173_v1, %v172_v0  ;;  %s650_s29 = scalar_lea.hbm %s694_s2, %s283_s24  ;;  %s645_s19 = int_to_ptr.vmem [resolvable:$true] %s190_s19 }
  0x57   : > { %s177_s15 = scalar_lea.sflag [#allocation4], %s636_s22  ;;  %s401_s30 = scalar_lea.vmem %s645_s19, 128 }
  0x58   : > { %175 = vst [vmem:[%s171_s17] sm:$0xff] %v174_v2  ;;  %p402_p11 = scmp.ne.s32.totalorder %s645_s19, %s401_s30  ;;  %s475_s13 = smov [#allocation7]  }
  0x59   : > { %s405_s3 = sshll.u32 %s475_s13, 4  ;;  %s406_s3 = int_to_ptr.vmem [resolvable:$false] %s405_s3 }
  0x5a   : > { %p403_p9 = pnand %p402_p11, %p583_p8  ;;  %s407_s4 = scalar_lea.vmem %s406_s3, 256 }
  0x5b   : > { %p408_p13 = scmp.lt.s32.totalorder %s645_s19, %s406_s3  ;;  %p409_p0 = scmp.lt.s32.totalorder %s407_s4, %s401_s30 }
  0x5c   : > { %p404_p12 = pneg %p403_p9 }
  0x5d   : > { %p410_p5 = por %p409_p0, %p408_p13 }
  0x5f   : > { %p411_p10 = pnand %p410_p5, %p404_p12 }
  0x61   : > { %414 = shalt.err (!%p411_p10)
}
  0x62   : > { %s415_s5 = scalar_lea.hbm %s650_s29, 128  ;;  %s419_s18 = scalar_lea.hbm %s694_s2, 256 }
  0x63   : > { %p416_p1 = scmp.ne.s32.totalorder %s650_s29, %s415_s5  ;;  %p420_p3 = scmp.lt.u32.totalorder %s650_s29, %s694_s2 }
  0x64   : > { %p421_p4 = scmp.lt.u32.totalorder %s419_s18, %s415_s5  ;;  %p423_p11 = scmp.lt.u32.totalorder %s415_s5, %s650_s29 }
  0x65   : > { %p417_p2 = pnand %p416_p1, %p583_p8 }
  0x66   : > { %p422_p6 = por %p421_p4, %p420_p3 }
  0x67   : > { %p418_p7 = pneg %p417_p2 }
  0x68   : > { %p424_p9 = por %p423_p11, %p422_p6 }
  0x6a   : > { %p425_p12 = pnand %p424_p9, %p418_p7 }
  0x6c   : > { %428 = shalt.err (!%p425_p12)
}
  0x6d   : > { %292 = dma.vmem_to_hbm [thread:$0]  (%p583_p8), %s645_s19, 128, %s650_s29, %s177_s15  }
  0x6e PF: > { %s202_s25 = sand.u32 1, %s459_s9   ;;  %p713_p13 = scmp.ne.s32.totalorder %s699_s16, 0 }
  0x6f   : > { %p714_p0 = scmp.ge.s32.totalorder %s471_s12, 2  ;;  %s203_s23 = scalar_lea.sflag [#allocation4], %s202_s25 }
  0x71   : > { %p303_p5 = pnand %p714_p0, %p713_p13 }
  0x73   : > { %454 = dma.done.wait (!%p303_p5), %s203_s23, 128  }
  0x74   : > { %456 = vsyncadd (!%p303_p5), %s203_s23, 4294967168  ;;  %p16_p10 = scmp.ge.s32.totalorder %s539_s20, 4   ;;  %s715_s9 = smov %s463_s10 }
  0x75   : > { %s716_s10 = smov %s467_s11  ;;  %s717_s11 = smov %s575_s7 }
  0x76   : > { %s718_s12 = smov %s539_s20  ;;  %18 = sbr.rel (!%p16_p10) target bundleno = 6 (0x6), region = 78 }
  0x7d   :  { %208 = vsyncpa [#allocation3], 1 }
  0x7e   :  { %210 = vsyncpa [#allocation3 + $0x1], 1 }
  0x7f   :  { %211 = vsyncpa [#allocation6], 1 }
  0x80   :  { %213 = vsyncpa [#allocation6 + $0x1], 1 }
  0x81   :  { %214 = vsyncpa [#allocation4], 1 }
  0x82   :  { %216 = vsyncpa [#allocation4 + $0x1], 1 }

// kernel: vit_forward.4
= control target key start
LH: loop header
LB: loop body
LE: loop exit
PB: predicated region body
PF: predicated region fallthrough
CT: control target
= control target key end

     0   :  { %8 = vsyncpa [#allocation3], 0  ;;  %s420_s0 = inlined_call_operand.hbm [shape: f32[32,64], index: 0, kind: input, shape index: {}]   ;;  %s421_s1 = inlined_call_operand.hbm [shape: bf16[64,32], index: 1, kind: input, shape index: {}]   ;;  %s422_s2 = inlined_call_operand.hbm [shape: f32[1,32], index: 2, kind: input, shape index: {}]   ;;  %s423_s3 = inlined_call_operand.hbm [shape: bf16[32,32], index: 3, kind: output, shape index: {}]  }
   0x1   :  { %9 = vsyncpa [#allocation6], 0 }
   0x2   :  { %10 = vsyncpa [#allocation4], 0  ;;  %s334_s12 = smov [#allocation5]   ;;  %s240_s16 = scalar_lea.hbm %s421_s1, 512 }
   0x3   :  { %s28_s13 = sshll.u32 %s334_s12, 4  ;;  %p241_p0 = scmp.ne.s32.totalorder %s421_s1, %s240_s16  ;;  %s29_s13 = int_to_ptr.vmem [resolvable:$true] %s28_s13 }
   0x4   :  { %p244_p1 = scmp.lt.u32.totalorder %s240_s16, %s421_s1 }
   0x6   :  { %p246_p2 = pnand %p244_p1, %p241_p0 }
   0x8   :  { %249 = shalt.err (!%p246_p2)
}
   0x9   :  { %s250_s21 = scalar_lea.vmem %s29_s13, 512  ;;  %p255_p4 = scmp.lt.s32.totalorder %s29_s13, %s29_s13 }
   0xa   :  { %p251_p3 = scmp.ne.s32.totalorder %s29_s13, %s250_s21  ;;  %p256_p5 = scmp.lt.s32.totalorder %s250_s21, %s250_s21 }
   0xc   :  { %p257_p6 = por %p256_p5, %p255_p4 }
   0xe   :  { %p258_p7 = pnand %p257_p6, %p251_p3 }
  0x10   :  { %261 = shalt.err (!%p258_p7)
}
  0x11   :  { %s335_s22 = smov 64   ;;  %s336_s23 = smov 4  }
  0x12   :  { %34 = dma.hbm_to_vmem [thread:$0]  %s421_s1, 512, %s29_s13, [#allocation6], %s335_s22, %s335_s22, %s336_s23  }
  0x13   :  { %s337_s26 = smov [#allocation2]   ;;  %s262_s30 = scalar_lea.hbm %s420_s0, 512 }
  0x14   :  { %s16_s27 = sshll.u32 %s337_s26, 4  ;;  %p263_p8 = scmp.ne.s32.totalorder %s420_s0, %s262_s30  ;;  %s17_s27 = int_to_ptr.vmem [resolvable:$true] %s16_s27 }
  0x15   :  { %p266_p9 = scmp.lt.u32.totalorder %s262_s30, %s420_s0 }
  0x17   :  { %p268_p10 = pnand %p266_p9, %p263_p8 }
  0x19   :  { %271 = shalt.err (!%p268_p10)
}
  0x1a   :  { %s272_s8 = scalar_lea.vmem %s17_s27, 512  ;;  %p277_p12 = scmp.lt.s32.totalorder %s17_s27, %s17_s27 }
  0x1b   :  { %p273_p11 = scmp.ne.s32.totalorder %s17_s27, %s272_s8  ;;  %p278_p13 = scmp.lt.s32.totalorder %s272_s8, %s272_s8 }
  0x1d   :  { %p279_p0 = por %p278_p13, %p277_p12 }
  0x1f   :  { %p280_p1 = pnand %p279_p0, %p273_p11 }
  0x21   :  { %283 = shalt.err (!%p280_p1)
}
  0x22   :  { %s338_s1 = smov 128   ;;  %s339_s9 = smov 8  }
  0x23   :  { %22 = dma.hbm_to_vmem [thread:$0]  %s420_s0, 512, %s17_s27, [#allocation3], %s338_s1, %s338_s1, %s339_s9  }
  0x24   :  { %s340_s12 = smov [#allocation7]   ;;  %s284_s16 = scalar_lea.hbm %s422_s2, 16 }
  0x25   :  { %s41_s13 = sshll.u32 %s340_s12, 4  ;;  %p285_p2 = scmp.ne.s32.totalorder %s422_s2, %s284_s16  ;;  %s42_s13 = int_to_ptr.vmem [resolvable:$true] %s41_s13 }
  0x26   :  { %p288_p3 = scmp.lt.u32.totalorder %s284_s16, %s422_s2 }
  0x28   :  { %p290_p4 = pnand %p288_p3, %p285_p2 }
  0x2a   :  { %293 = shalt.err (!%p290_p4)
}
  0x2b   :  { %s294_s21 = scalar_lea.vmem %s42_s13, 16  ;;  %s298_s0 = scalar_lea.vmem %s42_s13, 32 }
  0x2c   :  { %p295_p5 = scmp.ne.s32.totalorder %s42_s13, %s294_s21  ;;  %p299_p6 = scmp.lt.s32.totalorder %s42_s13, %s42_s13 }
  0x2d   :  { %p300_p7 = scmp.lt.s32.totalorder %s298_s0, %s294_s21 }
  0x2f   :  { %p301_p8 = por %p300_p7, %p299_p6 }
  0x31   :  { %p302_p9 = pnand %p301_p8, %p295_p5 }
  0x33   :  { %305 = shalt.err (!%p302_p9)
}
  0x34   :  { %44 = dma.hbm_to_vmem [thread:$0]  %s422_s2, 16, %s42_s13, [#allocation6]  }
  0x35   :  { %328 = dma.done.wait [#allocation3], 512  }
  0x36   :  { %329 = vsyncadd [#allocation3], 4294966784 }
  0x37   :  { %330 = dma.done.wait [#allocation6], 528  }
  0x38   :  { %331 = vsyncadd [#allocation6], 4294966768  ;;  %v236_v0 = vld [vmem:[#allocation5] sm:$0xff]   ;;  %v237_v1 = vld [vmem:[#allocation5 + $0x8] sm:$0xff]   ;;  %vm100_vm0 = vcmask 523264   ;;  %vm172_vm1 = vcmask 257024  }
  0x39   :  { %216 = vmatprep.subr.bf16.mxu0 %v236_v0  ;;  %v238_v2 = vld [vmem:[#allocation5 + $0x10] sm:$0xff]   ;;  %v55_v3 = vld [vmem:[#allocation2] sm:$0xff]  ;;  %v56_v4 = vld [vmem:[#allocation2 + $0x8] sm:$0xff]  ;;  %s341_s2 = smov [#allocation8]  }
  0x3a   :  { %217 = vmatpush3.bf16.msra.mxu0 %v236_v0  ;;  %v59_v5 = vpack.c.bf16 %v56_v4, %v55_v3  ;;  %v239_v6 = vld [vmem:[#allocation5 + $0x18] sm:$0xff]   ;;  %v57_v7 = vld [vmem:[#allocation2 + $0x10] sm:$0xff]  ;;  %v195_v10 = vld [vmem:[#allocation7] ss:$0 sm:$0xff]  ;;  %s182_s26 = sshll.u32 %s341_s2, 4  ;;  %s183_s26 = int_to_ptr.vmem [resolvable:$true] %s182_s26 }
  0x3b   :  { %218 = vmatprep.subr.bf16.mxu0 %v237_v1  ;;  %v58_v8 = vld [vmem:[#allocation2 + $0x18] sm:$0xff]  ;;  %s306_s27 = scalar_lea.vmem %s183_s26, 256  ;;  %p311_p11 = scmp.lt.s32.totalorder %s183_s26, %s183_s26 }
  0x3c   :  { %224 = vmatprep.mubr.msk.bf16.mxu0 %vm100_vm0, %v59_v5  ;;  %v60_v9 = vpack.c.bf16 %v58_v8, %v57_v7  ;;  %p307_p10 = scmp.ne.s32.totalorder %s183_s26, %s306_s27  ;;  %p312_p12 = scmp.lt.s32.totalorder %s306_s27, %s306_s27 }
  0x3e   :  { %219 = vmatpush3.bf16.msra.mxu0 %v237_v1  ;;  %p313_p13 = por %p312_p12, %p311_p11 }
  0x3f   :  { %220 = vmatprep.subr.bf16.mxu0 %v238_v2 }
  0x40   :  { %p314_p0 = pnand %p313_p13, %p307_p10 }
  0x42   :  { %221 = vmatpush3.bf16.msra.mxu0 %v238_v2 }
  0x43   :  { %222 = vmatprep.subr.bf16.mxu0 %v239_v6 }
  0x46   :  { %223 = vmatpush3.bf16.msra.mxu0 %v239_v6 }
  0x49   :  { %225 = vmatmul.mubr.msk.bf16.vlgmr.msra.gmra.mrb[0].mxu0 %vm100_vm0, %v60_v9 }
 0x11c   :  { %v226_v11 = vpop.f32.mrb[0].mxu0 }
 0x11d   :  { %v150_v12 = vadd.f32 %v226_v11, %v195_v10  ;;  %v141_v13 = vpop.f32.mrb[1].mxu0 }
 0x11e   :  { %v142_v14 = vadd.f32 %v195_v10, %v141_v13  ;;  %v227_v15 = vpop.f32.mrb[2].mxu0 }
 0x11f   :  { %v208_v16 = vpack.c.bf16 %v150_v12, %v150_v12  ;;  %v153_v17 = vadd.f32 %v227_v15, %v195_v10  ;;  %v144_v18 = vpop.f32.mrb[3].mxu0 }
 0x120   :  { %v206_v19 = vpack.c.bf16 %v142_v14, %v142_v14  ;;  %v145_v20 = vadd.f32 %v195_v10, %v144_v18 }
 0x121   :  { %175 = vst.msk [vmem:[#allocation8 + $0x8] sm:$0xf] %vm172_vm1, %v208_v16  ;;  %v209_v21 = vpack.c.bf16 %v153_v17, %v153_v17 }
 0x122   :  { %173 = vst.msk [vmem:[#allocation8] sm:$0xf] %vm172_vm1, %v206_v19  ;;  %v207_v22 = vpack.c.bf16 %v145_v20, %v145_v20 }
 0x123   :  { %176 = vst.msk [vmem:[#allocation8 + $0xc] sm:$0xf] %vm172_vm1, %v209_v21 }
 0x124   :  { %174 = vst.msk [vmem:[#allocation8 + $0x4] sm:$0xf] %vm172_vm1, %v207_v22 }
 0x125   :  { %317 = shalt.err (!%p314_p0)
}
 0x126   :  { %s318_s30 = scalar_lea.hbm %s423_s3, 256 }
 0x127   :  { %p319_p1 = scmp.ne.s32.totalorder %s423_s3, %s318_s30  ;;  %p322_p2 = scmp.lt.u32.totalorder %s318_s30, %s423_s3 }
 0x129   :  { %p324_p3 = pnand %p322_p2, %p319_p1 }
 0x12b   :  { %327 = shalt.err (!%p324_p3)
}
 0x12c   :  { %188 = dma.vmem_to_hbm [thread:$0]  %s183_s26, 256, %s423_s3, [#allocation4], %s335_s22, %s335_s22, %s336_s23  }
 0x12d   :  { %332 = dma.done.wait [#allocation4], 256  }
 0x12e   :  { %333 = vsyncadd [#allocation4], 4294967040 }
 0x12f   :  { %192 = vsyncpa [#allocation3], 1 }
 0x130   :  { %193 = vsyncpa [#allocation6], 1 }
 0x131   :  { %194 = vsyncpa [#allocation4], 1 }

// kernel: vit_forward.7
= control target key start
LH: loop header
LB: loop body
LE: loop exit
PB: predicated region body
PF: predicated region fallthrough
CT: control target
= control target key end

     0   :  { %10 = vsyncpa [#allocation3], 0  ;;  %s516_s0 = inlined_call_operand.hbm [shape: bf16[2,32], index: 0, kind: input, shape index: {}]   ;;  %s517_s1 = inlined_call_operand.hbm [shape: f32[1,32], index: 1, kind: input, shape index: {}]   ;;  %s518_s2 = inlined_call_operand.hbm [shape: f32[1,32], index: 2, kind: input, shape index: {}]   ;;  %s519_s3 = inlined_call_operand.hbm [shape: f32[32,128], index: 3, kind: input, shape index: {}]   ;;  %s520_s4 = inlined_call_operand.hbm [shape: f32[1,128], index: 4, kind: input, shape index: {}]   ;;  %s521_s5 = inlined_call_operand.hbm [shape: f32[2,128], index: 5, kind: output, shape index: {}]  }
   0x1   :  { %11 = vsyncpa [#allocation6], 0 }
   0x2   :  { %12 = vsyncpa [#allocation9], 0 }
   0x3   :  { %13 = vsyncpa [#allocation4], 0  ;;  %s396_s18 = smov [#allocation5]   ;;  %s397_s20 = smov [#allocation8]  }
   0x4   :  { %s30_s19 = sshll.u32 %s396_s18, 4  ;;  %s49_s21 = sshll.u32 %s397_s20, 4  ;;  %s31_s19 = int_to_ptr.vmem [resolvable:$true] %s30_s19  ;;  %s437_s21 = int_to_ptr.vmem [resolvable:$true] %s49_s21 }
   0x5   :  { %s256_s24 = scalar_lea.hbm %s517_s1, 16 }
   0x6   :  { %p257_p0 = scmp.ne.s32.totalorder %s517_s1, %s256_s24  ;;  %p260_p1 = scmp.lt.u32.totalorder %s256_s24, %s517_s1 }
   0x8   :  { %p262_p2 = pnand %p260_p1, %p257_p0 }
   0xa   :  { %265 = shalt.err (!%p262_p2)
}
   0xb   :  { %s266_s29 = scalar_lea.vmem %s31_s19, 16  ;;  %s270_s30 = scalar_lea.vmem %s31_s19, 32 }
   0xc   :  { %p267_p3 = scmp.ne.s32.totalorder %s31_s19, %s266_s29  ;;  %p271_p4 = scmp.lt.s32.totalorder %s31_s19, %s31_s19 }
   0xd   :  { %p272_p5 = scmp.lt.s32.totalorder %s270_s30, %s266_s29 }
   0xf   :  { %p273_p6 = por %p272_p5, %p271_p4 }
  0x11   :  { %p274_p7 = pnand %p273_p6, %p267_p3 }
  0x13   :  { %277 = shalt.err (!%p274_p7)
}
  0x14   :  { %33 = dma.hbm_to_vmem [thread:$0]  %s517_s1, 16, %s31_s19, [#allocation6]  }
  0x15   :  { %s278_s10 = scalar_lea.hbm %s519_s3, 512 }
  0x16   :  { %p279_p8 = scmp.ne.s32.totalorder %s519_s3, %s278_s10  ;;  %p282_p9 = scmp.lt.u32.totalorder %s278_s10, %s519_s3 }
  0x18   :  { %p284_p10 = pnand %p282_p9, %p279_p8 }
  0x1a   :  { %287 = shalt.err (!%p284_p10)
}
  0x1b   :  { %s288_s15 = scalar_lea.vmem %s437_s21, 512  ;;  %p293_p12 = scmp.lt.s32.totalorder %s437_s21, %s437_s21 }
  0x1c   :  { %p289_p11 = scmp.ne.s32.totalorder %s437_s21, %s288_s15  ;;  %p294_p13 = scmp.lt.s32.totalorder %s288_s15, %s288_s15 }
  0x1e   :  { %p295_p0 = por %p294_p13, %p293_p12 }
  0x20   :  { %p296_p1 = pnand %p295_p0, %p289_p11 }
  0x22   :  { %299 = shalt.err (!%p296_p1)
}
  0x23   :  { %s398_s1 = smov 128   ;;  %s399_s16 = smov 8  }
  0x24   :  { %55 = dma.hbm_to_vmem [thread:$0]  %s519_s3, 512, %s437_s21, [#allocation9], %s398_s1, %s398_s1, %s399_s16  }
  0x25   :  { %s400_s19 = smov [#allocation2]   ;;  %s401_s22 = smov [#allocation7]  }
  0x26   :  { %s20_s20 = sshll.u32 %s400_s19, 4  ;;  %s40_s23 = sshll.u32 %s401_s22, 4  ;;  %s21_s20 = int_to_ptr.vmem [resolvable:$true] %s20_s20  ;;  %s41_s23 = int_to_ptr.vmem [resolvable:$true] %s40_s23 }
  0x27   :  { %s300_s26 = scalar_lea.hbm %s516_s0, 16 }
  0x28   :  { %p301_p2 = scmp.ne.s32.totalorder %s516_s0, %s300_s26  ;;  %p304_p3 = scmp.lt.u32.totalorder %s300_s26, %s516_s0 }
  0x2a   :  { %p306_p4 = pnand %p304_p3, %p301_p2 }
  0x2c   :  { %309 = shalt.err (!%p306_p4)
}
  0x2d   :  { %s310_s3 = scalar_lea.vmem %s21_s20, 16  ;;  %s314_s21 = scalar_lea.vmem %s21_s20, 32 }
  0x2e   :  { %p311_p5 = scmp.ne.s32.totalorder %s21_s20, %s310_s3  ;;  %p315_p6 = scmp.lt.s32.totalorder %s21_s20, %s21_s20 }
  0x2f   :  { %p316_p7 = scmp.lt.s32.totalorder %s314_s21, %s310_s3 }
  0x31   :  { %p317_p8 = por %p316_p7, %p315_p6 }
  0x33   :  { %p318_p9 = pnand %p317_p8, %p311_p5 }
  0x35   :  { %321 = shalt.err (!%p318_p9)
}
  0x36   :  { %23 = dma.hbm_to_vmem [thread:$0]  %s516_s0, 16, %s21_s20, [#allocation3]  }
  0x37   :  { %s322_s10 = scalar_lea.hbm %s518_s2, 16 }
  0x38   :  { %p323_p10 = scmp.ne.s32.totalorder %s518_s2, %s322_s10  ;;  %p326_p11 = scmp.lt.u32.totalorder %s322_s10, %s518_s2 }
  0x3a   :  { %p328_p12 = pnand %p326_p11, %p323_p10 }
  0x3c   :  { %331 = shalt.err (!%p328_p12)
}
  0x3d   :  { %s332_s15 = scalar_lea.vmem %s41_s23, 16  ;;  %s336_s1 = scalar_lea.vmem %s41_s23, 32 }
  0x3e   :  { %p333_p13 = scmp.ne.s32.totalorder %s41_s23, %s332_s15  ;;  %p337_p0 = scmp.lt.s32.totalorder %s41_s23, %s41_s23 }
  0x3f   :  { %p338_p1 = scmp.lt.s32.totalorder %s336_s1, %s332_s15 }
  0x41   :  { %p339_p2 = por %p338_p1, %p337_p0 }
  0x43   :  { %p340_p3 = pnand %p339_p2, %p333_p13 }
  0x45   :  { %343 = shalt.err (!%p340_p3)
}
  0x46   :  { %43 = dma.hbm_to_vmem [thread:$0]  %s518_s2, 16, %s41_s23, [#allocation6]  }
  0x47   :  { %s402_s17 = smov [#allocation10]   ;;  %s344_s22 = scalar_lea.hbm %s520_s4, 16 }
  0x48   :  { %s62_s18 = sshll.u32 %s402_s17, 4  ;;  %p345_p4 = scmp.ne.s32.totalorder %s520_s4, %s344_s22  ;;  %s63_s18 = int_to_ptr.vmem [resolvable:$true] %s62_s18 }
  0x49   :  { %p348_p5 = scmp.lt.u32.totalorder %s344_s22, %s520_s4 }
  0x4b   :  { %p350_p6 = pnand %p348_p5, %p345_p4 }
  0x4d   :  { %353 = shalt.err (!%p350_p6)
}
  0x4e   :  { %s354_s28 = scalar_lea.vmem %s63_s18, 16  ;;  %s358_s2 = scalar_lea.vmem %s63_s18, 32 }
  0x4f   :  { %p355_p7 = scmp.ne.s32.totalorder %s63_s18, %s354_s28  ;;  %p359_p8 = scmp.lt.s32.totalorder %s63_s18, %s63_s18 }
  0x50   :  { %p360_p9 = scmp.lt.s32.totalorder %s358_s2, %s354_s28 }
  0x52   :  { %p361_p10 = por %p360_p9, %p359_p8 }
  0x54   :  { %p362_p11 = pnand %p361_p10, %p355_p7 }
  0x56   :  { %365 = shalt.err (!%p362_p11)
}
  0x57   :  { %65 = dma.hbm_to_vmem [thread:$0]  %s520_s4, 16, %s63_s18, [#allocation9]  }
  0x58   :  { %388 = dma.done.wait [#allocation3], 16  }
  0x59   :  { %389 = vsyncadd [#allocation3], 4294967280 }
  0x5a   :  { %390 = dma.done.wait [#allocation6], 32  }
  0x5b   :  { %391 = vsyncadd [#allocation6], 4294967264 }
  0x5c   :  { %392 = dma.done.wait [#allocation9], 528  }
  0x5d   :  { %393 = vsyncadd [#allocation9], 4294966768  ;;  %v81_v0 = vld [vmem:[#allocation2] sm:$0x1]  ;;  %vm85_vm0 = vcmask 254976   ;;  %v114_v8 = vld [vmem:[#allocation8] sm:$0xff] }
  0x5e   :  { %v82_v1 = vunpack.c.l.bf16 %v81_v0  ;;  %v115_v9 = vld [vmem:[#allocation8 + $0x8] sm:$0xff]  ;;  %v116_v10 = vld [vmem:[#allocation8 + $0x10] sm:$0xff]  ;;  %v403_v11 = vmov 0.0|0.0   ;;  %v117_v13 = vld [vmem:[#allocation8 + $0x18] sm:$0xff]  ;;  %vm404_vm1 = vmmov 0   ;;  %v405_v14 = vmov 0.0  }
  0x5f   :  { %237 = vmatprep.subr.bf16.mxu0 %v403_v11  ;;  %v238_v12 = vpack.c.bf16 %v115_v9, %v114_v8  ;;  %234 = vmatprep.mubr.msk.f32.mxu0 %vm404_vm1, %v405_v14  ;;  %v241_v15 = vpack.c.bf16 %v117_v13, %v116_v10  ;;  %v217_v20 = vld [vmem:[#allocation5] ss:$0 sm:$0xff]  ;;  %v218_v22 = vld [vmem:[#allocation7] ss:$0 sm:$0xff]  ;;  %vm125_vm2 = vcmask 261120   ;;  %s406_s4 = smov [#allocation11]  }
  0x60   :  { %v86_v2 = vsel %vm85_vm0, %v82_v1, 0.0  ;;  %v219_v25 = vld [vmem:[#allocation10] ss:$0 sm:$0xff]  ;;  %s206_s30 = sshll.u32 %s406_s4, 4  ;;  %s207_s30 = int_to_ptr.vmem [resolvable:$true] %s206_s30 }
  0x61   :  { %87 = vadd.xlane.f32.xlu0 %v86_v2  ;;  %239 = vmatpush3.bf16.msra.mxu0 %v238_v12  ;;  %s366_s3 = scalar_lea.vmem %s207_s30, 32  ;;  %p371_p13 = scmp.lt.s32.totalorder %s207_s30, %s207_s30 }
  0x62   :  { %240 = vmatprep.subr.bf16.mxu0 %v403_v11  ;;  %p367_p12 = scmp.ne.s32.totalorder %s207_s30, %s366_s3  ;;  %p372_p0 = scmp.lt.s32.totalorder %s366_s3, %s366_s3 }
  0x64   :  { %p373_p1 = por %p372_p0, %p371_p13 }
  0x65   :  { %242 = vmatpush3.bf16.msra.mxu0 %v241_v15 }
  0x66   :  { %p374_p2 = pnand %p373_p1, %p367_p12 }
  0xee   :  { %v88_v3 = vpop.xlane.xlu0 %87 }
  0xef   :  { %v90_v4 = vmul.f32 0.03125, %v88_v3 }
  0xf1   :  { %v91_v5 = vsub.f32 %v82_v1, %v90_v4 }
  0xf3   :  { %v92_v6 = vmul.f32 %v91_v5, %v91_v5 }
  0xf5   :  { %v93_v7 = vsel %vm85_vm0, %v92_v6, 0.0 }
  0xf6   :  { %94 = vadd.xlane.f32.xlu0 %v93_v7 }
 0x183   :  { %v95_v16 = vpop.xlane.xlu0 %94 }
 0x184   :  { %v96_v17 = vmul.f32 0.03125, %v95_v16 }
 0x186   :  { %v97_v18 = vadd.f32 1e-05, %v96_v17 }
 0x188   :  { %254 = vrsqrt.f32 %v97_v18 }
 0x192   :  { %v255_v19 = vpop.eup %254 }
 0x193   :  { %v99_v21 = vmul.f32 %v255_v19, %v91_v5 }
 0x195   :  { %v106_v23 = vmul.f32 %v217_v20, %v99_v21 }
 0x197   :  { %v113_v24 = vadd.f32 %v218_v22, %v106_v23 }
 0x199   :  { %235 = vmatmul.mubr.msk.f32.vlgmr.msra.gmra.mrb[0].mxu0 %vm125_vm2, %v113_v24 }
 0x26c   :  { %v195_v26 = vpop.f32.mrb[0].mxu0 }
 0x26d   :  { %v196_v27 = vadd.f32 %v219_v25, %v195_v26  ;;  %v236_v28 = vpop.f32.mrb[1].mxu0 }
 0x26f   :  { %199 = vst [vmem:[#allocation11] sm:$0x3] %v196_v27 }
 0x270   :  { %377 = shalt.err (!%p374_p2)
}
 0x271   :  { %s378_s7 = scalar_lea.hbm %s521_s5, 32 }
 0x272   :  { %p379_p3 = scmp.ne.s32.totalorder %s521_s5, %s378_s7  ;;  %p382_p4 = scmp.lt.u32.totalorder %s378_s7, %s521_s5 }
 0x274   :  { %p384_p5 = pnand %p382_p4, %p379_p3 }
 0x276   :  { %387 = shalt.err (!%p384_p5)
}
 0x277   :  { %209 = dma.vmem_to_hbm [thread:$0]  %s207_s30, 32, %s521_s5, [#allocation4]  }
 0x278   :  { %394 = dma.done.wait [#allocation4], 32  }
 0x279   :  { %395 = vsyncadd [#allocation4], 4294967264 }
 0x27a   :  { %213 = vsyncpa [#allocation3], 1 }
 0x27b   :  { %214 = vsyncpa [#allocation6], 1 }
 0x27c   :  { %215 = vsyncpa [#allocation9], 1 }
 0x27d   :  { %216 = vsyncpa [#allocation4], 1 }

// kernel: vit_forward.5
= control target key start
LH: loop header
LB: loop body
LE: loop exit
PB: predicated region body
PF: predicated region fallthrough
CT: control target
= control target key end

     0   :  { %s3912_s0 = inlined_call_operand.hbm [shape: bf16[2,32,32], index: 0, kind: input, shape index: {}, may-alias: {0,12}]   ;;  %s3913_s1 = inlined_call_operand.hbm [shape: f32[1,32], index: 1, kind: input, shape index: {}]   ;;  %s3914_s2 = inlined_call_operand.hbm [shape: f32[1,32], index: 2, kind: input, shape index: {}]   ;;  %s3915_s3 = inlined_call_operand.hbm [shape: bf16[32,96], index: 3, kind: input, shape index: {}]   ;;  %s3916_s4 = inlined_call_operand.hbm [shape: bf16[32,32], index: 4, kind: input, shape index: {}]   ;;  %s3917_s5 = inlined_call_operand.hbm [shape: f32[1,32], index: 5, kind: input, shape index: {}]   ;;  %s3918_s6 = inlined_call_operand.hbm [shape: f32[1,32], index: 6, kind: input, shape index: {}]   ;;  %s3919_s7 = inlined_call_operand.hbm [shape: f32[1,32], index: 7, kind: input, shape index: {}]   ;;  %s3920_s8 = inlined_call_operand.hbm [shape: bf16[32,64], index: 8, kind: input, shape index: {}]   ;;  %s3921_s9 = inlined_call_operand.hbm [shape: f32[1,64], index: 9, kind: input, shape index: {}]   ;;  %s3922_s10 = inlined_call_operand.hbm [shape: bf16[64,32], index: 10, kind: input, shape index: {}]   ;;  %s3923_s11 = inlined_call_operand.hbm [shape: f32[1,32], index: 11, kind: input, shape index: {}]   ;;  %s3924_s12 = inlined_call_operand.hbm [shape: bf16[2,32,32], index: 12, kind: output, shape index: {}, may-alias: {0,12}]  }
   0x1   :  { %3934 = sst [smem:[#allocation32_spill]] %s3913_s1 }
   0x2   :  { %3935 = sst [smem:[#allocation33_spill]] %s3914_s2 }
   0x3   :  { %3936 = sst [smem:[#allocation34_spill]] %s3915_s3 }
   0x4   :  { %3937 = sst [smem:[#allocation35_spill]] %s3916_s4 }
   0x5   :  { %3938 = sst [smem:[#allocation36_spill]] %s3924_s12 }
   0x6   :  { %17 = vsyncpa [#allocation3], 0 }
   0x7   :  { %19 = vsyncpa [#allocation3 + $0x1], 0 }
   0x8   :  { %20 = vsyncpa [#allocation6], 0 }
   0x9   :  { %21 = vsyncpa [#allocation9], 0 }
   0xa   :  { %22 = vsyncpa [#allocation12], 0 }
   0xb   :  { %23 = vsyncpa [#allocation15], 0 }
   0xc   :  { %24 = vsyncpa [#allocation18], 0 }
   0xd   :  { %25 = vsyncpa [#allocation21], 0 }
   0xe   :  { %26 = vsyncpa [#allocation4], 0 }
   0xf   :  { %28 = vsyncpa [#allocation4 + $0x1], 0  ;;  %s3230_s21 = smov 0   ;;  %s3232_s22 = smov 0  }
  0x10   :  { %s3234_s23 = smov 0   ;;  %s3236_s24 = smov 0  }
  0x11 LB: > { %s3134_s25 = smov [#allocation5]   ;;  %s3251_s27 = sadd.s32 4294967295, %s3132_s24   ;;  %s3132_s24 = sphi %s3236_s24, %s3975_s24   ;;  %s3128_s23 = sphi %s3234_s23, %s3974_s23   ;;  %s3124_s22 = sphi %s3232_s22, %s3973_s22   ;;  %s3120_s21 = sphi %s3230_s21, %s3972_s21  }
  0x12   : > { %s335_s26 = sshll.u32 %s3134_s25, 4  ;;  %p2148_p0 = scmp.ge.s32.totalorder %s3132_s24, 1  ;;  %s3256_s26 = int_to_ptr.vmem [resolvable:$true] %s335_s26 }
  0x13   : > { %p3931_p1 = scmp.eq.s32.totalorder %s3251_s27, 0  ;;  %p322_p2 = scmp.lt.s32.totalorder %s3132_s24, 3 }
  0x14   : > { %s3135_s29 = smov [#allocation8]   ;;  %s3136_s14 = smov [#allocation11]  }
  0x15   : > { %p3258_p3 = pnand %p2148_p0, %p322_p2  ;;  %s356_s30 = sshll.u32 %s3135_s29, 4  ;;  %s3265_s30 = int_to_ptr.vmem [resolvable:$true] %s356_s30 }
  0x16   : > { %s383_s15 = sshll.u32 %s3136_s14, 4  ;;  %s3942_s1 = sld [smem:[#allocation32_spill]]  ;;  %s3273_s15 = int_to_ptr.vmem [resolvable:$true] %s383_s15 }
  0x17   : > { %s3939_s28 = scalar_select %p3258_p3, 1, 0 }
  0x18   : > { %p2449_p5 = pneg %p3258_p3 }
  0x19   : > { %3940 = sst [smem:[#allocation31_spill]] %s3939_s28 }
  0x1a   : > { %p3269_p6 = pnand %p2449_p5, %p3931_p1 }
  0x1c   : > { %s2704_s18 = scalar_lea.hbm %s3942_s1, 16  ;;  %p3283_p8 = pneg %p3269_p6 }
  0x1d   : > { %p2705_p7 = scmp.ne.s32.totalorder %s3942_s1, %s2704_s18  ;;  %p2711_p11 = scmp.lt.u32.totalorder %s2704_s18, %s3942_s1 }
  0x1f   : > { %p2707_p9 = pnand %p3283_p8, %p2705_p7 }
  0x21   : > { %p2708_p10 = pneg %p2707_p9 }
  0x23   : > { %p2713_p12 = pnand %p2711_p11, %p2708_p10 }
  0x25   : > { %2716 = shalt.err (!%p2713_p12)
}
  0x26   : > { %s2717_s16 = scalar_lea.vmem %s3256_s26, 16  ;;  %s2724_s17 = scalar_lea.vmem %s3256_s26, 32 }
  0x27   : > { %p2718_p13 = scmp.ne.s32.totalorder %s3256_s26, %s2717_s16  ;;  %p2725_p5 = scmp.lt.s32.totalorder %s3256_s26, %s3256_s26 }
  0x28   : > { %p2726_p7 = scmp.lt.s32.totalorder %s2724_s17, %s2717_s16 }
  0x29   : > { %p2720_p0 = pnand %p2718_p13, %p3283_p8 }
  0x2a   : > { %p2727_p9 = por %p2726_p7, %p2725_p5 }
  0x2b   : > { %p2721_p2 = pneg %p2720_p0 }
  0x2d   : > { %p2728_p4 = pnand %p2727_p9, %p2721_p2 }
  0x2f   : > { %2731 = shalt.err (!%p2728_p4)
}
  0x30   : > { %2452 = dma.hbm_to_vmem [thread:$0]  (!%p3269_p6), %s3942_s1, 16, %s3256_s26, [#allocation6]  }
  0x31   : > { %s3944_s3 = sld [smem:[#allocation34_spill]] }
  0x37   : > { %s2732_s14 = scalar_lea.hbm %s3944_s3, 256 }
  0x38   : > { %p2733_p10 = scmp.ne.s32.totalorder %s3944_s3, %s2732_s14  ;;  %p2739_p4 = scmp.lt.u32.totalorder %s2732_s14, %s3944_s3 }
  0x3a   : > { %p2735_p11 = pnand %p2733_p10, %p3283_p8 }
  0x3c   : > { %p2736_p12 = pneg %p2735_p11 }
  0x3e   : > { %p2741_p13 = pnand %p2739_p4, %p2736_p12 }
  0x40   : > { %2744 = shalt.err (!%p2741_p13)
}
  0x41   : > { %s2745_s26 = scalar_lea.vmem %s3265_s30, 256  ;;  %p2753_p7 = scmp.lt.s32.totalorder %s3265_s30, %s3265_s30 }
  0x42   : > { %p2746_p0 = scmp.ne.s32.totalorder %s3265_s30, %s2745_s26  ;;  %p2754_p9 = scmp.lt.s32.totalorder %s2745_s26, %s2745_s26 }
  0x44   : > { %p2748_p2 = pnand %p2746_p0, %p3283_p8  ;;  %p2755_p10 = por %p2754_p9, %p2753_p7 }
  0x46   : > { %p2749_p5 = pneg %p2748_p2 }
  0x48   : > { %p2756_p11 = pnand %p2755_p10, %p2749_p5 }
  0x4a   : > { %2759 = shalt.err (!%p2756_p11)
}
  0x4b   : > { %s3927_s12 = smov 64   ;;  %s3929_s28 = smov 4  }
  0x4c   : > { %2458 = dma.hbm_to_vmem [thread:$0]  (!%p3269_p6), %s3944_s3, 256, %s3265_s30, [#allocation9], %s3927_s12, %s3927_s12, %s3929_s28  }
  0x4d   : > { %s2760_s14 = scalar_lea.hbm %s3917_s5, 16 }
  0x4e   : > { %p2761_p12 = scmp.ne.s32.totalorder %s3917_s5, %s2760_s14  ;;  %p2767_p0 = scmp.lt.u32.totalorder %s2760_s14, %s3917_s5 }
  0x50   : > { %p2763_p4 = pnand %p2761_p12, %p3283_p8 }
  0x52   : > { %p2764_p13 = pneg %p2763_p4 }
  0x54   : > { %p2769_p2 = pnand %p2767_p0, %p2764_p13 }
  0x56   : > { %2772 = shalt.err (!%p2769_p2)
}
  0x57   : > { %s2773_s30 = scalar_lea.vmem %s3273_s15, 16  ;;  %s2780_s18 = scalar_lea.vmem %s3273_s15, 32 }
  0x58   : > { %p2774_p5 = scmp.ne.s32.totalorder %s3273_s15, %s2773_s30  ;;  %p2781_p10 = scmp.lt.s32.totalorder %s3273_s15, %s3273_s15 }
  0x59   : > { %p2782_p11 = scmp.lt.s32.totalorder %s2780_s18, %s2773_s30 }
  0x5a   : > { %p2776_p7 = pnand %p2774_p5, %p3283_p8 }
  0x5b   : > { %p2783_p12 = por %p2782_p11, %p2781_p10 }
  0x5c   : > { %p2777_p9 = pneg %p2776_p7 }
  0x5e   : > { %p2784_p4 = pnand %p2783_p12, %p2777_p9 }
  0x60   : > { %2787 = shalt.err (!%p2784_p4)
}
  0x61   : > { %2464 = dma.hbm_to_vmem [thread:$0]  (!%p3269_p6), %s3917_s5, 16, %s3273_s15, [#allocation12]  }
  0x62   : > { %s3139_s20 = smov [#allocation14]   ;;  %s3140_s14 = smov [#allocation17]  }
  0x63   : > { %s405_s29 = sshll.u32 %s3139_s20, 4  ;;  %s429_s16 = sshll.u32 %s3140_s14, 4  ;;  %s406_s29 = int_to_ptr.vmem [resolvable:$true] %s405_s29  ;;  %s430_s16 = int_to_ptr.vmem [resolvable:$true] %s429_s16 }
  0x64   : > { %s2788_s30 = scalar_lea.hbm %s3919_s7, 16 }
  0x65   : > { %p2789_p13 = scmp.ne.s32.totalorder %s3919_s7, %s2788_s30  ;;  %p2795_p5 = scmp.lt.u32.totalorder %s2788_s30, %s3919_s7 }
  0x67   : > { %p2791_p0 = pnand %p2789_p13, %p3283_p8 }
  0x69   : > { %p2792_p2 = pneg %p2791_p0 }
  0x6b   : > { %p2797_p7 = pnand %p2795_p5, %p2792_p2 }
  0x6d   : > { %2800 = shalt.err (!%p2797_p7)
}
  0x6e   : > { %s2801_s15 = scalar_lea.vmem %s406_s29, 16  ;;  %s2808_s19 = scalar_lea.vmem %s406_s29, 32 }
  0x6f   : > { %p2802_p9 = scmp.ne.s32.totalorder %s406_s29, %s2801_s15  ;;  %p2809_p12 = scmp.lt.s32.totalorder %s406_s29, %s406_s29 }
  0x70   : > { %p2810_p4 = scmp.lt.s32.totalorder %s2808_s19, %s2801_s15 }
  0x71   : > { %p2804_p10 = pnand %p2802_p9, %p3283_p8 }
  0x72   : > { %p2811_p1 = por %p2810_p4, %p2809_p12 }
  0x73   : > { %p2805_p11 = pneg %p2804_p10 }
  0x75   : > { %p2812_p3 = pnand %p2811_p1, %p2805_p11 }
  0x77   : > { %2815 = shalt.err (!%p2812_p3)
}
  0x78   : > { %2470 = dma.hbm_to_vmem [thread:$0]  (!%p3269_p6), %s3919_s7, 16, %s406_s29, [#allocation15]  }
  0x79   : > { %s2816_s17 = scalar_lea.hbm %s3921_s9, 16 }
  0x7a   : > { %p2817_p13 = scmp.ne.s32.totalorder %s3921_s9, %s2816_s17  ;;  %p2823_p3 = scmp.lt.u32.totalorder %s2816_s17, %s3921_s9 }
  0x7c   : > { %p2819_p0 = pnand %p2817_p13, %p3283_p8 }
  0x7e   : > { %p2820_p1 = pneg %p2819_p0 }
  0x80   : > { %p2825_p2 = pnand %p2823_p3, %p2820_p1 }
  0x82   : > { %2828 = shalt.err (!%p2825_p2)
}
  0x83   : > { %s2829_s15 = scalar_lea.vmem %s430_s16, 16  ;;  %s2836_s29 = scalar_lea.vmem %s430_s16, 32 }
  0x84   : > { %p2830_p5 = scmp.ne.s32.totalorder %s430_s16, %s2829_s15  ;;  %p2837_p10 = scmp.lt.s32.totalorder %s430_s16, %s430_s16 }
  0x85   : > { %p2838_p11 = scmp.lt.s32.totalorder %s2836_s29, %s2829_s15 }
  0x86   : > { %p2832_p7 = pnand %p2830_p5, %p3283_p8 }
  0x87   : > { %p2839_p12 = por %p2838_p11, %p2837_p10 }
  0x88   : > { %p2833_p9 = pneg %p2832_p7 }
  0x8a   : > { %p2840_p4 = pnand %p2839_p12, %p2833_p9 }
  0x8c   : > { %2843 = shalt.err (!%p2840_p4)
}
  0x8d   : > { %2476 = dma.hbm_to_vmem [thread:$0]  (!%p3269_p6), %s3921_s9, 16, %s430_s16, [#allocation18]  }
  0x8e   : > { %s3141_s20 = smov [#allocation7]   ;;  %s3142_s14 = smov [#allocation10]  }
  0x8f   : > { %s346_s28 = sshll.u32 %s3141_s20, 4  ;;  %s369_s17 = sshll.u32 %s3142_s14, 4  ;;  %s347_s28 = int_to_ptr.vmem [resolvable:$true] %s346_s28  ;;  %s370_s17 = int_to_ptr.vmem [resolvable:$true] %s369_s17 }
  0x90   : > { %s3945_s2 = sld [smem:[#allocation33_spill]] }
  0x96   : > { %s2844_s18 = scalar_lea.hbm %s3945_s2, 16 }
  0x97   : > { %p2845_p13 = scmp.ne.s32.totalorder %s3945_s2, %s2844_s18  ;;  %p2851_p3 = scmp.lt.u32.totalorder %s2844_s18, %s3945_s2 }
  0x99   : > { %p2847_p0 = pnand %p2845_p13, %p3283_p8 }
  0x9b   : > { %p2848_p1 = pneg %p2847_p0 }
  0x9d   : > { %p2853_p2 = pnand %p2851_p3, %p2848_p1 }
  0x9f   : > { %2856 = shalt.err (!%p2853_p2)
}
  0xa0   : > { %s2857_s16 = scalar_lea.vmem %s347_s28, 16  ;;  %s2864_s12 = scalar_lea.vmem %s347_s28, 32 }
  0xa1   : > { %p2858_p5 = scmp.ne.s32.totalorder %s347_s28, %s2857_s16  ;;  %p2865_p10 = scmp.lt.s32.totalorder %s347_s28, %s347_s28 }
  0xa2   : > { %p2866_p11 = scmp.lt.s32.totalorder %s2864_s12, %s2857_s16 }
  0xa3   : > { %p2860_p7 = pnand %p2858_p5, %p3283_p8 }
  0xa4   : > { %p2867_p12 = por %p2866_p11, %p2865_p10 }
  0xa5   : > { %p2861_p9 = pneg %p2860_p7 }
  0xa7   : > { %p2868_p4 = pnand %p2867_p12, %p2861_p9 }
  0xa9   : > { %2871 = shalt.err (!%p2868_p4)
}
  0xaa   : > { %2455 = dma.hbm_to_vmem [thread:$0]  (!%p3269_p6), %s3945_s2, 16, %s347_s28, [#allocation6]  }
  0xab   : > { %s3946_s4 = sld [smem:[#allocation35_spill]] }
  0xb1   : > { %s2872_s18 = scalar_lea.hbm %s3946_s4, 256 }
  0xb2   : > { %p2873_p13 = scmp.ne.s32.totalorder %s3946_s4, %s2872_s18  ;;  %p2879_p3 = scmp.lt.u32.totalorder %s2872_s18, %s3946_s4 }
  0xb4   : > { %p2875_p0 = pnand %p2873_p13, %p3283_p8 }
  0xb6   : > { %p2876_p1 = pneg %p2875_p0 }
  0xb8   : > { %p2881_p2 = pnand %p2879_p3, %p2876_p1 }
  0xba   : > { %2884 = shalt.err (!%p2881_p2)
}
  0xbb   : > { %s2885_s16 = scalar_lea.vmem %s370_s17, 256  ;;  %p2893_p10 = scmp.lt.s32.totalorder %s370_s17, %s370_s17 }
  0xbc   : > { %p2886_p5 = scmp.ne.s32.totalorder %s370_s17, %s2885_s16  ;;  %p2894_p11 = scmp.lt.s32.totalorder %s2885_s16, %s2885_s16 }
  0xbe   : > { %p2888_p7 = pnand %p2886_p5, %p3283_p8  ;;  %p2895_p12 = por %p2894_p11, %p2893_p10 }
  0xc0   : > { %p2889_p9 = pneg %p2888_p7 }
  0xc2   : > { %p2896_p4 = pnand %p2895_p12, %p2889_p9 }
  0xc4   : > { %2899 = shalt.err (!%p2896_p4)
}
  0xc5   : > { %s3947_s28 = smov 4   ;;  %s3948_s12 = smov 64  }
  0xc6   : > { %2461 = dma.hbm_to_vmem [thread:$0]  (!%p3269_p6), %s3946_s4, 256, %s370_s17, [#allocation9], %s3948_s12, %s3948_s12, %s3947_s28  }
  0xc7   : > { %s3143_s26 = smov [#allocation13]   ;;  %s3144_s18 = smov [#allocation16]  }
  0xc8   : > { %s394_s30 = sshll.u32 %s3143_s26, 4  ;;  %s415_s1 = sshll.u32 %s3144_s18, 4  ;;  %s395_s30 = int_to_ptr.vmem [resolvable:$true] %s394_s30  ;;  %s416_s1 = int_to_ptr.vmem [resolvable:$true] %s415_s1 }
  0xc9   : > { %s2900_s19 = scalar_lea.hbm %s3918_s6, 16 }
  0xca   : > { %p2901_p13 = scmp.ne.s32.totalorder %s3918_s6, %s2900_s19  ;;  %p2907_p3 = scmp.lt.u32.totalorder %s2900_s19, %s3918_s6 }
  0xcc   : > { %p2903_p0 = pnand %p2901_p13, %p3283_p8 }
  0xce   : > { %p2904_p1 = pneg %p2903_p0 }
  0xd0   : > { %p2909_p2 = pnand %p2907_p3, %p2904_p1 }
  0xd2   : > { %2912 = shalt.err (!%p2909_p2)
}
  0xd3   : > { %s2913_s17 = scalar_lea.vmem %s395_s30, 16  ;;  %s2920_s14 = scalar_lea.vmem %s395_s30, 32 }
  0xd4   : > { %p2914_p5 = scmp.ne.s32.totalorder %s395_s30, %s2913_s17  ;;  %p2921_p10 = scmp.lt.s32.totalorder %s395_s30, %s395_s30 }
  0xd5   : > { %p2922_p11 = scmp.lt.s32.totalorder %s2920_s14, %s2913_s17 }
  0xd6   : > { %p2916_p7 = pnand %p2914_p5, %p3283_p8 }
  0xd7   : > { %p2923_p12 = por %p2922_p11, %p2921_p10 }
  0xd8   : > { %p2917_p9 = pneg %p2916_p7 }
  0xda   : > { %p2924_p4 = pnand %p2923_p12, %p2917_p9 }
  0xdc   : > { %2927 = shalt.err (!%p2924_p4)
}
  0xdd   : > { %2467 = dma.hbm_to_vmem [thread:$0]  (!%p3269_p6), %s3918_s6, 16, %s395_s30, [#allocation12]  }
  0xde   : > { %s2928_s15 = scalar_lea.hbm %s3920_s8, 256 }
  0xdf   : > { %p2929_p13 = scmp.ne.s32.totalorder %s3920_s8, %s2928_s15  ;;  %p2935_p3 = scmp.lt.u32.totalorder %s2928_s15, %s3920_s8 }
  0xe1   : > { %p2931_p0 = pnand %p2929_p13, %p3283_p8 }
  0xe3   : > { %p2932_p1 = pneg %p2931_p0 }
  0xe5   : > { %p2937_p2 = pnand %p2935_p3, %p2932_p1 }
  0xe7   : > { %2940 = shalt.err (!%p2937_p2)
}
  0xe8   : > { %s2941_s17 = scalar_lea.vmem %s416_s1, 256  ;;  %p2949_p10 = scmp.lt.s32.totalorder %s416_s1, %s416_s1 }
  0xe9   : > { %p2942_p5 = scmp.ne.s32.totalorder %s416_s1, %s2941_s17  ;;  %p2950_p11 = scmp.lt.s32.totalorder %s2941_s17, %s2941_s17 }
  0xeb   : > { %p2944_p7 = pnand %p2942_p5, %p3283_p8  ;;  %p2951_p12 = por %p2950_p11, %p2949_p10 }
  0xed   : > { %p2945_p9 = pneg %p2944_p7 }
  0xef   : > { %p2952_p4 = pnand %p2951_p12, %p2945_p9 }
  0xf1   : > { %2955 = shalt.err (!%p2952_p4)
}
  0xf2   : > { %2473 = dma.hbm_to_vmem [thread:$0]  (!%p3269_p6), %s3920_s8, 256, %s416_s1, [#allocation15], %s3948_s12, %s3948_s12, %s3947_s28  }
  0xf3   : > { %s3145_s2 = smov [#allocation19]   ;;  %s3146_s3 = smov [#allocation20]  }
  0xf4   : > { %s439_s26 = sshll.u32 %s3145_s2, 4  ;;  %s453_s18 = sshll.u32 %s3146_s3, 4  ;;  %s440_s26 = int_to_ptr.vmem [resolvable:$true] %s439_s26  ;;  %s454_s18 = int_to_ptr.vmem [resolvable:$true] %s453_s18 }
  0xf5   : > { %s2956_s19 = scalar_lea.hbm %s3922_s10, 512 }
  0xf6   : > { %p2957_p13 = scmp.ne.s32.totalorder %s3922_s10, %s2956_s19  ;;  %p2963_p3 = scmp.lt.u32.totalorder %s2956_s19, %s3922_s10 }
  0xf8   : > { %p2959_p0 = pnand %p2957_p13, %p3283_p8 }
  0xfa   : > { %p2960_p1 = pneg %p2959_p0 }
  0xfc   : > { %p2965_p2 = pnand %p2963_p3, %p2960_p1 }
  0xfe   : > { %2968 = shalt.err (!%p2965_p2)
}
  0xff   : > { %s2969_s1 = scalar_lea.vmem %s440_s26, 512  ;;  %p2977_p10 = scmp.lt.s32.totalorder %s440_s26, %s440_s26 }
 0x100   : > { %p2970_p5 = scmp.ne.s32.totalorder %s440_s26, %s2969_s1  ;;  %p2978_p11 = scmp.lt.s32.totalorder %s2969_s1, %s2969_s1 }
 0x102   : > { %p2972_p7 = pnand %p2970_p5, %p3283_p8  ;;  %p2979_p12 = por %p2978_p11, %p2977_p10 }
 0x104   : > { %p2973_p9 = pneg %p2972_p7 }
 0x106   : > { %p2980_p4 = pnand %p2979_p12, %p2973_p9 }
 0x108   : > { %2983 = shalt.err (!%p2980_p4)
}
 0x109   : > { %2479 = dma.hbm_to_vmem [thread:$0]  (!%p3269_p6), %s3922_s10, 512, %s440_s26, [#allocation18], %s3948_s12, %s3948_s12, %s3947_s28  }
 0x10a   : > { %s2984_s29 = scalar_lea.hbm %s3923_s11, 16 }
 0x10b   : > { %p2985_p13 = scmp.ne.s32.totalorder %s3923_s11, %s2984_s29  ;;  %p2991_p3 = scmp.lt.u32.totalorder %s2984_s29, %s3923_s11 }
 0x10d   : > { %p2987_p0 = pnand %p2985_p13, %p3283_p8 }
 0x10f   : > { %p2988_p1 = pneg %p2987_p0 }
 0x111   : > { %p2993_p2 = pnand %p2991_p3, %p2988_p1 }
 0x113   : > { %2996 = shalt.err (!%p2993_p2)
}
 0x114   : > { %s2997_s30 = scalar_lea.vmem %s454_s18, 16  ;;  %s3004_s26 = scalar_lea.vmem %s454_s18, 32 }
 0x115   : > { %p2998_p5 = scmp.ne.s32.totalorder %s454_s18, %s2997_s30  ;;  %p3005_p10 = scmp.lt.s32.totalorder %s454_s18, %s454_s18 }
 0x116   : > { %p3006_p11 = scmp.lt.s32.totalorder %s3004_s26, %s2997_s30 }
 0x117   : > { %p3000_p7 = pnand %p2998_p5, %p3283_p8 }
 0x118   : > { %p3007_p12 = por %p3006_p11, %p3005_p10 }
 0x119   : > { %p3001_p9 = pneg %p3000_p7 }
 0x11b   : > { %p3008_p4 = pnand %p3007_p12, %p3001_p9 }
 0x11d   : > { %3011 = shalt.err (!%p3008_p4)
}
 0x11e   : > { %2482 = dma.hbm_to_vmem [thread:$0]  (!%p3269_p6), %s3923_s11, 16, %s454_s18, [#allocation21]  }
 0x11f   : > { %s2147_s25 = sadd.s32 4294967294, %s3132_s24   ;;  %s3510_s13 = sadd.s32 1, %s3132_s24  }
 0x120   : > { %s41_s2 = sadd.s32 1, %s3128_s23  ;;  %s38_s3 = ssub.s32 %s3132_s24, %s3510_s13 }
 0x121   : > { %p48_p8 = scmp.ne.s32.totalorder %s3128_s23, %s3124_s22  ;;  %p39_p13 = scmp.eq.s32.totalorder %s38_s3, 0 }
 0x122   : > { %p49_p0 = scmp.eq.s32.totalorder %s3132_s24, 0  ;;  %p54_p1 = scmp.ne.s32.totalorder %s3124_s22, %s3120_s21 }
 0x123   : > { %p309_p3 = scmp.eq.s32.totalorder %s3251_s27, 1  ;;  %p3949_p5 = scmp.eq.s32.totalorder %s3251_s27, 0 }
 0x124   : > { %s3522_s15 = scalar_select %p39_p13, %s3128_s23, %s41_s2  }
 0x125   : > { %p50_p2 = por %p49_p0, %p48_p8  ;;  %p3526_p7 = por %p3949_p5, %p54_p1 }
 0x126   : > { %p3530_p6 = por %p309_p3, %p48_p8  ;;  %p315_p9 = scmp.eq.s32.totalorder %s2147_s25, 1 }
 0x127   : > { %p2502_p10 = scmp.lt.s32.totalorder %s3132_s24, 2  ;;  %s464_s19 = sand.u32 1, %s3128_s23  }
 0x128   : > { %s3951_s18 = scalar_select %p3530_p6, 1, 0 }
 0x129   : > { %p3536_p11 = por %p315_p9, %p54_p1  ;;  %s2161_s20 = sshll.u32 %s464_s19, 4 }
 0x12a   : > { %s2228_s17 = sshll.u32 %s3132_s24, 8  ;;  %s468_s14 = scalar_lea.vmem [#allocation2], %s2161_s20 }
 0x12b   : > { %s3952_s16 = scalar_select %p3536_p11, 1, 0 }
 0x12c   : > { %s3544_s1 = scalar_lea.hbm %s3912_s0, %s2228_s17  ;;  %s475_s2 = sshll.u32 %s468_s14, 4  ;;  %s3550_s2 = int_to_ptr.vmem [resolvable:$true] %s475_s2 }
 0x12d   : > { %p3546_p12 = pnand %p2502_p10, %p50_p2  ;;  %s3552_s3 = scalar_lea.sflag [#allocation3], %s464_s19 }
 0x12e   : > { %s3012_s4 = scalar_lea.hbm %s3544_s1, 256  ;;  %s3017_s30 = scalar_lea.hbm %s3912_s0, 512 }
 0x12f   : > { %p3013_p4 = scmp.ne.s32.totalorder %s3544_s1, %s3012_s4  ;;  %p3014_p8 = pneg %p3546_p12 }
 0x130   : > { %p3018_p1 = scmp.lt.u32.totalorder %s3544_s1, %s3912_s0  ;;  %p3019_p3 = scmp.lt.u32.totalorder %s3017_s30, %s3012_s4 }
 0x131   : > { %p3015_p13 = pnand %p3014_p8, %p3013_p4  ;;  %p3021_p5 = scmp.lt.u32.totalorder %s3012_s4, %s3544_s1 }
 0x132   : > { %p3020_p2 = por %p3019_p3, %p3018_p1 }
 0x133   : > { %p3016_p0 = pneg %p3015_p13 }
 0x134   : > { %p3022_p9 = por %p3021_p5, %p3020_p2 }
 0x136   : > { %p3023_p10 = pnand %p3022_p9, %p3016_p0 }
 0x138   : > { %3026 = shalt.err (!%p3023_p10)
}
 0x139   : > { %s3027_s19 = scalar_lea.vmem %s3550_s2, 256  ;;  %s3147_s20 = smov [#allocation2]  }
 0x13a   : > { %p3028_p4 = scmp.ne.s32.totalorder %s3550_s2, %s3027_s19  ;;  %s3032_s17 = sshll.u32 %s3147_s20, 4  ;;  %s3033_s17 = int_to_ptr.vmem [resolvable:$false] %s3032_s17 }
 0x13b   : > { %s3034_s26 = scalar_lea.vmem %s3033_s17, 512  ;;  %p3035_p6 = scmp.lt.s32.totalorder %s3550_s2, %s3033_s17 }
 0x13c   : > { %p3030_p13 = pnand %p3028_p4, %p3014_p8  ;;  %p3036_p1 = scmp.lt.s32.totalorder %s3034_s26, %s3027_s19 }
 0x13e   : > { %p3031_p11 = pneg %p3030_p13  ;;  %p3037_p3 = por %p3036_p1, %p3035_p6 }
 0x140   : > { %p3038_p2 = pnand %p3037_p3, %p3031_p11 }
 0x142   : > { %3041 = shalt.err (!%p3038_p2)
}
 0x143   : > { %2486 = dma.hbm_to_vmem [thread:$0]  (!%p3546_p12), %s3544_s1, 256, %s3550_s2, %s3552_s3, %s3948_s12, %s3948_s12, %s3947_s28  }
 0x144   : > { %s3954_s4 = sld [smem:[#allocation31_spill]] }
 0x14a   : > { %p3955_p8 = scmp.ne.s32.totalorder %s3954_s4, 0 }
 0x14b   : > { %s3586_s30 = sand.u32 (!%p3955_p8), 1, %s3124_s22  }
 0x14c   : > { %487 = sbr.rel (%p3955_p8) target bundleno = 4619 (0x120b), region = 68  ;;  %s2165_s14 = sshll.u32 (!%p3955_p8), %s3586_s30, 4 }
 0x14d   : > { %s490_s19 = scalar_lea.sflag (!%p3955_p8), [#allocation3], %s3586_s30  ;;  %s493_s25 = scalar_lea.vmem (!%p3955_p8), [#allocation2], %s2165_s14 }
 0x153   : > { %3087 = dma.done.wait (%p3526_p7), %s490_s19, 256  }
 0x154   : > { %3089 = vsyncadd (%p3526_p7), %s490_s19, 4294967040  ;;  %p3956_p6 = scmp.eq.s32.totalorder %s3251_s27, 0 }
 0x156   : > { %3091 = dma.done.wait (%p3956_p6), [#allocation6], 32   ;;  %p3957_p11 = pmov %p3956_p6 }
 0x157   : > { %p3958_p12 = pmov %p3956_p6 }
 0x158   : > { %3093 = vsyncadd (%p3957_p11), [#allocation6], 4294967264 }
 0x159   : > { %3095 = dma.done.wait (%p3958_p12), [#allocation9], 512   ;;  %p3959_p0 = pmov %p3956_p6 }
 0x15b   : > { %3097 = vsyncadd (%p3959_p0), [#allocation9], 4294966784  ;;  %p3960_p5 = pmov %p3959_p0 }
 0x15c   : > { %p3961_p9 = pmov %p3959_p0 }
 0x15d   : > { %3099 = dma.done.wait (%p3960_p5), [#allocation12], 32  }
 0x15e   : > { %3101 = vsyncadd (%p3961_p9), [#allocation12], 4294967264  ;;  %p3962_p7 = pmov %p3959_p0 }
 0x15f   : > { %p3963_p10 = pmov %p3959_p0 }
 0x160   : > { %3103 = dma.done.wait (%p3962_p7), [#allocation15], 272  }
 0x161   : > { %3105 = vsyncadd (%p3963_p10), [#allocation15], 4294967024  ;;  %p3964_p4 = pmov %p3959_p0 }
 0x162   : > { %p3965_p13 = pmov %p3959_p0 }
 0x163   : > { %3107 = dma.done.wait (%p3964_p4), [#allocation18], 528  }
 0x164   : > { %3109 = vsyncadd (%p3965_p13), [#allocation18], 4294966768  ;;  %p3966_p1 = pmov %p3959_p0 }
 0x165   : > { %p3967_p3 = pmov %p3959_p0 }
 0x166   : > { %3111 = dma.done.wait (%p3966_p1), [#allocation21], 16  }
 0x167   : > { %3113 = vsyncadd (%p3967_p3), [#allocation21], 4294967280  ;;  %v2235_v0 = vld [vmem:[%s493_s25] sm:$0xff]   ;;  %vm589_vm0 = vcmask 261120   ;;  %v2242_v1 = vld [vmem:[%s493_s25 + $0x8] sm:$0xff]   ;;  %vm747_vm1 = vcmask 64512  }
 0x168   : > { %v3620_v2 = vunpack.c.l.bf16 %v2235_v0  ;;  %v3622_v3 = vunpack.c.l.bf16 %v2242_v1  ;;  %v3624_v4 = vunpack.c.h.bf16 %v2235_v0  ;;  %v3626_v5 = vunpack.c.h.bf16 %v2242_v1  ;;  %v2606_v30 = vld [vmem:[#allocation8] sm:$0xff]   ;;  %v2607_v31 = vld [vmem:[#allocation8 + $0x8] sm:$0xff]   ;;  %v2178_v46 = vld [vmem:[#allocation5] ss:$0 sm:$0xff]  ;;  %s3148_s28 = smov 96   ;;  %s3149_s12 = smov 64  }
 0x169   : > { %2293 = vmatprep.subr.bf16.mxu0 %v2606_v30  ;;  %v2179_v52 = vld [vmem:[#allocation7] ss:$0 sm:$0xff]  ;;  %s3150_s29 = smov 88   ;;  %s3151_s1 = smov 120   ;;  %vm1528_vm3 = vcmask 130048   ;;  %vm1533_vm4 = vcmask 195584  }
 0x16a   : > { %v590_v6 = vsel %vm589_vm0, %v3620_v2, 0.0  ;;  %v596_v7 = vsel %vm589_vm0, %v3622_v3, 0.0  ;;  %v593_v8 = vsel %vm589_vm0, %v3624_v4, 0.0  ;;  %v599_v9 = vsel %vm589_vm0, %v3626_v5, 0.0  ;;  %2294 = vmatpush3.bf16.msra.mxu0 %v2606_v30  ;;  %s3152_s2 = smov 56   ;;  %s3153_s3 = smov 80  }
 0x16b   : > { %591 = vadd.xlane.f32.xlu0 %v590_v6  ;;  %597 = vadd.xlane.f32.xlu1 %v596_v7  ;;  %s3154_s20 = smov 112   ;;  %s3155_s17 = smov 48   ;;  %vm1853_vm5 = vcmask 523264   ;;  %vm1950_vm6 = vcmask 257024  }
 0x16c   : > { %2295 = vmatprep.subr.bf16.mxu0 %v2607_v31  ;;  %s3156_s26 = smov 72   ;;  %s3157_s4 = smov 104  }
 0x16d   : > { %s3158_s19 = smov 40   ;;  %s3159_s25 = smov 8  }
 0x16e   : > { %2296 = vmatpush3.bf16.msra.mxu0 %v2607_v31  ;;  %p3969_p8 = scmp.ne.s32.totalorder %s3951_s18, 0 }
 0x16f   : > { %594 = vadd.xlane.f32.xlu0 %v593_v8  ;;  %600 = vadd.xlane.f32.xlu1 %v599_v9 }
 0x1f8   : > { %v592_v10 = vpop.xlane.xlu0 %591  ;;  %v598_v11 = vpop.xlane.xlu1 %597 }
 0x1f9   : > { %v603_v12 = vmul.f32 0.03125, %v592_v10  ;;  %v605_v13 = vmul.f32 0.03125, %v598_v11 }
 0x1fb   : > { %v607_v14 = vsub.f32 %v3620_v2, %v603_v12  ;;  %v609_v15 = vsub.f32 %v3622_v3, %v605_v13 }
 0x1fc   : > { %v595_v16 = vpop.xlane.xlu0 %594  ;;  %v601_v17 = vpop.xlane.xlu1 %600 }
 0x1fd   : > { %v604_v18 = vmul.f32 0.03125, %v595_v16  ;;  %v606_v19 = vmul.f32 0.03125, %v601_v17  ;;  %v611_v20 = vmul.f32 %v607_v14, %v607_v14  ;;  %v613_v21 = vmul.f32 %v609_v15, %v609_v15 }
 0x1ff   : > { %v608_v22 = vsub.f32 %v3624_v4, %v604_v18  ;;  %v610_v23 = vsub.f32 %v3626_v5, %v606_v19  ;;  %v615_v24 = vsel %vm589_vm0, %v611_v20, 0.0  ;;  %v621_v25 = vsel %vm589_vm0, %v613_v21, 0.0 }
 0x200   : > { %616 = vadd.xlane.f32.xlu0 %v615_v24 }
 0x201   : > { %v612_v26 = vmul.f32 %v608_v22, %v608_v22  ;;  %v614_v27 = vmul.f32 %v610_v23, %v610_v23 }
 0x203   : > { %v618_v28 = vsel %vm589_vm0, %v612_v26, 0.0  ;;  %v624_v29 = vsel %vm589_vm0, %v614_v27, 0.0 }
 0x204   : > { %622 = vadd.xlane.f32.xlu0 %v621_v25  ;;  %619 = vadd.xlane.f32.xlu1 %v618_v28 }
 0x208   : > { %625 = vadd.xlane.f32.xlu1 %v624_v29 }
 0x28d   : > { %v617_v32 = vpop.xlane.xlu0 %616 }
 0x28e   : > { %v627_v33 = vmul.f32 0.03125, %v617_v32 }
 0x290   : > { %v631_v34 = vadd.f32 1e-05, %v627_v33 }
 0x291   : > { %v620_v35 = vpop.xlane.xlu1 %619  ;;  %v623_v36 = vpop.xlane.xlu0 %622 }
 0x292   : > { %2616 = vrsqrt.f32 %v631_v34  ;;  %v628_v37 = vmul.f32 0.03125, %v620_v35  ;;  %v629_v38 = vmul.f32 0.03125, %v623_v36 }
 0x294   : > { %v632_v39 = vadd.f32 1e-05, %v628_v37  ;;  %v633_v40 = vadd.f32 1e-05, %v629_v38 }
 0x295   : > { %v626_v41 = vpop.xlane.xlu1 %625 }
 0x296   : > { %2618 = vrsqrt.f32 %v632_v39  ;;  %v630_v42 = vmul.f32 0.03125, %v626_v41 }
 0x297   : > { %2620 = vrsqrt.f32 %v633_v40 }
 0x298   : > { %v634_v43 = vadd.f32 1e-05, %v630_v42 }
 0x29a   : > { %2622 = vrsqrt.f32 %v634_v43 }
 0x29c   : > { %v2617_v44 = vpop.eup %2616 }
 0x29d   : > { %v639_v45 = vmul.f32 %v2617_v44, %v607_v14  ;;  %v736_v14 = vlaneseq }
 0x29f   : > { %v649_v50 = vmul.f32 %v2178_v46, %v639_v45 }
 0x2a0   : > { %v2619_v47 = vpop.eup %2618 }
 0x2a1   : > { %v2621_v48 = vpop.eup %2620  ;;  %v640_v49 = vmul.f32 %v2619_v47, %v608_v22  ;;  %v659_v56 = vadd.f32 %v2179_v52, %v649_v50 }
 0x2a2   : > { %v641_v51 = vmul.f32 %v2621_v48, %v609_v15  ;;  %v3661_v15 = vand.u32 127, %v736_v14 }
 0x2a3   : > { %v650_v53 = vmul.f32 %v2178_v46, %v640_v49 }
 0x2a4   : > { %v2623_v54 = vpop.eup %2622  ;;  %v651_v58 = vmul.f32 %v2178_v46, %v641_v51  ;;  %vm738_vm2 = vcmp.lt.s32.totalorder %v3661_v15, 17 }
 0x2a5   : > { %v642_v55 = vmul.f32 %v2623_v54, %v610_v23  ;;  %v660_v57 = vadd.f32 %v2179_v52, %v650_v53 }
 0x2a6   : > { %v661_v61 = vadd.f32 %v2179_v52, %v651_v58 }
 0x2a7   : > { %v663_v59 = vpack.c.bf16 %v660_v57, %v659_v56  ;;  %v652_v60 = vmul.f32 %v2178_v46, %v642_v55 }
 0x2a9   : > { %2297 = vmatprep.mubr.msk.bf16.mxu0 %vm589_vm0, %v663_v59  ;;  %v662_v62 = vadd.f32 %v2179_v52, %v652_v60 }
 0x2ab   : > { %v664_v63 = vpack.c.bf16 %v662_v62, %v661_v61 }
 0x2ad   : > { %2298 = vmatmul.mubr.msk.bf16.vlgmr.msra.gmra.mrb[0].mxu0 %vm589_vm0, %v664_v63 }
 0x380   : > { %v2299_v0 = vpop.f32.mrb[0].mxu0 }
 0x381   : > { %v721_v1 = vpop.f32.mrb[1].mxu0 }
 0x382   : > { %v2300_v6 = vpop.f32.mrb[2].mxu0 }
 0x383   : > { %v3646_v7 = vpack.c.bf16 %v2300_v6, %v2299_v0  ;;  %v724_v8 = vpop.f32.mrb[3].mxu0 }
 0x384   : > { %v3648_v9 = vpack.c.bf16 %v724_v8, %v721_v1 }
 0x385   : > { %745 = vrot.lane.b32.xlu1 %v3646_v7, %s3148_s28 }
 0x386   : > { %743 = vrot.lane.b32.xlu0 %v3648_v9, %s3148_s28  ;;  %2305 = vmatprep.mubr.msk.bf16.mxu1 %vm747_vm1, %v3648_v9  ;;  %s3160_s28 = smov 16  }
 0x3f7   : > { %v746_v12 = vpop.permute.xlu1 %745 }
 0x3f8   : > { %v744_v10 = vpop.permute.xlu0 %743  ;;  %v758_v13 = vsel %vm747_vm1, %v746_v12, 0 }
 0x3f9   : > { %2393 = vmatprep.subr.msk.bf16.mxu1 %vm747_vm1, %v744_v10  ;;  %v755_v11 = vsel %vm747_vm1, %v744_v10, 0 }
 0x3fa   : > { %2302 = vmatpush3.bf16.xpose.msra.mxu1 %v755_v11 }
 0x3fb   : > { %2394 = vmatprep.subr.msk.bf16.mxu1 %vm747_vm1, %v746_v12 }
 0x402   : > { %2304 = vmatpush3.bf16.xpose.msra.mxu1 %v758_v13 }
 0x409   : > { %2306 = vmatmul.mubr.msk.bf16.vlgmr.msra.gmra.mrb[0].mxu1 %vm747_vm1, %v3646_v7 }
 0x4dc   : > { %v2307_v16 = vpop.f32.mrb[0].mxu1 }
 0x4dd   : > { %v794_v17 = vpop.f32.mrb[1].mxu1  ;;  %v811_v22 = vmul.f32 0.35355338, %v2307_v16 }
 0x4de   : > { %v809_v18 = vmul.f32 0.35355338, %v794_v17  ;;  %v2308_v19 = vpop.f32.mrb[2].mxu1 }
 0x4df   : > { %v812_v20 = vmul.f32 0.35355338, %v2308_v19  ;;  %v797_v21 = vpop.f32.mrb[3].mxu1  ;;  %v815_v29 = vsel %vm738_vm2, %v811_v22, -1e+30 }
 0x4e0   : > { %v810_v23 = vmul.f32 0.35355338, %v797_v21  ;;  %v813_v24 = vsel %vm738_vm2, %v809_v18, -1e+30  ;;  %v823_v31 = vsel %vm589_vm0, %v815_v29, -inf }
 0x4e1   : > { %v817_v25 = vsel %vm589_vm0, %v813_v24, -inf  ;;  %v816_v27 = vsel %vm738_vm2, %v812_v20, -1e+30 }
 0x4e2   : > { %818 = vmax.xlane.f32.xlu1 %v817_v25  ;;  %v814_v26 = vsel %vm738_vm2, %v810_v23, -1e+30  ;;  %v826_v30 = vsel %vm589_vm0, %v816_v27, -inf }
 0x4e3   : > { %v820_v28 = vsel %vm589_vm0, %v814_v26, -inf }
 0x4e4   : > { %821 = vmax.xlane.f32.xlu0 %v820_v28 }
 0x4e6   : > { %827 = vmax.xlane.f32.xlu1 %v826_v30 }
 0x4e8   : > { %824 = vmax.xlane.f32.xlu0 %v823_v31 }
 0x4f7   : > { %865 = vrot.lane.b32.xlu1 %v3646_v7, %s3149_s12 }
 0x56f   : > { %v819_v32 = vpop.xlane.xlu1 %818 }
 0x570   : > { %v829_v36 = vsub.f32 %v813_v24, %v819_v32 }
 0x571   : > { %v822_v33 = vpop.xlane.xlu0 %821 }
 0x572   : > { %v830_v34 = vsub.f32 %v814_v26, %v822_v33  ;;  %v833_v42 = vmul.f32 1.442695, %v829_v36 }
 0x573   : > { %v828_v35 = vpop.xlane.xlu1 %827 }
 0x574   : > { %v832_v37 = vsub.f32 %v816_v27, %v828_v35  ;;  %v835_v38 = vmul.f32 1.442695, %v830_v34 }
 0x575   : > { %v825_v39 = vpop.xlane.xlu0 %824 }
 0x576   : > { %v839_v40 = vmul.f32 1.442695, %v832_v37  ;;  %v831_v41 = vsub.f32 %v815_v29, %v825_v39 }
 0x577   : > { %v866_v52 = vpop.permute.xlu1 %865 }
 0x578   : > { %2624 = vpow2.f32 %v839_v40  ;;  %v837_v43 = vmul.f32 1.442695, %v831_v41 }
 0x579   : > { %2626 = vpow2.f32 %v835_v38 }
 0x57a   : > { %2628 = vpow2.f32 %v837_v43 }
 0x57b   : > { %2630 = vpow2.f32 %v833_v42 }
 0x582   : > { %v2625_v44 = vpop.eup %2624 }
 0x583   : > { %v2627_v45 = vpop.eup %2626  ;;  %v850_v46 = vsel %vm589_vm0, %v2625_v44, 0.0 }
 0x584   : > { %v2629_v47 = vpop.eup %2628  ;;  %851 = vadd.xlane.f32.xlu1 %v850_v46  ;;  %v844_v50 = vsel %vm589_vm0, %v2627_v45, 0.0 }
 0x585   : > { %v847_v48 = vsel %vm589_vm0, %v2629_v47, 0.0  ;;  %v2631_v49 = vpop.eup %2630 }
 0x586   : > { %848 = vadd.xlane.f32.xlu0 %v847_v48  ;;  %v841_v51 = vsel %vm589_vm0, %v2631_v49, 0.0 }
 0x588   : > { %845 = vadd.xlane.f32.xlu1 %v844_v50 }
 0x58a   : > { %842 = vadd.xlane.f32.xlu0 %v841_v51 }
 0x599   : > { %928 = vrot.lane.b32.xlu1 %v3648_v9, %s3150_s29 }
 0x59d   : > { %930 = vrot.lane.b32.xlu1 %v3646_v7, %s3150_s29  ;;  %s3161_s29 = smov 24  }
 0x5a0   : > { %863 = vrot.lane.b32.xlu0 %v3648_v9, %s3149_s12 }
 0x5a1   : > { %926 = vrot.lane.b32.xlu1 %v3646_v7, %s3151_s1 }
 0x5a4   : > { %924 = vrot.lane.b32.xlu0 %v3648_v9, %s3151_s1  ;;  %s577_s1 = scalar_lea.vmem [#allocation22], %s2165_s14  ;;  %s2233_s14 = sshll.u32 %s3251_s27, 8 }
 0x5a5   : > { %s1956_s27 = scalar_lea.sflag [#allocation4], %s3586_s30 }
 0x611   : > { %v852_v53 = vpop.xlane.xlu1 %851 }
 0x613   : > { %v849_v54 = vpop.xlane.xlu0 %848 }
 0x614   : > { %2632 = vrcp.f32 %v849_v54 }
 0x615   : > { %v846_v55 = vpop.xlane.xlu1 %845 }
 0x616   : > { %2634 = vrcp.f32 %v846_v55 }
 0x617   : > { %2636 = vrcp.f32 %v852_v53  ;;  %v843_v56 = vpop.xlane.xlu0 %842 }
 0x618   : > { %2638 = vrcp.f32 %v843_v56 }
 0x619   : > { %v929_v61 = vpop.permute.xlu1 %928 }
 0x61a   : > { %v939_v12 = vsel %vm747_vm1, %v929_v61, 0 }
 0x61b   : > { %v864_v57 = vpop.permute.xlu0 %863 }
 0x61c   : > { %2309 = vmatprep.subr.bf16.mxu0 %v864_v57 }
 0x61d   : > { %2310 = vmatpush3.bf16.msra.mxu0 %v864_v57  ;;  %v931_v13 = vpop.permute.xlu1 %930 }
 0x61e   : > { %2311 = vmatprep.subr.bf16.mxu0 %v866_v52  ;;  %v2633_v58 = vpop.eup %2632  ;;  %v942_v16 = vsel %vm747_vm1, %v931_v13, 0 }
 0x61f   : > { %v859_v63 = vmul.f32 %v2633_v58, %v2629_v47  ;;  %v925_v11 = vpop.permute.xlu0 %924 }
 0x620   : > { %v2635_v59 = vpop.eup %2634 }
 0x621   : > { %v2637_v60 = vpop.eup %2636  ;;  %2312 = vmatpush3.bf16.msra.mxu0 %v866_v52  ;;  %v858_v1 = vmul.f32 %v2635_v59, %v2627_v45  ;;  %v927_v17 = vpop.permute.xlu1 %926 }
 0x622   : > { %v2639_v62 = vpop.eup %2638  ;;  %2395 = vmatprep.subr.msk.bf16.mxu0 %vm747_vm1, %v929_v61  ;;  %v860_v6 = vmul.f32 %v2637_v60, %v2625_v44 }
 0x623   : > { %v857_v0 = vmul.f32 %v2639_v62, %v2631_v49 }
 0x624   : > { %v862_v10 = vpack.c.bf16 %v860_v6, %v859_v63 }
 0x625   : > { %v861_v8 = vpack.c.bf16 %v858_v1, %v857_v0 }
 0x627   : > { %2313 = vmatprep.mubr.msk.bf16.mxu0 %vm589_vm0, %v861_v8 }
 0x628   : > { %2314 = vmatmul.mubr.msk.bf16.vlgmr.msra.gmra.mrb[4].mxu0 %vm589_vm0, %v862_v10 }
 0x629   : > { %2321 = vmatprep.mubr.msk.bf16.mxu0 %vm747_vm1, %v925_v11 }
 0x62a   : > { %2318 = vmatpush3.bf16.xpose.msra.mxu0 %v939_v12 }
 0x62b   : > { %2396 = vmatprep.subr.msk.bf16.mxu0 %vm747_vm1, %v931_v13 }
 0x632   : > { %2320 = vmatpush3.bf16.xpose.msra.mxu0 %v942_v16 }
 0x639   : > { %2322 = vmatmul.mubr.msk.bf16.vlgmr.msra.gmra.mrb[8].mxu0 %vm747_vm1, %v927_v17 }
 0x6fb   : > { %v3696_v18 = vpop.f32.mrb[4].mxu0 }
 0x6fc   : > { %v3698_v19 = vpop.f32.mrb[5].mxu0 }
 0x6fd   : > { %v3700_v20 = vpop.f32.mrb[6].mxu0 }
 0x6fe   : > { %v3702_v21 = vpop.f32.mrb[7].mxu0 }
 0x70c   : > { %v2323_v22 = vpop.f32.mrb[8].mxu0 }
 0x70d   : > { %v978_v23 = vpop.f32.mrb[9].mxu0  ;;  %v995_v24 = vmul.f32 0.35355338, %v2323_v22 }
 0x70e   : > { %v993_v25 = vmul.f32 0.35355338, %v978_v23  ;;  %v2324_v26 = vpop.f32.mrb[10].mxu0 }
 0x70f   : > { %v981_v27 = vpop.f32.mrb[11].mxu0  ;;  %v996_v31 = vmul.f32 0.35355338, %v2324_v26  ;;  %v999_v33 = vsel %vm738_vm2, %v995_v24, -1e+30 }
 0x710   : > { %v994_v28 = vmul.f32 0.35355338, %v981_v27  ;;  %v997_v29 = vsel %vm738_vm2, %v993_v25, -1e+30  ;;  %v1007_v35 = vsel %vm589_vm0, %v999_v33, -inf }
 0x711   : > { %v1001_v30 = vsel %vm589_vm0, %v997_v29, -inf  ;;  %v1000_v36 = vsel %vm738_vm2, %v996_v31, -1e+30 }
 0x712   : > { %1002 = vmax.xlane.f32.xlu0 %v1001_v30  ;;  %v998_v32 = vsel %vm738_vm2, %v994_v28, -1e+30  ;;  %v1010_v37 = vsel %vm589_vm0, %v1000_v36, -inf }
 0x713   : > { %v1004_v34 = vsel %vm589_vm0, %v998_v32, -inf }
 0x714   : > { %1005 = vmax.xlane.f32.xlu1 %v1004_v34 }
 0x716   : > { %1008 = vmax.xlane.f32.xlu0 %v1007_v35 }
 0x71a   : > { %1011 = vmax.xlane.f32.xlu0 %v1010_v37 }
 0x725   : > { %1049 = vrot.lane.b32.xlu1 %v3646_v7, %s3152_s2 }
 0x79f   : > { %v1003_v38 = vpop.xlane.xlu0 %1002 }
 0x7a0   : > { %v1013_v39 = vsub.f32 %v997_v29, %v1003_v38 }
 0x7a1   : > { %v1006_v40 = vpop.xlane.xlu1 %1005 }
 0x7a2   : > { %v1017_v43 = vmul.f32 1.442695, %v1013_v39  ;;  %v1014_v44 = vsub.f32 %v998_v32, %v1006_v40 }
 0x7a3   : > { %v1009_v41 = vpop.xlane.xlu0 %1008 }
 0x7a4   : > { %v1015_v42 = vsub.f32 %v999_v33, %v1009_v41  ;;  %v1019_v48 = vmul.f32 1.442695, %v1014_v44 }
 0x7a5   : > { %v1050_v58 = vpop.permute.xlu1 %1049 }
 0x7a6   : > { %v1021_v45 = vmul.f32 1.442695, %v1015_v42 }
 0x7a7   : > { %v1012_v46 = vpop.xlane.xlu0 %1011 }
 0x7a8   : > { %2640 = vpow2.f32 %v1021_v45  ;;  %v1016_v47 = vsub.f32 %v1000_v36, %v1012_v46 }
 0x7a9   : > { %2642 = vpow2.f32 %v1017_v43 }
 0x7aa   : > { %v1023_v49 = vmul.f32 1.442695, %v1016_v47 }
 0x7ac   : > { %2644 = vpow2.f32 %v1023_v49 }
 0x7ad   : > { %2646 = vpow2.f32 %v1019_v48 }
 0x7b2   : > { %v2641_v50 = vpop.eup %2640 }
 0x7b3   : > { %v1031_v51 = vsel %vm589_vm0, %v2641_v50, 0.0  ;;  %v2643_v52 = vpop.eup %2642 }
 0x7b4   : > { %1032 = vadd.xlane.f32.xlu0 %v1031_v51  ;;  %v1025_v54 = vsel %vm589_vm0, %v2643_v52, 0.0 }
 0x7b6   : > { %v2645_v53 = vpop.eup %2644 }
 0x7b7   : > { %v1034_v55 = vsel %vm589_vm0, %v2645_v53, 0.0  ;;  %v2647_v56 = vpop.eup %2646 }
 0x7b8   : > { %1026 = vadd.xlane.f32.xlu0 %v1025_v54  ;;  %1035 = vadd.xlane.f32.xlu1 %v1034_v55  ;;  %v1028_v57 = vsel %vm589_vm0, %v2647_v56, 0.0 }
 0x7bc   : > { %1029 = vadd.xlane.f32.xlu1 %v1028_v57 }
 0x7cd   : > { %1112 = vrot.lane.b32.xlu1 %v3648_v9, %s3153_s3 }
 0x7ce   : > { %1047 = vrot.lane.b32.xlu0 %v3648_v9, %s3152_s2  ;;  %s1969_s2 = sshll.u32 %s577_s1, 4  ;;  %s3865_s2 = int_to_ptr.vmem [resolvable:$true] %s1969_s2 }
 0x7d1   : > { %1114 = vrot.lane.b32.xlu1 %v3646_v7, %s3153_s3 }
 0x7d2   : > { %1108 = vrot.lane.b32.xlu0 %v3648_v9, %s3154_s20 }
 0x7d5   : > { %1110 = vrot.lane.b32.xlu1 %v3646_v7, %s3154_s20 }
 0x841   : > { %v1033_v59 = vpop.xlane.xlu0 %1032 }
 0x845   : > { %v1027_v60 = vpop.xlane.xlu0 %1026  ;;  %v1036_v61 = vpop.xlane.xlu1 %1035 }
 0x846   : > { %2648 = vrcp.f32 %v1036_v61 }
 0x847   : > { %2650 = vrcp.f32 %v1027_v60 }
 0x848   : > { %2652 = vrcp.f32 %v1033_v59 }
 0x849   : > { %v1048_v62 = vpop.permute.xlu0 %1047  ;;  %v1030_v63 = vpop.xlane.xlu1 %1029 }
 0x84a   : > { %2654 = vrcp.f32 %v1030_v63  ;;  %2325 = vmatprep.subr.bf16.mxu1 %v1048_v62 }
 0x84b   : > { %2326 = vmatpush3.bf16.msra.mxu1 %v1048_v62 }
 0x84c   : > { %2327 = vmatprep.subr.bf16.mxu1 %v1050_v58 }
 0x84d   : > { %v1113_v0 = vpop.permute.xlu1 %1112  ;;  %v1109_v23 = vpop.permute.xlu0 %1108 }
 0x84e   : > { %v1123_v24 = vsel %vm747_vm1, %v1113_v0, 0 }
 0x84f   : > { %2328 = vmatpush3.bf16.msra.mxu1 %v1050_v58 }
 0x850   : > { %2397 = vmatprep.subr.msk.bf16.mxu1 %vm747_vm1, %v1113_v0  ;;  %v2649_v1 = vpop.eup %2648 }
 0x851   : > { %v2651_v6 = vpop.eup %2650  ;;  %v1044_v11 = vmul.f32 %v2649_v1, %v2645_v53  ;;  %v1115_v25 = vpop.permute.xlu1 %1114 }
 0x852   : > { %v2653_v8 = vpop.eup %2652  ;;  %v1041_v12 = vmul.f32 %v2651_v6, %v2643_v52  ;;  %v1126_v26 = vsel %vm747_vm1, %v1115_v25, 0 }
 0x853   : > { %v1043_v16 = vmul.f32 %v2653_v8, %v2641_v50 }
 0x854   : > { %v2655_v10 = vpop.eup %2654 }
 0x855   : > { %v1042_v13 = vmul.f32 %v2655_v10, %v2647_v56  ;;  %v1046_v22 = vpack.c.bf16 %v1044_v11, %v1043_v16  ;;  %v1111_v27 = vpop.permute.xlu1 %1110 }
 0x857   : > { %v1045_v17 = vpack.c.bf16 %v1042_v13, %v1041_v12 }
 0x859   : > { %2329 = vmatprep.mubr.msk.bf16.mxu1 %vm589_vm0, %v1045_v17 }
 0x85a   : > { %2330 = vmatmul.mubr.msk.bf16.vlgmr.msra.gmra.mrb[4].mxu1 %vm589_vm0, %v1046_v22 }
 0x85b   : > { %2334 = vmatpush3.bf16.xpose.msra.mxu1 %v1123_v24  ;;  %2337 = vmatprep.mubr.msk.bf16.mxu1 %vm747_vm1, %v1109_v23 }
 0x85c   : > { %2398 = vmatprep.subr.msk.bf16.mxu1 %vm747_vm1, %v1115_v25 }
 0x863   : > { %2336 = vmatpush3.bf16.xpose.msra.mxu1 %v1126_v26 }
 0x86a   : > { %2338 = vmatmul.mubr.msk.bf16.vlgmr.msra.gmra.mrb[8].mxu1 %vm747_vm1, %v1111_v27 }
 0x92d   : > { %v3736_v28 = vpop.f32.mrb[4].mxu1 }
 0x92e   : > { %v3738_v29 = vpop.f32.mrb[5].mxu1 }
 0x92f   : > { %v3740_v30 = vpop.f32.mrb[6].mxu1 }
 0x930   : > { %v2581_v31 = vpack.i.bf16 %v3740_v30, %v3736_v28  ;;  %v3744_v32 = vpop.f32.mrb[7].mxu1 }
 0x931   : > { %v2576_v33 = vpack.i.bf16 %v3744_v32, %v3738_v29 }
 0x93d   : > { %v2339_v34 = vpop.f32.mrb[8].mxu1 }
 0x93e   : > { %v1162_v35 = vpop.f32.mrb[9].mxu1  ;;  %v1179_v36 = vmul.f32 0.35355338, %v2339_v34 }
 0x93f   : > { %v1177_v37 = vmul.f32 0.35355338, %v1162_v35  ;;  %v2340_v38 = vpop.f32.mrb[10].mxu1 }
 0x940   : > { %v1165_v39 = vpop.f32.mrb[11].mxu1  ;;  %v1180_v43 = vmul.f32 0.35355338, %v2340_v38  ;;  %v1183_v45 = vsel %vm738_vm2, %v1179_v36, -1e+30 }
 0x941   : > { %v1178_v40 = vmul.f32 0.35355338, %v1165_v39  ;;  %v1181_v41 = vsel %vm738_vm2, %v1177_v37, -1e+30  ;;  %v1191_v47 = vsel %vm589_vm0, %v1183_v45, -inf }
 0x942   : > { %v1185_v42 = vsel %vm589_vm0, %v1181_v41, -inf  ;;  %v1184_v48 = vsel %vm738_vm2, %v1180_v43, -1e+30 }
 0x943   : > { %1186 = vmax.xlane.f32.xlu0 %v1185_v42  ;;  %v1182_v44 = vsel %vm738_vm2, %v1178_v40, -1e+30  ;;  %v1194_v49 = vsel %vm589_vm0, %v1184_v48, -inf }
 0x944   : > { %v1188_v46 = vsel %vm589_vm0, %v1182_v44, -inf }
 0x945   : > { %1189 = vmax.xlane.f32.xlu1 %v1188_v46 }
 0x947   : > { %1192 = vmax.xlane.f32.xlu0 %v1191_v47 }
 0x94b   : > { %1195 = vmax.xlane.f32.xlu0 %v1194_v49 }
 0x956   : > { %1233 = vrot.lane.b32.xlu1 %v3646_v7, %s3155_s17 }
 0x9d0   : > { %v1187_v50 = vpop.xlane.xlu0 %1186 }
 0x9d1   : > { %v1197_v51 = vsub.f32 %v1181_v41, %v1187_v50 }
 0x9d2   : > { %v1190_v52 = vpop.xlane.xlu1 %1189 }
 0x9d3   : > { %v1201_v55 = vmul.f32 1.442695, %v1197_v51  ;;  %v1198_v56 = vsub.f32 %v1182_v44, %v1190_v52 }
 0x9d4   : > { %v1193_v53 = vpop.xlane.xlu0 %1192 }
 0x9d5   : > { %v1199_v54 = vsub.f32 %v1183_v45, %v1193_v53  ;;  %v1203_v60 = vmul.f32 1.442695, %v1198_v56 }
 0x9d6   : > { %v1234_v12 = vpop.permute.xlu1 %1233 }
 0x9d7   : > { %v1205_v57 = vmul.f32 1.442695, %v1199_v54 }
 0x9d8   : > { %v1196_v58 = vpop.xlane.xlu0 %1195 }
 0x9d9   : > { %2656 = vpow2.f32 %v1205_v57  ;;  %v1200_v59 = vsub.f32 %v1184_v48, %v1196_v58 }
 0x9da   : > { %2658 = vpow2.f32 %v1201_v55 }
 0x9db   : > { %v1207_v61 = vmul.f32 1.442695, %v1200_v59 }
 0x9dd   : > { %2660 = vpow2.f32 %v1207_v61 }
 0x9de   : > { %2662 = vpow2.f32 %v1203_v60 }
 0x9e3   : > { %v2657_v62 = vpop.eup %2656 }
 0x9e4   : > { %v1215_v63 = vsel %vm589_vm0, %v2657_v62, 0.0  ;;  %v2659_v0 = vpop.eup %2658 }
 0x9e5   : > { %1216 = vadd.xlane.f32.xlu0 %v1215_v63  ;;  %v1209_v6 = vsel %vm589_vm0, %v2659_v0, 0.0 }
 0x9e7   : > { %v2661_v1 = vpop.eup %2660 }
 0x9e8   : > { %v1218_v8 = vsel %vm589_vm0, %v2661_v1, 0.0  ;;  %v2663_v10 = vpop.eup %2662 }
 0x9e9   : > { %1210 = vadd.xlane.f32.xlu0 %v1209_v6  ;;  %1219 = vadd.xlane.f32.xlu1 %v1218_v8  ;;  %v1212_v11 = vsel %vm589_vm0, %v2663_v10, 0.0 }
 0x9ed   : > { %1213 = vadd.xlane.f32.xlu1 %v1212_v11 }
 0x9fe   : > { %1296 = vrot.lane.b32.xlu1 %v3648_v9, %s3156_s26 }
 0x9ff   : > { %1231 = vrot.lane.b32.xlu0 %v3648_v9, %s3155_s17  ;;  %s3968_s17 = sld [smem:[#allocation36_spill]] }
 0xa02   : > { %1298 = vrot.lane.b32.xlu1 %v3646_v7, %s3156_s26 }
 0xa03   : > { %1292 = vrot.lane.b32.xlu0 %v3648_v9, %s3157_s4 }
 0xa05   : > { %s3861_s26 = scalar_lea.hbm %s3968_s17, %s2233_s14 }
 0xa06   : > { %1294 = vrot.lane.b32.xlu1 %v3646_v7, %s3157_s4  ;;  %s3042_s4 = scalar_lea.vmem %s3865_s2, 256 }
 0xa07   : > { %p3043_p2 = scmp.ne.s32.totalorder %s3865_s2, %s3042_s4 }
 0xa09   : > { %p3044_p6 = pnand %p3043_p2, %p3969_p8 }
 0xa0b   : > { %p3045_p11 = pneg %p3044_p6 }
 0xa72   : > { %v1217_v13 = vpop.xlane.xlu0 %1216 }
 0xa76   : > { %v1211_v16 = vpop.xlane.xlu0 %1210  ;;  %v1220_v17 = vpop.xlane.xlu1 %1219 }
 0xa77   : > { %2664 = vrcp.f32 %v1220_v17 }
 0xa78   : > { %2666 = vrcp.f32 %v1211_v16 }
 0xa79   : > { %2668 = vrcp.f32 %v1217_v13 }
 0xa7a   : > { %v1232_v22 = vpop.permute.xlu0 %1231  ;;  %v1214_v23 = vpop.xlane.xlu1 %1213 }
 0xa7b   : > { %2670 = vrcp.f32 %v1214_v23  ;;  %2341 = vmatprep.subr.bf16.mxu0 %v1232_v22 }
 0xa7c   : > { %2342 = vmatpush3.bf16.msra.mxu0 %v1232_v22 }
 0xa7d   : > { %2343 = vmatprep.subr.bf16.mxu0 %v1234_v12 }
 0xa7e   : > { %v1297_v24 = vpop.permute.xlu1 %1296  ;;  %v1293_v41 = vpop.permute.xlu0 %1292 }
 0xa7f   : > { %v1307_v42 = vsel %vm747_vm1, %v1297_v24, 0 }
 0xa80   : > { %2344 = vmatpush3.bf16.msra.mxu0 %v1234_v12 }
 0xa81   : > { %2399 = vmatprep.subr.msk.bf16.mxu0 %vm747_vm1, %v1297_v24  ;;  %v2665_v25 = vpop.eup %2664 }
 0xa82   : > { %v2667_v26 = vpop.eup %2666  ;;  %v1228_v35 = vmul.f32 %v2665_v25, %v2661_v1  ;;  %v1299_v43 = vpop.permute.xlu1 %1298 }
 0xa83   : > { %v2669_v27 = vpop.eup %2668  ;;  %v1225_v36 = vmul.f32 %v2667_v26, %v2659_v0  ;;  %v1310_v44 = vsel %vm747_vm1, %v1299_v43, 0 }
 0xa84   : > { %v1227_v38 = vmul.f32 %v2669_v27, %v2657_v62 }
 0xa85   : > { %v2671_v34 = vpop.eup %2670 }
 0xa86   : > { %v1226_v37 = vmul.f32 %v2671_v34, %v2663_v10  ;;  %v1230_v40 = vpack.c.bf16 %v1228_v35, %v1227_v38  ;;  %v1295_v45 = vpop.permute.xlu1 %1294 }
 0xa88   : > { %v1229_v39 = vpack.c.bf16 %v1226_v37, %v1225_v36 }
 0xa8a   : > { %2345 = vmatprep.mubr.msk.bf16.mxu0 %vm589_vm0, %v1229_v39 }
 0xa8b   : > { %2346 = vmatmul.mubr.msk.bf16.vlgmr.msra.gmra.mrb[12].mxu0 %vm589_vm0, %v1230_v40 }
 0xa8c   : > { %2350 = vmatpush3.bf16.xpose.msra.mxu0 %v1307_v42  ;;  %2353 = vmatprep.mubr.msk.bf16.mxu0 %vm747_vm1, %v1293_v41 }
 0xa8d   : > { %2400 = vmatprep.subr.msk.bf16.mxu0 %vm747_vm1, %v1299_v43 }
 0xa94   : > { %2352 = vmatpush3.bf16.xpose.msra.mxu0 %v1310_v44 }
 0xa9b   : > { %2354 = vmatmul.mubr.msk.bf16.vlgmr.msra.gmra.mrb[16].mxu0 %vm747_vm1, %v1295_v45 }
 0xb5e   : > { %v2347_v46 = vpop.f32.mrb[12].mxu0 }
 0xb5f   : > { %v1277_v47 = vpop.f32.mrb[13].mxu0 }
 0xb60   : > { %v2348_v48 = vpop.f32.mrb[14].mxu0 }
 0xb61   : > { %v2591_v49 = vpack.i.bf16 %v2348_v48, %v2347_v46  ;;  %v1280_v50 = vpop.f32.mrb[15].mxu0 }
 0xb62   : > { %v2586_v51 = vpack.i.bf16 %v1280_v50, %v1277_v47  ;;  %v2609_v50 = vld [vmem:[#allocation10 + $0x8] sm:$0xff]  }
 0xb6e   : > { %v2355_v52 = vpop.f32.mrb[16].mxu0 }
 0xb6f   : > { %v1346_v53 = vpop.f32.mrb[17].mxu0  ;;  %v1363_v54 = vmul.f32 0.35355338, %v2355_v52 }
 0xb70   : > { %v1361_v55 = vmul.f32 0.35355338, %v1346_v53  ;;  %v2356_v56 = vpop.f32.mrb[18].mxu0 }
 0xb71   : > { %v1349_v57 = vpop.f32.mrb[19].mxu0  ;;  %v1364_v61 = vmul.f32 0.35355338, %v2356_v56  ;;  %v1367_v63 = vsel %vm738_vm2, %v1363_v54, -1e+30 }
 0xb72   : > { %v1362_v58 = vmul.f32 0.35355338, %v1349_v57  ;;  %v1365_v59 = vsel %vm738_vm2, %v1361_v55, -1e+30  ;;  %v1375_v1 = vsel %vm589_vm0, %v1367_v63, -inf }
 0xb73   : > { %v1369_v60 = vsel %vm589_vm0, %v1365_v59, -inf  ;;  %v1368_v6 = vsel %vm738_vm2, %v1364_v61, -1e+30 }
 0xb74   : > { %1370 = vmax.xlane.f32.xlu0 %v1369_v60  ;;  %v1366_v62 = vsel %vm738_vm2, %v1362_v58, -1e+30  ;;  %v1378_v8 = vsel %vm589_vm0, %v1368_v6, -inf }
 0xb75   : > { %v1372_v0 = vsel %vm589_vm0, %v1366_v62, -inf }
 0xb76   : > { %1373 = vmax.xlane.f32.xlu1 %v1372_v0 }
 0xb78   : > { %1376 = vmax.xlane.f32.xlu0 %v1375_v1 }
 0xb7c   : > { %1379 = vmax.xlane.f32.xlu0 %v1378_v8 }
 0xc01   : > { %v1371_v10 = vpop.xlane.xlu0 %1370 }
 0xc02   : > { %v1381_v11 = vsub.f32 %v1365_v59, %v1371_v10 }
 0xc03   : > { %v1374_v12 = vpop.xlane.xlu1 %1373 }
 0xc04   : > { %v1385_v17 = vmul.f32 1.442695, %v1381_v11  ;;  %v1382_v22 = vsub.f32 %v1366_v62, %v1374_v12 }
 0xc05   : > { %v1377_v13 = vpop.xlane.xlu0 %1376 }
 0xc06   : > { %v1383_v16 = vsub.f32 %v1367_v63, %v1377_v13  ;;  %v1387_v26 = vmul.f32 1.442695, %v1382_v22 }
 0xc08   : > { %v1389_v23 = vmul.f32 1.442695, %v1383_v16 }
 0xc09   : > { %v1380_v24 = vpop.xlane.xlu0 %1379 }
 0xc0a   : > { %2672 = vpow2.f32 %v1389_v23  ;;  %v1384_v25 = vsub.f32 %v1368_v6, %v1380_v24 }
 0xc0b   : > { %2674 = vpow2.f32 %v1385_v17 }
 0xc0c   : > { %v1391_v27 = vmul.f32 1.442695, %v1384_v25 }
 0xc0e   : > { %2676 = vpow2.f32 %v1391_v27 }
 0xc0f   : > { %2678 = vpow2.f32 %v1387_v26 }
 0xc14   : > { %v2673_v15 = vpop.eup %2672 }
 0xc15   : > { %v1399_v34 = vsel %vm589_vm0, %v2673_v15, 0.0  ;;  %v2675_v35 = vpop.eup %2674 }
 0xc16   : > { %1400 = vadd.xlane.f32.xlu0 %v1399_v34  ;;  %v1393_v37 = vsel %vm589_vm0, %v2675_v35, 0.0 }
 0xc18   : > { %v2677_v36 = vpop.eup %2676 }
 0xc19   : > { %v1402_v38 = vsel %vm589_vm0, %v2677_v36, 0.0  ;;  %v2679_v39 = vpop.eup %2678 }
 0xc1a   : > { %1394 = vadd.xlane.f32.xlu0 %v1393_v37  ;;  %1403 = vadd.xlane.f32.xlu1 %v1402_v38  ;;  %v1396_v40 = vsel %vm589_vm0, %v2679_v39, 0.0  ;;  %v2200_v38 = vld [vmem:[#allocation11] ss:$0 sm:$0xff] }
 0xc1e   : > { %1397 = vadd.xlane.f32.xlu1 %v1396_v40 }
 0xc2f   : > { %1417 = vrot.lane.b32.xlu1 %v3646_v7, %s3158_s19 }
 0xc30   : > { %1415 = vrot.lane.b32.xlu0 %v3648_v9, %s3158_s19  ;;  %s3163_s19 = smov [#allocation22]  }
 0xc33   : > { %2577 = vrot.lane.b32.xlu1 %v2576_v33, %s3159_s25 }
 0xc34   : > { %2587 = vrot.lane.b32.xlu0 %v2586_v51, %s3160_s28 }
 0xc37   : > { %2582 = vrot.lane.b32.xlu1 %v2581_v31, %s3159_s25  ;;  %s3046_s25 = sshll.u32 %s3163_s19, 4  ;;  %s3047_s25 = int_to_ptr.vmem [resolvable:$false] %s3046_s25 }
 0xc38   : > { %p3049_p12 = scmp.lt.s32.totalorder %s3865_s2, %s3047_s25 }
 0xc3b   : > { %2592 = vrot.lane.b32.xlu1 %v2591_v49, %s3160_s28  ;;  %v2608_v49 = vld [vmem:[#allocation10] sm:$0xff]   ;;  %s3048_s28 = scalar_lea.vmem %s3047_s25, 512 }
 0xc3c   : > { %p3050_p0 = scmp.lt.s32.totalorder %s3048_s28, %s3042_s4 }
 0xc3e   : > { %p3051_p5 = por %p3050_p0, %p3049_p12 }
 0xc40   : > { %p3052_p9 = pnand %p3051_p5, %p3045_p11 }
 0xca3   : > { %v1401_v41 = vpop.xlane.xlu0 %1400 }
 0xca7   : > { %v1395_v42 = vpop.xlane.xlu0 %1394  ;;  %v1404_v43 = vpop.xlane.xlu1 %1403 }
 0xca8   : > { %2680 = vrcp.f32 %v1404_v43 }
 0xca9   : > { %2682 = vrcp.f32 %v1395_v42 }
 0xcaa   : > { %2684 = vrcp.f32 %v1401_v41 }
 0xcab   : > { %v1416_v7 = vpop.permute.xlu0 %1415  ;;  %v1398_v9 = vpop.xlane.xlu1 %1397 }
 0xcac   : > { %2686 = vrcp.f32 %v1398_v9  ;;  %2357 = vmatprep.subr.bf16.mxu1 %v1416_v7 }
 0xcad   : > { %2358 = vmatpush3.bf16.msra.mxu1 %v1416_v7 }
 0xcaf   : > { %v1418_v29 = vpop.permute.xlu1 %1417  ;;  %v2588_v60 = vpop.permute.xlu0 %2587 }
 0xcb0   : > { %2359 = vmatprep.subr.bf16.mxu1 %v1418_v29  ;;  %v2590_v8 = vunpack.i.h.bf16 %v2588_v60  ;;  %v2589_v10 = vunpack.i.l.bf16 %v2588_v60 }
 0xcb1   : > { %2360 = vmatpush3.bf16.msra.mxu1 %v1418_v29 }
 0xcb2   : > { %v2681_v32 = vpop.eup %2680  ;;  %2365 = vmatprep.subr.bf16.mxu1 %v2608_v49 }
 0xcb3   : > { %v2683_v33 = vpop.eup %2682  ;;  %v1412_v30 = vmul.f32 %v2681_v32, %v2677_v36  ;;  %v2578_v57 = vpop.permute.xlu1 %2577 }
 0xcb4   : > { %v2685_v44 = vpop.eup %2684  ;;  %v1409_v31 = vmul.f32 %v2683_v33, %v2675_v35  ;;  %v2580_v61 = vunpack.i.h.bf16 %v2578_v57  ;;  %v2579_v62 = vunpack.i.l.bf16 %v2578_v57 }
 0xcb5   : > { %v1411_v46 = vmul.f32 %v2685_v44, %v2673_v15 }
 0xcb6   : > { %v2687_v28 = vpop.eup %2686  ;;  %v1525_v11 = vsel %vm747_vm1, %v3702_v21, %v2580_v61  ;;  %v1524_v12 = vsel %vm747_vm1, %v3698_v19, %v2579_v62 }
 0xcb7   : > { %v1410_v45 = vmul.f32 %v2687_v28, %v2679_v39  ;;  %v1414_v48 = vpack.c.bf16 %v1412_v30, %v1411_v46  ;;  %v2583_v58 = vpop.permute.xlu1 %2582  ;;  %v1529_v34 = vsel %vm1528_vm3, %v1524_v12, %v2589_v10 }
 0xcb8   : > { %v2585_v63 = vunpack.i.h.bf16 %v2583_v58  ;;  %v2584_v0 = vunpack.i.l.bf16 %v2583_v58 }
 0xcb9   : > { %v1413_v47 = vpack.c.bf16 %v1410_v45, %v1409_v31 }
 0xcba   : > { %v1527_v16 = vsel %vm747_vm1, %v3700_v20, %v2585_v63  ;;  %v1526_v17 = vsel %vm747_vm1, %v3696_v18, %v2584_v0  ;;  %v1530_v20 = vsel %vm1528_vm3, %v1525_v11, %v2590_v8  ;;  %v2610_v63 = vld [vmem:[#allocation16] sm:$0xff]   ;;  %v2611_v0 = vld [vmem:[#allocation16 + $0x8] sm:$0xff]  }
 0xcbb   : > { %2361 = vmatprep.mubr.msk.bf16.mxu1 %vm589_vm0, %v1413_v47  ;;  %v2593_v59 = vpop.permute.xlu1 %2592  ;;  %2373 = vmatprep.subr.bf16.mxu0 %v2610_v63 }
 0xcbc   : > { %2362 = vmatmul.mubr.msk.bf16.vlgmr.msra.gmra.mrb[12].mxu1 %vm589_vm0, %v1414_v48  ;;  %v2595_v1 = vunpack.i.h.bf16 %v2593_v59  ;;  %v2594_v6 = vunpack.i.l.bf16 %v2593_v59  ;;  %2374 = vmatpush3.bf16.msra.mxu0 %v2610_v63 }
 0xcbd   : > { %2366 = vmatpush3.bf16.msra.mxu1 %v2608_v49  ;;  %2375 = vmatprep.subr.bf16.mxu0 %v2611_v0 }
 0xcbe   : > { %2367 = vmatprep.subr.bf16.mxu1 %v2609_v50  ;;  %v1531_v25 = vsel %vm1528_vm3, %v1526_v17, %v2594_v6  ;;  %v1532_v26 = vsel %vm1528_vm3, %v1527_v16, %v2595_v1 }
 0xcc0   : > { %2376 = vmatpush3.bf16.msra.mxu0 %v2611_v0 }
 0xcc1   : > { %2368 = vmatpush3.bf16.msra.mxu1 %v2609_v50 }
 0xd8f   : > { %v2363_v51 = vpop.f32.mrb[12].mxu1 }
 0xd90   : > { %v1461_v52 = vpop.f32.mrb[13].mxu1 }
 0xd91   : > { %v2364_v53 = vpop.f32.mrb[14].mxu1 }
 0xd92   : > { %v2601_v54 = vpack.i.bf16 %v2364_v53, %v2363_v51  ;;  %v1464_v55 = vpop.f32.mrb[15].mxu1 }
 0xd93   : > { %v2596_v56 = vpack.i.bf16 %v1464_v55, %v1461_v52 }
 0xd94   : > { %2602 = vrot.lane.b32.xlu1 %v2601_v54, %s3161_s29 }
 0xd95   : > { %2597 = vrot.lane.b32.xlu0 %v2596_v56, %s3161_s29 }
 0xe06   : > { %v2603_v13 = vpop.permute.xlu1 %2602 }
 0xe07   : > { %v2605_v22 = vunpack.i.h.bf16 %v2603_v13  ;;  %v2604_v23 = vunpack.i.l.bf16 %v2603_v13  ;;  %v2598_v24 = vpop.permute.xlu0 %2597 }
 0xe08   : > { %v2600_v27 = vunpack.i.h.bf16 %v2598_v24  ;;  %v2599_v21 = vunpack.i.l.bf16 %v2598_v24 }
 0xe09   : > { %v1536_v15 = vsel %vm1533_vm4, %v1531_v25, %v2604_v23  ;;  %v1537_v19 = vsel %vm1533_vm4, %v1532_v26, %v2605_v22  ;;  %v2205_v26 = vld [vmem:[#allocation13] ss:$0 sm:$0xff] }
 0xe0a   : > { %v1539_v35 = vpack.c.bf16 %v1537_v19, %v1536_v15  ;;  %v1534_v18 = vsel %vm1533_vm4, %v1529_v34, %v2599_v21  ;;  %v1535_v36 = vsel %vm1533_vm4, %v1530_v20, %v2600_v27  ;;  %v2206_v20 = vld [vmem:[#allocation14] ss:$0 sm:$0xff] }
 0xe0b   : > { %v1538_v37 = vpack.c.bf16 %v1535_v36, %v1534_v18 }
 0xe0d   : > { %2369 = vmatprep.mubr.msk.bf16.mxu1 %vm589_vm0, %v1538_v37 }
 0xe0e   : > { %2370 = vmatmul.mubr.msk.bf16.vlgmr.msra.gmra.mrb[16].mxu1 %vm589_vm0, %v1539_v35 }
 0xee1   : > { %v2371_v39 = vpop.f32.mrb[16].mxu1 }
 0xee2   : > { %v1603_v40 = vpop.f32.mrb[17].mxu1  ;;  %v1612_v41 = vadd.f32 %v2371_v39, %v2200_v38 }
 0xee3   : > { %v1604_v42 = vadd.f32 %v2200_v38, %v1603_v40  ;;  %v2372_v43 = vpop.f32.mrb[18].mxu1 }
 0xee4   : > { %v1606_v7 = vpop.f32.mrb[19].mxu1  ;;  %v3828_v32 = vadd.f32 %v3622_v3, %v1612_v41  ;;  %v1615_v33 = vadd.f32 %v2372_v43, %v2200_v38 }
 0xee5   : > { %v3825_v9 = vadd.f32 %v3620_v2, %v1604_v42  ;;  %v1607_v29 = vadd.f32 %v2200_v38, %v1606_v7 }
 0xee6   : > { %v1630_v2 = vsel %vm589_vm0, %v3828_v32, 0.0  ;;  %v1621_v31 = vadd.f32 %v3626_v5, %v1615_v33  ;;  %v2612_v33 = vld [vmem:[#allocation19] sm:$0xff]  }
 0xee7   : > { %v3831_v44 = vadd.f32 %v3624_v4, %v1607_v29  ;;  %v1624_v28 = vsel %vm589_vm0, %v3825_v9, 0.0  ;;  %2381 = vmatprep.subr.bf16.mxu1 %v2612_v33 }
 0xee8   : > { %1625 = vadd.xlane.f32.xlu0 %v1624_v28  ;;  %v1633_v3 = vsel %vm589_vm0, %v1621_v31, 0.0  ;;  %v2613_v28 = vld [vmem:[#allocation19 + $0x8] sm:$0xff]   ;;  %2382 = vmatpush3.bf16.msra.mxu1 %v2612_v33 }
 0xee9   : > { %v1627_v30 = vsel %vm589_vm0, %v3831_v44, 0.0  ;;  %2383 = vmatprep.subr.bf16.mxu1 %v2613_v28 }
 0xeea   : > { %1628 = vadd.xlane.f32.xlu1 %v1627_v30  ;;  %v2614_v30 = vld [vmem:[#allocation19 + $0x10] sm:$0xff]  }
 0xeec   : > { %1631 = vadd.xlane.f32.xlu0 %v1630_v2  ;;  %2384 = vmatpush3.bf16.msra.mxu1 %v2613_v28  ;;  %v2615_v2 = vld [vmem:[#allocation19 + $0x18] sm:$0xff]  }
 0xeed   : > { %2385 = vmatprep.subr.bf16.mxu1 %v2614_v30 }
 0xef0   : > { %1634 = vadd.xlane.f32.xlu0 %v1633_v3  ;;  %2386 = vmatpush3.bf16.msra.mxu1 %v2614_v30 }
 0xef1   : > { %2387 = vmatprep.subr.bf16.mxu1 %v2615_v2 }
 0xef4   : > { %2388 = vmatpush3.bf16.msra.mxu1 %v2615_v2 }
 0xf75   : > { %v1626_v45 = vpop.xlane.xlu0 %1625 }
 0xf76   : > { %v1636_v4 = vmul.f32 0.03125, %v1626_v45 }
 0xf77   : > { %v1629_v46 = vpop.xlane.xlu1 %1628 }
 0xf78   : > { %v1640_v47 = vsub.f32 %v3825_v9, %v1636_v4  ;;  %v1637_v48 = vmul.f32 0.03125, %v1629_v46 }
 0xf79   : > { %v1632_v49 = vpop.xlane.xlu0 %1631 }
 0xf7a   : > { %v1641_v50 = vsub.f32 %v3831_v44, %v1637_v48  ;;  %v1638_v51 = vmul.f32 0.03125, %v1632_v49  ;;  %v1644_v52 = vmul.f32 %v1640_v47, %v1640_v47 }
 0xf7c   : > { %v1642_v53 = vsub.f32 %v3828_v32, %v1638_v51  ;;  %v1648_v54 = vsel %vm589_vm0, %v1644_v52, 0.0  ;;  %v1645_v5 = vmul.f32 %v1641_v50, %v1641_v50 }
 0xf7d   : > { %1649 = vadd.xlane.f32.xlu0 %v1648_v54  ;;  %v1635_v55 = vpop.xlane.xlu0 %1634 }
 0xf7e   : > { %v1639_v56 = vmul.f32 0.03125, %v1635_v55  ;;  %v1651_v57 = vsel %vm589_vm0, %v1645_v5, 0.0  ;;  %v1646_v58 = vmul.f32 %v1642_v53, %v1642_v53 }
 0xf7f   : > { %1652 = vadd.xlane.f32.xlu1 %v1651_v57 }
 0xf80   : > { %v1643_v59 = vsub.f32 %v1621_v31, %v1639_v56  ;;  %v1654_v60 = vsel %vm589_vm0, %v1646_v58, 0.0  ;;  %v2207_v31 = vld [vmem:[#allocation17] ss:$0 sm:$0xff] }
 0xf81   : > { %1655 = vadd.xlane.f32.xlu0 %v1654_v60 }
 0xf82   : > { %v1647_v61 = vmul.f32 %v1643_v59, %v1643_v59 }
 0xf84   : > { %v1657_v62 = vsel %vm589_vm0, %v1647_v61, 0.0 }
 0xf85   : > { %1658 = vadd.xlane.f32.xlu1 %v1657_v62 }
0x100a   : > { %v1650_v1 = vpop.xlane.xlu0 %1649 }
0x100b   : > { %v1660_v6 = vmul.f32 0.03125, %v1650_v1 }
0x100c   : > { %v1653_v8 = vpop.xlane.xlu1 %1652 }
0x100d   : > { %v1664_v10 = vadd.f32 1e-05, %v1660_v6  ;;  %v1661_v11 = vmul.f32 0.03125, %v1653_v8 }
0x100e   : > { %v1656_v12 = vpop.xlane.xlu0 %1655 }
0x100f   : > { %2688 = vrsqrt.f32 %v1664_v10  ;;  %v1665_v13 = vadd.f32 1e-05, %v1661_v11  ;;  %v1662_v16 = vmul.f32 0.03125, %v1656_v12 }
0x1011   : > { %2690 = vrsqrt.f32 %v1665_v13  ;;  %v1666_v17 = vadd.f32 1e-05, %v1662_v16 }
0x1012   : > { %v1659_v22 = vpop.xlane.xlu1 %1658 }
0x1013   : > { %2692 = vrsqrt.f32 %v1666_v17  ;;  %v1663_v23 = vmul.f32 0.03125, %v1659_v22 }
0x1015   : > { %v1667_v24 = vadd.f32 1e-05, %v1663_v23 }
0x1017   : > { %2694 = vrsqrt.f32 %v1667_v24 }
0x1019   : > { %v2689_v25 = vpop.eup %2688 }
0x101a   : > { %v1672_v27 = vmul.f32 %v2689_v25, %v1640_v47 }
0x101b   : > { %v2691_v21 = vpop.eup %2690 }
0x101c   : > { %v1673_v15 = vmul.f32 %v2691_v21, %v1641_v50  ;;  %v1682_v19 = vmul.f32 %v2205_v26, %v1672_v27 }
0x101d   : > { %v2693_v34 = vpop.eup %2692 }
0x101e   : > { %v1674_v35 = vmul.f32 %v2693_v34, %v1642_v53  ;;  %v1683_v18 = vmul.f32 %v2205_v26, %v1673_v15  ;;  %v1692_v36 = vadd.f32 %v2206_v20, %v1682_v19 }
0x1020   : > { %v1693_v37 = vadd.f32 %v2206_v20, %v1683_v18  ;;  %v1684_v39 = vmul.f32 %v2205_v26, %v1674_v35 }
0x1021   : > { %v2695_v38 = vpop.eup %2694 }
0x1022   : > { %v1675_v40 = vmul.f32 %v2695_v38, %v1643_v59  ;;  %v1696_v41 = vpack.c.bf16 %v1693_v37, %v1692_v36  ;;  %v1694_v43 = vadd.f32 %v2206_v20, %v1684_v39  ;;  %v3162_v37 = vmov 0.0|0.0   ;;  %v2212_v39 = vld [vmem:[#allocation20] ss:$0 sm:$0xff] }
0x1023   : > { %1954 = vst.msk [vmem:[%s577_s1 + $0xc] sm:$0xf] %vm1950_vm6, %v3162_v37  ;;  %v1914_v38 = vshrl.u32 %v736_v14, 7 }
0x1024   : > { %v1685_v42 = vmul.f32 %v2205_v26, %v1675_v40  ;;  %2377 = vmatprep.mubr.msk.bf16.mxu0 %vm589_vm0, %v1696_v41 }
0x1025   : > { %v1916_v40 = vadd.s32 16, %v1914_v38 }
0x1026   : > { %v1695_v7 = vadd.f32 %v2206_v20, %v1685_v42 }
0x1027   : > { %vm1920_vm7 = vcmp.lt.s32.totalorder %v1916_v40, 17 }
0x1028   : > { %v1697_v29 = vpack.c.bf16 %v1695_v7, %v1694_v43 }
0x102a   : > { %2378 = vmatmul.mubr.msk.bf16.vlgmr.msra.gmra.mrb[20].mxu0 %vm589_vm0, %v1697_v29 }
0x10fd   : > { %v2379_v3 = vpop.f32.mrb[20].mxu0 }
0x10fe   : > { %v1770_v45 = vadd.f32 %v2379_v3, %v2207_v31  ;;  %v1761_v4 = vpop.f32.mrb[21].mxu0 }
0x10ff   : > { %v1762_v46 = vadd.f32 %v2207_v31, %v1761_v4  ;;  %v2380_v47 = vpop.f32.mrb[22].mxu0 }
0x1100   : > { %v1782_v48 = vmul.f32 0.044715, %v1770_v45  ;;  %v1773_v49 = vadd.f32 %v2380_v47, %v2207_v31  ;;  %v1764_v50 = vpop.f32.mrb[23].mxu0  ;;  %v1778_v24 = vmul.f32 0.5, %v1770_v45 }
0x1101   : > { %v1780_v51 = vmul.f32 0.044715, %v1762_v46  ;;  %v1765_v52 = vadd.f32 %v2207_v31, %v1764_v50  ;;  %v1776_v27 = vmul.f32 0.5, %v1762_v46 }
0x1102   : > { %v1786_v53 = vmul.f32 %v1782_v48, %v1770_v45  ;;  %v1783_v54 = vmul.f32 0.044715, %v1773_v49  ;;  %v1779_v25 = vmul.f32 0.5, %v1773_v49 }
0x1103   : > { %v1784_v5 = vmul.f32 %v1780_v51, %v1762_v46  ;;  %v1781_v55 = vmul.f32 0.044715, %v1765_v52  ;;  %v1777_v21 = vmul.f32 0.5, %v1765_v52 }
0x1104   : > { %v1790_v56 = vmul.f32 %v1786_v53, %v1770_v45  ;;  %v1787_v57 = vmul.f32 %v1783_v54, %v1773_v49 }
0x1105   : > { %v1788_v58 = vmul.f32 %v1784_v5, %v1762_v46  ;;  %v1785_v59 = vmul.f32 %v1781_v55, %v1765_v52 }
0x1106   : > { %v1794_v60 = vadd.f32 %v1790_v56, %v1770_v45  ;;  %v1791_v61 = vmul.f32 %v1787_v57, %v1773_v49 }
0x1107   : > { %v1792_v62 = vadd.f32 %v1788_v58, %v1762_v46  ;;  %v1789_v63 = vmul.f32 %v1785_v59, %v1765_v52 }
0x1108   : > { %v1798_v0 = vmul.f32 0.7978846, %v1794_v60  ;;  %v1795_v1 = vadd.f32 %v1791_v61, %v1773_v49 }
0x1109   : > { %v1796_v6 = vmul.f32 0.7978846, %v1792_v62  ;;  %v1793_v8 = vadd.f32 %v1789_v63, %v1765_v52 }
0x110a   : > { %2696 = vtanh.f32 %v1798_v0  ;;  %v1799_v10 = vmul.f32 0.7978846, %v1795_v1 }
0x110b   : > { %2698 = vtanh.f32 %v1796_v6  ;;  %v1797_v11 = vmul.f32 0.7978846, %v1793_v8 }
0x110c   : > { %2700 = vtanh.f32 %v1799_v10 }
0x110d   : > { %2702 = vtanh.f32 %v1797_v11 }
0x1114   : > { %v2697_v12 = vpop.eup %2696 }
0x1115   : > { %v2699_v13 = vpop.eup %2698  ;;  %v1806_v16 = vadd.f32 1.0, %v2697_v12 }
0x1116   : > { %v2701_v17 = vpop.eup %2700  ;;  %v1804_v22 = vadd.f32 1.0, %v2699_v13 }
0x1117   : > { %v2703_v23 = vpop.eup %2702  ;;  %v1807_v26 = vadd.f32 1.0, %v2701_v17  ;;  %v1810_v19 = vmul.f32 %v1806_v16, %v1778_v24 }
0x1118   : > { %v1805_v15 = vadd.f32 1.0, %v2703_v23  ;;  %v1808_v20 = vmul.f32 %v1804_v22, %v1776_v27 }
0x1119   : > { %v1811_v34 = vmul.f32 %v1807_v26, %v1779_v25 }
0x111a   : > { %v1809_v35 = vmul.f32 %v1805_v15, %v1777_v21 }
0x111b   : > { %v1813_v18 = vpack.c.bf16 %v1811_v34, %v1810_v19 }
0x111c   : > { %v1812_v36 = vpack.c.bf16 %v1809_v35, %v1808_v20 }
0x111e   : > { %2389 = vmatprep.mubr.msk.bf16.mxu1 %vm1853_vm5, %v1812_v36 }
0x111f   : > { %2390 = vmatmul.mubr.msk.bf16.vlgmr.msra.gmra.mrb[20].mxu1 %vm1853_vm5, %v1813_v18 }
0x11f2   : > { %v2391_v41 = vpop.f32.mrb[20].mxu1 }
0x11f3   : > { %v1903_v42 = vadd.f32 %v2391_v41, %v2212_v39  ;;  %v1894_v43 = vpop.f32.mrb[21].mxu1 }
0x11f4   : > { %v1895_v7 = vadd.f32 %v2212_v39, %v1894_v43  ;;  %v2392_v29 = vpop.f32.mrb[22].mxu1 }
0x11f5   : > { %v1911_v33 = vadd.f32 %v1903_v42, %v3828_v32  ;;  %v1897_v28 = vpop.f32.mrb[23].mxu1 }
0x11f6   : > { %v1909_v30 = vadd.f32 %v1895_v7, %v3825_v9  ;;  %v1898_v2 = vadd.f32 %v2212_v39, %v1897_v28 }
0x11f7   : > { %v1932_v31 = vsel %vm1920_vm7, %v1911_v33, 0.0 }
0x11f8   : > { %v2231_v14 = vpack.c.bf16 %v1932_v31, %v1932_v31  ;;  %v2229_v3 = vpack.c.bf16 %v1909_v30, %v1909_v30  ;;  %v1910_v45 = vadd.f32 %v1898_v2, %v3831_v44 }
0x11fa   : > { %1953 = vst.msk [vmem:[%s577_s1 + $0x8] sm:$0xf] %vm1950_vm6, %v2231_v14  ;;  %1951 = vst.msk [vmem:[%s577_s1] sm:$0xf] %vm1950_vm6, %v2229_v3  ;;  %v2230_v32 = vpack.c.bf16 %v1910_v45, %v1910_v45 }
0x11fc   : > { %1952 = vst.msk [vmem:[%s577_s1 + $0x4] sm:$0xf] %vm1950_vm6, %v2230_v32 }
0x11fd   : > { %3055 = shalt.err (!%p3052_p9)
}
0x11fe   : > { %s3056_s29 = scalar_lea.hbm %s3861_s26, 256  ;;  %s3060_s3 = scalar_lea.hbm %s3968_s17, 512 }
0x11ff   : > { %p3057_p7 = scmp.ne.s32.totalorder %s3861_s26, %s3056_s29  ;;  %p3061_p13 = scmp.lt.u32.totalorder %s3861_s26, %s3968_s17 }
0x1200   : > { %p3062_p1 = scmp.lt.u32.totalorder %s3060_s3, %s3056_s29  ;;  %p3064_p2 = scmp.lt.u32.totalorder %s3056_s29, %s3861_s26 }
0x1201   : > { %p3058_p10 = pnand %p3057_p7, %p3969_p8 }
0x1202   : > { %p3063_p3 = por %p3062_p1, %p3061_p13 }
0x1203   : > { %p3059_p4 = pneg %p3058_p10 }
0x1204   : > { %p3065_p6 = por %p3064_p2, %p3063_p3 }
0x1206   : > { %p3066_p11 = pnand %p3065_p6, %p3059_p4 }
0x1208   : > { %3069 = shalt.err (!%p3066_p11)
}
0x1209   : > { %s3164_s4 = smov 4  }
0x120a   : > { %2447 = dma.vmem_to_hbm [thread:$0]  (%p3969_p8), %s3865_s2, 256, %s3861_s26, %s1956_s27, %s3149_s12, %s3149_s12, %s3164_s4  }
0x120b PF: > { %s1984_s25 = sand.u32 1, %s3120_s21   ;;  %p3970_p12 = scmp.ne.s32.totalorder %s3952_s16, 0 }
0x120c   : > { %p3971_p0 = scmp.ge.s32.totalorder %s3132_s24, 2  ;;  %s1985_s28 = scalar_lea.sflag [#allocation4], %s1984_s25 }
0x120e   : > { %p2488_p5 = pnand %p3971_p0, %p3970_p12 }
0x1210   : > { %3115 = dma.done.wait (!%p2488_p5), %s1985_s28, 256  }
0x1211   : > { %3117 = vsyncadd (!%p2488_p5), %s1985_s28, 4294967040  ;;  %p31_p9 = scmp.ge.s32.totalorder %s3510_s13, 4   ;;  %s3972_s21 = smov %s3124_s22 }
0x1212   : > { %s3973_s22 = smov %s3128_s23  ;;  %s3974_s23 = smov %s3522_s15 }
0x1213   : > { %s3975_s24 = smov %s3510_s13  ;;  %33 = sbr.rel (!%p31_p9) target bundleno = 17 (0x11), region = 157 }
0x121a   :  { %1990 = vsyncpa [#allocation3], 1 }
0x121b   :  { %1992 = vsyncpa [#allocation3 + $0x1], 1 }
0x121c   :  { %1993 = vsyncpa [#allocation6], 1 }
0x121d   :  { %1994 = vsyncpa [#allocation9], 1 }
0x121e   :  { %1995 = vsyncpa [#allocation12], 1 }
0x121f   :  { %1996 = vsyncpa [#allocation15], 1 }
0x1220   :  { %1997 = vsyncpa [#allocation18], 1 }
0x1221   :  { %1998 = vsyncpa [#allocation21], 1 }
0x1222   :  { %1999 = vsyncpa [#allocation4], 1 }
0x1223   :  { %2001 = vsyncpa [#allocation4 + $0x1], 1 }

</bundles_post_ra>
